<compile_context>
chip_gen: v7x
topology: tpu7x:2x2x1
jax: 0.10.0
libtpu: 0.0.40
codegen_flags: <defaults>
</compile_context>

<pallas_src>
import functools
import math

import jax
import jax.numpy as jnp
from jax.experimental import pallas as pl
from jax.experimental.pallas import tpu as pltpu


def _sine_pos_embed_kernel(mask_ref, tril_ref, xcum_tile_ref, tile_ref,
                           rowsel_ref, inv_dim_ref, phase_ref, out_ref, *,
                           normalize, scale, eps):
    """One grid step == one image.  All heavy math is lane-dense (last dim = H*W).

    mask_ref:      (H, W)   f32 0/1 pixel mask.
    tril_ref:      (H, H)   tril[h, h'] = 1 if h' <= h            (cumsum over H)
    xcum_tile_ref: (W, HW)  [w', h*W+w] = 1 if w' <= w   (cumsum over W, tiled to lanes)
    tile_ref:      (W, HW)  [w', h*W+w] = 1 if w' == w   (tile (H,W) -> (H,HW) along lanes)
    rowsel_ref:    (H, HW)  [h', h*W+w] = 1 if h' == h   (pick row h for flat pos h*W+w)
    inv_dim_ref:   (D, 1)   1 / dim_t
    phase_ref:     (D, 1)   0 for even channels, pi/2 for odd (cos(x) = sin(x + pi/2))
    out_ref:       (2D, HW) output slab [pos_x ; pos_y]; wrapper reshapes to (2D, H, W).
    """
    mask = mask_ref[...]
    h, w = mask.shape

    # Cumulative sums as matmuls on the MXU (operands are 0/1 or small integers
    # -> exact at any matmul precision).  The results are already "tiled" along
    # lanes:  xt[h', h*W+w] = sum_{w'<=w} mask[h', w']   (x-cumsum)
    #         yt[h', h*W+w] = sum_{h''<=h'} mask[h'', w] (y-cumsum)
    xt = jnp.dot(mask, xcum_tile_ref[...], preferred_element_type=jnp.float32)
    mask_tiled = jnp.dot(mask, tile_ref[...], preferred_element_type=jnp.float32)
    yt = jnp.dot(tril_ref[...], mask_tiled, preferred_element_type=jnp.float32)

    if normalize:
        # Reference: embed / (last_row_or_col + eps) * scale.
        # x denominator depends only on the row    -> (H, 1), broadcast over lanes.
        # y denominator depends only on the column -> (1, HW), broadcast over sublanes.
        xt = xt * (scale / (xt[:, w - 1:w] + eps))
        yt = yt * (scale / (yt[h - 1:h, :] + eps))

    # Collapse (H, HW) -> (1, HW): for flat position h*W+w keep row h' == h.
    rowsel = rowsel_ref[...]
    x_flat = jnp.sum(xt * rowsel, axis=0, keepdims=True)   # (1, HW)
    y_flat = jnp.sum(yt * rowsel, axis=0, keepdims=True)   # (1, HW)

    inv_dim = inv_dim_ref[...]        # (D, 1)
    phase = phase_ref[...]            # (D, 1)
    d = inv_dim.shape[0]

    # (1, HW) x (D, 1) -> (D, HW): fully lane-dense VPU work, one sin/element on
    # the EUP, then dense unmasked stores of 128-lane rows.
    out_ref[:d, :] = jnp.sin(x_flat * inv_dim + phase).astype(out_ref.dtype)
    out_ref[d:, :] = jnp.sin(y_flat * inv_dim + phase).astype(out_ref.dtype)


def detr_sine_position_embedding(pixel_values, pixel_mask, *, embedding_dim=64,
                                 temperature=10000.0, normalize=False, scale=None):
    """Pallas TPU implementation of DetrSinePositionEmbedding.forward.

    pixel_values: (B, C, H, W) -- only used for device placement in torch; unused here.
    pixel_mask:   (B, H, W) int/bool mask of valid pixels.
    Returns:      (B, 2*embedding_dim, H, W) float32 position embeddings.
    """
    if pixel_mask is None:
        raise ValueError("No pixel mask provided")
    if scale is None:
        scale = 2.0 * math.pi
    del pixel_values  # torch only uses it for .device

    b, h, w = pixel_mask.shape
    d = embedding_dim
    hw = h * w

    mask_f32 = pixel_mask.astype(jnp.float32)

    # ---- Constant operator matrices (host-built, VMEM-resident in kernel). ----
    w_of = jnp.arange(hw) % w          # flat lane -> w index
    h_of = jnp.arange(hw) // w         # flat lane -> h index
    tril_h = (jnp.arange(h)[:, None] >= jnp.arange(h)[None, :]).astype(jnp.float32)  # (H, H)
    xcum_tile = (jnp.arange(w)[:, None] <= w_of[None, :]).astype(jnp.float32)        # (W, HW)
    tile_w = (jnp.arange(w)[:, None] == w_of[None, :]).astype(jnp.float32)           # (W, HW)
    rowsel = (jnp.arange(h)[:, None] == h_of[None, :]).astype(jnp.float32)           # (H, HW)

    # Per-channel constants: dim_t[c] = T ** (2*(c//2)/D); cos(x) = sin(x + pi/2).
    ch = jnp.arange(d, dtype=jnp.float32)
    dim_t = jnp.asarray(temperature, jnp.float32) ** (2.0 * jnp.floor(ch / 2.0) / d)
    inv_dim = (1.0 / dim_t).reshape(d, 1)
    phase = ((jnp.arange(d) % 2).astype(jnp.float32) * (math.pi / 2.0)).reshape(d, 1)

    kernel = functools.partial(
        _sine_pos_embed_kernel, normalize=normalize, scale=float(scale), eps=1e-6)

    out_flat = pl.pallas_call(
        kernel,
        out_shape=jax.ShapeDtypeStruct((b, 2 * d, hw), jnp.float32),
        grid_spec=pltpu.PrefetchScalarGridSpec(
            num_scalar_prefetch=0,
            grid=(b,),
            in_specs=[
                pl.BlockSpec((None, h, w), lambda i: (i, 0, 0)),   # mask: one image / step
                pl.BlockSpec((h, h), lambda i: (0, 0)),            # tril (cumsum over H)
                pl.BlockSpec((w, hw), lambda i: (0, 0)),           # x-cumsum + lane-tile operator
                pl.BlockSpec((w, hw), lambda i: (0, 0)),           # lane-tile operator
                pl.BlockSpec((h, hw), lambda i: (0, 0)),           # row selector
                pl.BlockSpec((d, 1), lambda i: (0, 0)),            # 1/dim_t
                pl.BlockSpec((d, 1), lambda i: (0, 0)),            # phase
            ],
            out_specs=pl.BlockSpec((None, 2 * d, hw), lambda i: (i, 0, 0)),
        ),
        compiler_params=pltpu.CompilerParams(
            dimension_semantics=("parallel",),
        ),
    )(mask_f32, tril_h, xcum_tile, tile_w, rowsel, inv_dim, phase)

    # Free row-major regrouping back to the module's (B, 2D, H, W) layout.
    return out_flat.reshape(b, 2 * d, h, w)


def _reference(pixel_mask, *, embedding_dim=64, temperature=10000.0,
               normalize=False, scale=None):
    """Pure-JAX mirror of the PyTorch forward (for correctness checking)."""
    if scale is None:
        scale = 2.0 * math.pi
    mask = pixel_mask.astype(jnp.float32)
    y_embed = jnp.cumsum(mask, axis=1)
    x_embed = jnp.cumsum(mask, axis=2)
    if normalize:
        y_embed = y_embed / (y_embed[:, -1:, :] + 1e-6) * scale
        x_embed = x_embed / (x_embed[:, :, -1:] + 1e-6) * scale
    dim_t = jnp.arange(embedding_dim, dtype=jnp.float32)
    dim_t = jnp.asarray(temperature, jnp.float32) ** (
        2.0 * jnp.floor(dim_t / 2.0) / embedding_dim)
    pos_x = x_embed[:, :, :, None] / dim_t
    pos_y = y_embed[:, :, :, None] / dim_t
    b, h, w = mask.shape
    pos_x = jnp.stack((jnp.sin(pos_x[..., 0::2]), jnp.cos(pos_x[..., 1::2])),
                      axis=-1).reshape(b, h, w, embedding_dim)
    pos_y = jnp.stack((jnp.sin(pos_y[..., 0::2]), jnp.cos(pos_y[..., 1::2])),
                      axis=-1).reshape(b, h, w, embedding_dim)
    pos = jnp.concatenate((pos_x, pos_y), axis=3).transpose(0, 3, 1, 2)
    return pos


if __name__ == "__main__":
    batch, channels, height, width = 2, 4, 16, 16
    embedding_dim = 64

    key = jax.random.PRNGKey(0)
    pixel_values = jax.random.normal(key, (batch, channels, height, width), jnp.float32)

    # DETR-style padding mask: valid (=1) top-left region per image.
    valid_h = jnp.array([height, 12])
    valid_w = jnp.array([width, 10])
    rows = jnp.arange(height)[None, :, None]
    cols = jnp.arange(width)[None, None, :]
    pixel_mask = ((rows < valid_h[:, None, None]) &
                  (cols < valid_w[:, None, None])).astype(jnp.int32)

    pos = detr_sine_position_embedding(
        pixel_values, pixel_mask, embedding_dim=embedding_dim, normalize=True)
    pos = jax.block_until_ready(pos)

    ref = _reference(pixel_mask, embedding_dim=embedding_dim, normalize=True)

    assert pos.shape == (batch, 2 * embedding_dim, height, width)
    assert bool(jnp.allclose(pos, ref, atol=1e-4, rtol=1e-4)), "mismatch vs reference"

    print("KERNEL_OK")
</pallas_src>

<mosaic_0001>
module attributes {stable_mosaic.version = 11 : i64} {
  func.func @_sine_pos_embed_kernel(%arg0: i32, %arg1: memref<1x16x16xf32, #tpu.memory_space<vmem>>, %arg2: memref<16x16xf32, #tpu.memory_space<vmem>>, %arg3: memref<16x256xf32, #tpu.memory_space<vmem>>, %arg4: memref<16x256xf32, #tpu.memory_space<vmem>>, %arg5: memref<16x256xf32, #tpu.memory_space<vmem>>, %arg6: memref<64x1xf32, #tpu.memory_space<vmem>>, %arg7: memref<64x1xf32, #tpu.memory_space<vmem>>, %arg8: memref<1x128x256xf32, #tpu.memory_space<vmem>>) attributes {dimension_semantics = [#tpu.dimension_semantics<parallel>], iteration_bounds = array<i64: 2>, scalar_prefetch = 0 : i64, scratch_operands = 0 : i64, tpu.core_type = #tpu.core_type<tc>, window_params = [{transform_indices = @transform_0, window_bounds = array<i64: 1, 16, 16>}, {pipeline_mode = #tpu.pipeline_mode<synchronous>, transform_indices = @transform_1, window_bounds = array<i64: 16, 16>}, {pipeline_mode = #tpu.pipeline_mode<synchronous>, transform_indices = @transform_2, window_bounds = array<i64: 16, 256>}, {pipeline_mode = #tpu.pipeline_mode<synchronous>, transform_indices = @transform_3, window_bounds = array<i64: 16, 256>}, {pipeline_mode = #tpu.pipeline_mode<synchronous>, transform_indices = @transform_4, window_bounds = array<i64: 16, 256>}, {pipeline_mode = #tpu.pipeline_mode<synchronous>, transform_indices = @transform_5, window_bounds = array<i64: 64, 1>}, {pipeline_mode = #tpu.pipeline_mode<synchronous>, transform_indices = @transform_6, window_bounds = array<i64: 64, 1>}, {transform_indices = @transform_7, window_bounds = array<i64: 1, 128, 256>}]} {
    %c0 = arith.constant 0 : index
    %c0_0 = arith.constant 0 : index
    %c0_1 = arith.constant 0 : index
    %0 = vector.load %arg1[%c0, %c0_0, %c0_1] : memref<1x16x16xf32, #tpu.memory_space<vmem>>, vector<1x16x16xf32>
    %1 = vector.shape_cast %0 : vector<1x16x16xf32> to vector<16x16xf32>
    %c0_2 = arith.constant 0 : index
    %c0_3 = arith.constant 0 : index
    %2 = vector.load %arg3[%c0_2, %c0_3] : memref<16x256xf32, #tpu.memory_space<vmem>>, vector<16x256xf32>
    %cst = arith.constant dense<0.000000e+00> : vector<16x256xf32>
    %3 = tpu.matmul %1, %2, %cst {dimension_numbers = #tpu.dot_dimension_numbers<[1], [0], [0], [1], [0, 0, 1, 1], [], []>} : vector<16x16xf32>, vector<16x256xf32>, vector<16x256xf32> -> vector<16x256xf32>
    %c0_4 = arith.constant 0 : index
    %c0_5 = arith.constant 0 : index
    %4 = vector.load %arg4[%c0_4, %c0_5] : memref<16x256xf32, #tpu.memory_space<vmem>>, vector<16x256xf32>
    %cst_6 = arith.constant dense<0.000000e+00> : vector<16x256xf32>
    %5 = tpu.matmul %1, %4, %cst_6 {dimension_numbers = #tpu.dot_dimension_numbers<[1], [0], [0], [1], [0, 0, 1, 1], [], []>} : vector<16x16xf32>, vector<16x256xf32>, vector<16x256xf32> -> vector<16x256xf32>
    %c0_7 = arith.constant 0 : index
    %c0_8 = arith.constant 0 : index
    %6 = vector.load %arg2[%c0_7, %c0_8] : memref<16x16xf32, #tpu.memory_space<vmem>>, vector<16x16xf32>
    %cst_9 = arith.constant dense<0.000000e+00> : vector<16x256xf32>
    %7 = tpu.matmul %6, %5, %cst_9 {dimension_numbers = #tpu.dot_dimension_numbers<[1], [0], [0], [1], [0, 0, 1, 1], [], []>} : vector<16x16xf32>, vector<16x256xf32>, vector<16x256xf32> -> vector<16x256xf32>
    %8 = vector.extract_strided_slice %3 {offsets = [0, 15], sizes = [16, 1], strides = [1, 1]} : vector<16x256xf32> to vector<16x1xf32>
    %cst_10 = arith.constant 9.99999997E-7 : f32
    %9 = vector.broadcast %cst_10 : f32 to vector<16x1xf32>
    %10 = arith.addf %8, %9 : vector<16x1xf32>
    %cst_11 = arith.constant 6.28318548 : f32
    %11 = vector.broadcast %cst_11 : f32 to vector<16x1xf32>
    %12 = arith.divf %11, %10 : vector<16x1xf32>
    %13 = vector.broadcast %12 : vector<16x1xf32> to vector<16x256xf32>
    %14 = arith.mulf %3, %13 : vector<16x256xf32>
    %15 = vector.extract_strided_slice %7 {offsets = [15, 0], sizes = [1, 256], strides = [1, 1]} : vector<16x256xf32> to vector<1x256xf32>
    %cst_12 = arith.constant 9.99999997E-7 : f32
    %16 = vector.broadcast %cst_12 : f32 to vector<1x256xf32>
    %17 = arith.addf %15, %16 : vector<1x256xf32>
    %cst_13 = arith.constant 6.28318548 : f32
    %18 = vector.broadcast %cst_13 : f32 to vector<1x256xf32>
    %19 = arith.divf %18, %17 : vector<1x256xf32>
    %20 = vector.broadcast %19 : vector<1x256xf32> to vector<16x256xf32>
    %21 = arith.mulf %7, %20 : vector<16x256xf32>
    %c0_14 = arith.constant 0 : index
    %c0_15 = arith.constant 0 : index
    %22 = vector.load %arg5[%c0_14, %c0_15] : memref<16x256xf32, #tpu.memory_space<vmem>>, vector<16x256xf32>
    %23 = arith.mulf %14, %22 : vector<16x256xf32>
    %cst_16 = arith.constant dense<0.000000e+00> : vector<256xf32>
    %24 = vector.multi_reduction <add>, %23, %cst_16 [0] : vector<16x256xf32> to vector<256xf32>
    %25 = vector.shape_cast %24 : vector<256xf32> to vector<1x256xf32>
    %26 = arith.mulf %21, %22 : vector<16x256xf32>
    %cst_17 = arith.constant dense<0.000000e+00> : vector<256xf32>
    %27 = vector.multi_reduction <add>, %26, %cst_17 [0] : vector<16x256xf32> to vector<256xf32>
    %28 = vector.shape_cast %27 : vector<256xf32> to vector<1x256xf32>
    %c0_18 = arith.constant 0 : index
    %c0_19 = arith.constant 0 : index
    %29 = vector.load %arg6[%c0_18, %c0_19] : memref<64x1xf32, #tpu.memory_space<vmem>>, vector<64x1xf32>
    %c0_20 = arith.constant 0 : index
    %c0_21 = arith.constant 0 : index
    %30 = vector.load %arg7[%c0_20, %c0_21] : memref<64x1xf32, #tpu.memory_space<vmem>>, vector<64x1xf32>
    %31 = vector.broadcast %25 : vector<1x256xf32> to vector<64x256xf32>
    %32 = vector.broadcast %29 : vector<64x1xf32> to vector<64x256xf32>
    %33 = arith.mulf %31, %32 : vector<64x256xf32>
    %34 = vector.broadcast %30 : vector<64x1xf32> to vector<64x256xf32>
    %35 = arith.addf %33, %34 : vector<64x256xf32>
    %36 = math.sin %35 : vector<64x256xf32>
    %c0_22 = arith.constant 0 : index
    %c0_23 = arith.constant 0 : index
    %c0_24 = arith.constant 0 : index
    %37 = vector.load %arg8[%c0_22, %c0_23, %c0_24] : memref<1x128x256xf32, #tpu.memory_space<vmem>>, vector<1x64x256xf32>
    %38 = vector.shape_cast %37 : vector<1x64x256xf32> to vector<64x256xf32>
    %39 = vector.shape_cast %36 : vector<64x256xf32> to vector<1x64x256xf32>
    tpu.vector_store %arg8[%c0_22, %c0_23, %c0_24], %39 {strides = array<i32>} : memref<1x128x256xf32, #tpu.memory_space<vmem>>, vector<1x64x256xf32>,
    %40 = vector.broadcast %28 : vector<1x256xf32> to vector<64x256xf32>
    %41 = vector.broadcast %29 : vector<64x1xf32> to vector<64x256xf32>
    %42 = arith.mulf %40, %41 : vector<64x256xf32>
    %43 = vector.broadcast %30 : vector<64x1xf32> to vector<64x256xf32>
    %44 = arith.addf %42, %43 : vector<64x256xf32>
    %45 = math.sin %44 : vector<64x256xf32>
    %c0_25 = arith.constant 0 : index
    %c64 = arith.constant 64 : index
    %c0_26 = arith.constant 0 : index
    %46 = vector.load %arg8[%c0_25, %c64, %c0_26] : memref<1x128x256xf32, #tpu.memory_space<vmem>>, vector<1x64x256xf32>
    %47 = vector.shape_cast %46 : vector<1x64x256xf32> to vector<64x256xf32>
    %48 = vector.shape_cast %45 : vector<64x256xf32> to vector<1x64x256xf32>
    tpu.vector_store %arg8[%c0_25, %c64, %c0_26], %48 {strides = array<i32>} : memref<1x128x256xf32, #tpu.memory_space<vmem>>, vector<1x64x256xf32>,
    return
  }
  func.func @transform_0(%arg0: i32) -> (i32, i32, i32) {
    %c0_i32 = arith.constant 0 : i32
    %c0_i32_0 = arith.constant 0 : i32
    %c0_i32_1 = arith.constant 0 : i32
    return %arg0, %c0_i32, %c0_i32_0 : i32, i32, i32
  }
  func.func @transform_1(%arg0: i32) -> (i32, i32) {
    %c0_i32 = arith.constant 0 : i32
    %c0_i32_0 = arith.constant 0 : i32
    %c0_i32_1 = arith.constant 0 : i32
    return %c0_i32, %c0_i32_0 : i32, i32
  }
  func.func @transform_2(%arg0: i32) -> (i32, i32) {
    %c0_i32 = arith.constant 0 : i32
    %c0_i32_0 = arith.constant 0 : i32
    %c0_i32_1 = arith.constant 0 : i32
    return %c0_i32, %c0_i32_0 : i32, i32
  }
  func.func @transform_3(%arg0: i32) -> (i32, i32) {
    %c0_i32 = arith.constant 0 : i32
    %c0_i32_0 = arith.constant 0 : i32
    %c0_i32_1 = arith.constant 0 : i32
    return %c0_i32, %c0_i32_0 : i32, i32
  }
  func.func @transform_4(%arg0: i32) -> (i32, i32) {
    %c0_i32 = arith.constant 0 : i32
    %c0_i32_0 = arith.constant 0 : i32
    %c0_i32_1 = arith.constant 0 : i32
    return %c0_i32, %c0_i32_0 : i32, i32
  }
  func.func @transform_5(%arg0: i32) -> (i32, i32) {
    %c0_i32 = arith.constant 0 : i32
    %c0_i32_0 = arith.constant 0 : i32
    %c0_i32_1 = arith.constant 0 : i32
    return %c0_i32, %c0_i32_0 : i32, i32
  }
  func.func @transform_6(%arg0: i32) -> (i32, i32) {
    %c0_i32 = arith.constant 0 : i32
    %c0_i32_0 = arith.constant 0 : i32
    %c0_i32_1 = arith.constant 0 : i32
    return %c0_i32, %c0_i32_0 : i32, i32
  }
  func.func @transform_7(%arg0: i32) -> (i32, i32, i32) {
    %c0_i32 = arith.constant 0 : i32
    %c0_i32_0 = arith.constant 0 : i32
    %c0_i32_1 = arith.constant 0 : i32
    return %arg0, %c0_i32, %c0_i32_0 : i32, i32, i32
  }
}

</mosaic_0001>

<bundles_post_ra>
// kernel: tpu_custom_call.1
= control target key start
LH: loop header
LB: loop body
LE: loop exit
PB: predicated region body
PF: predicated region fallthrough
CT: control target
= control target key end

     0   :  { %12 = vsyncpa [#allocation3], 0  ;;  %s7867_s0 = inlined_call_operand.vmem [shape: f32[2,16,16], index: 0, kind: input, shape index: {}]   ;;  %s7868_s1 = inlined_call_operand.hbm [shape: f32[16,16], index: 1, kind: input, shape index: {}]   ;;  %s7869_s2 = inlined_call_operand.vmem [shape: f32[16,256], index: 2, kind: input, shape index: {}]   ;;  %s7870_s3 = inlined_call_operand.vmem [shape: f32[16,256], index: 3, kind: input, shape index: {}]   ;;  %s7871_s4 = inlined_call_operand.vmem [shape: f32[16,256], index: 4, kind: input, shape index: {}]   ;;  %s7872_s5 = inlined_call_operand.vmem [shape: f32[64,1], index: 5, kind: input, shape index: {}]   ;;  %s7873_s6 = inlined_call_operand.vmem [shape: f32[64,1], index: 6, kind: input, shape index: {}]   ;;  %s7874_s7 = inlined_call_operand.hbm [shape: f32[2,128,256], index: 7, kind: output, shape index: {}]  }
   0x1   :  { %13 = vsyncpa [#allocation4], 0 }
   0x2   :  { %15 = vsyncpa [#allocation4 + $0x1], 0  ;;  %s4884_s24 = smov 0   ;;  %s4886_s25 = smov 0  }
   0x3   :  { %s4888_s26 = smov 0   ;;  %s4890_s27 = smov 0  }
   0x4 LB: > { %s4905_s28 = sadd.s32 4294967295, %s4827_s27   ;;  %s4234_s29 = sadd.s32 4294967294, %s4827_s27   ;;  %s4827_s27 = sphi %s4890_s27, %s7981_s27   ;;  %s4823_s26 = sphi %s4888_s26, %s7980_s26   ;;  %s4819_s25 = sphi %s4886_s25, %s7979_s25   ;;  %s4815_s24 = sphi %s4884_s24, %s7978_s24  }
   0x5   : > { %s4909_s30 = sadd.s32 1, %s4827_s27   ;;  %s180_s8 = sadd.s32 1, %s4823_s26 }
   0x6   : > { %s177_s9 = ssub.s32 %s4827_s27, %s4909_s30  ;;  %p190_p0 = scmp.ne.s32.totalorder %s4823_s26, %s4819_s25 }
   0x7   : > { %p178_p1 = scmp.eq.s32.totalorder %s177_s9, 0  ;;  %p191_p2 = scmp.eq.s32.totalorder %s4905_s28, 1 }
   0x8   : > { %p196_p3 = scmp.ne.s32.totalorder %s4819_s25, %s4815_s24  ;;  %p197_p4 = scmp.eq.s32.totalorder %s4234_s29, 1 }
   0x9   : > { %s4920_s10 = scalar_select %p178_p1, %s4823_s26, %s180_s8  }
   0xa   : > { %p4922_p5 = por %p191_p2, %p190_p0  ;;  %p4926_p6 = por %p197_p4, %p196_p3 }
   0xb   : > { %p4235_p7 = scmp.ge.s32.totalorder %s4827_s27, 1  ;;  %p204_p8 = scmp.lt.s32.totalorder %s4827_s27, 3 }
   0xc   : > { %s7895_s11 = scalar_select %p4922_p5, 1, 0 }
   0xd   : > { %s7896_s12 = scalar_select %p4926_p6, 1, 0 }
   0xe   : > { %p7875_p9 = scmp.eq.s32.totalorder %s4905_s28, 0  ;;  %p4933_p10 = pnand %p4235_p7, %p204_p8 }
   0xf   : > { %s4829_s14 = smov [#allocation2]   ;;  %s4733_s19 = scalar_lea.hbm %s7868_s1, 256 }
  0x10   : > { %s7897_s13 = scalar_select %p4933_p10, 1, 0 }
  0x11   : > { %s216_s15 = sshll.u32 %s4829_s14, 4  ;;  %p4532_p11 = pneg %p4933_p10  ;;  %s217_s15 = int_to_ptr.vmem [resolvable:$true] %s216_s15 }
  0x12   : > { %p4734_p13 = scmp.ne.s32.totalorder %s7868_s1, %s4733_s19  ;;  %p4740_p3 = scmp.lt.u32.totalorder %s4733_s19, %s7868_s1 }
  0x13   : > { %p4941_p12 = pnand %p7875_p9, %p4532_p11 }
  0x15   : > { %p4735_p0 = pneg %p4941_p12 }
  0x17   : > { %p4736_p1 = pnand %p4735_p0, %p4734_p13 }
  0x19   : > { %p4737_p2 = pneg %p4736_p1 }
  0x1b   : > { %p4742_p4 = pnand %p4740_p3, %p4737_p2 }
  0x1d   : > { %4745 = shalt.err (!%p4742_p4)
}
  0x1e   : > { %s4746_s29 = scalar_lea.vmem %s217_s15, 256  ;;  %p4754_p9 = scmp.lt.s32.totalorder %s217_s15, %s217_s15 }
  0x1f   : > { %p4747_p7 = scmp.ne.s32.totalorder %s217_s15, %s4746_s29  ;;  %p4755_p6 = scmp.lt.s32.totalorder %s4746_s29, %s4746_s29 }
  0x21   : > { %p4749_p8 = pnand %p4747_p7, %p4735_p0  ;;  %p4756_p5 = por %p4755_p6, %p4754_p9 }
  0x23   : > { %p4750_p11 = pneg %p4749_p8 }
  0x25   : > { %p4757_p10 = pnand %p4756_p5, %p4750_p11 }
  0x27   : > { %4760 = shalt.err (!%p4757_p10)
}
  0x28   : > { %s4830_s8 = smov 128   ;;  %s4831_s9 = smov 8  }
  0x29   : > { %4535 = dma.hbm_to_vmem [thread:$0]  (!%p4941_p12), %s7868_s1, 256, %s217_s15, [#allocation3], %s4830_s8, %s4830_s8, %s4831_s9  }
  0x2a   : > { %p7899_p13 = scmp.ne.s32.totalorder %s7897_s13, 0 }
  0x2c   : > { %255 = sbr.rel (%p7899_p13) target bundleno = 1316 (0x524), region = 48 }
  0x33   : > { %p7900_p1 = scmp.eq.s32.totalorder %s4905_s28, 0 }
  0x35   : > { %4806 = dma.done.wait (%p7900_p1), [#allocation3], 256   ;;  %p7901_p0 = pmov %p7900_p1 }
  0x36   : > { %p287_p5 = scmp.lt.s32.totalorder %s4905_s28, 1  ;;  %v4832_v0 = vmov 0.0   ;;  %v295_v1 = vld [vmem:[%s7869_s2 + $0x8] sm:$0xff]  ;;  %v297_v2 = vld [vmem:[%s7869_s2 + $0x18] sm:$0xff]  ;;  %v294_v3 = vld [vmem:[%s7869_s2] sm:$0xff]  ;;  %vm298_vm0 = vcmask 130048  }
  0x37   : > { %4808 = vsyncadd (%p7901_p0), [#allocation3], 4294967040  ;;  %369 = vmatprep.mubr.f32.mxu0 %v4832_v0  ;;  %375 = vmatprep.mubr.f32.mxu1 %v4832_v0  ;;  %v4384_v4 = vpack.c.bf16 %v297_v2, %v295_v1  ;;  %v296_v5 = vld [vmem:[%s7869_s2 + $0x10] sm:$0xff]  ;;  %v383_v7 = vld [vmem:[%s7870_s3 + $0x8] sm:$0xff]  ;;  %v4833_v15 = vmov 0   ;;  %v4834_v22 = vmov 15  }
  0x38   : > { %s288_s16 = scalar_select %p287_p5, %s4905_s28, 1  ;;  %v4386_v6 = vpack.c.bf16 %v296_v5, %v294_v3  ;;  %v385_v8 = vld [vmem:[%s7870_s3 + $0x18] sm:$0xff]  ;;  %v382_v9 = vld [vmem:[%s7870_s3] sm:$0xff]  ;;  %v384_v11 = vld [vmem:[%s7870_s3 + $0x10] sm:$0xff]  ;;  %4590 = vset.pattern.permute.xlu0 %v4833_v15  ;;  %4589 = vset.pattern.permute.xlu1 %v4833_v15 }
  0x39   : > { %4385 = vmatprep.subr.bf16.mxu0 %v4384_v4  ;;  %4396 = vmatprep.subr.bf16.mxu1 %v4384_v4  ;;  %v4388_v10 = vpack.c.bf16 %v385_v8, %v383_v7  ;;  %v4390_v14 = vpack.c.bf16 %v384_v11, %v382_v9  ;;  %v628_v16 = vld [vmem:[%s7872_s5 + $0x10] sm:$0xff]  ;;  %v631_v17 = vld [vmem:[%s7872_s5 + $0x28] sm:$0xff]  ;;  %v626_v18 = vld [vmem:[%s7872_s5] sm:$0xff]  ;;  %s284_s21 = sand.u32 1, %s4819_s25   ;;  %s4383_s19 = sshll.u32 %s4905_s28, 12 }
  0x3a   : > { %s4382_s18 = sshll.u32 %s288_s16, 4  ;;  %4387 = vmatpush1.bf16.msra.mxu0 %v4386_v6  ;;  %4397 = vmatpush1.bf16.msra.mxu1 %v4386_v6  ;;  %v633_v19 = vld [vmem:[%s7872_s5 + $0x38] sm:$0xff]  ;;  %v627_v20 = vld [vmem:[%s7872_s5 + $0x8] sm:$0xff]  ;;  %v630_v23 = vld [vmem:[%s7872_s5 + $0x20] sm:$0xff]  ;;  %s4240_s22 = sshll.u32 %s284_s21, 8 }
  0x3b   : > { %s291_s14 = scalar_lea.vmem %s7867_s0, %s4382_s18  ;;  %4389 = vmatprep.subr.bf16.mxu1 %v4388_v10  ;;  %654 = vperm.xlu0 %4590, %v628_v16   ;;  %v629_v21 = vld [vmem:[%s7872_s5 + $0x18] sm:$0xff]  ;;  %v632_v24 = vld [vmem:[%s7872_s5 + $0x30] sm:$0xff]  ;;  %v634_v25 = vld [vmem:[%s7873_s6] sm:$0xff]  ;;  %s5442_s18 = scalar_lea.vmem [#allocation5], %s4240_s22 }
  0x3c   : > { %v292_v12 = vld [vmem:[%s291_s14] sm:$0xff]  ;;  %v293_v13 = vld [vmem:[%s291_s14 + $0x8] sm:$0xff]  ;;  %644 = vperm.xlu1 %4589, %v626_v18   ;;  %v636_v26 = vld [vmem:[%s7873_s6 + $0x10] sm:$0xff]  ;;  %s4160_s13 = sshll.u32 %s5442_s18, 4  ;;  %s7818_s23 = scalar_lea.hbm %s7874_s7, %s4383_s19  ;;  %s7820_s13 = int_to_ptr.vmem [resolvable:$true] %s4160_s13 }
  0x3d   : > { %4243 = vmatmul.mubr.msk.f32.vlgmr.msra.gmra.mrb[0].mxu0 %vm298_vm0, %v292_v12  ;;  %4244 = vmatmul.mubr.msk.f32.vlgmr.msra.gmra.mrb[0].mxu1 %vm298_vm0, %v293_v13  ;;  %v638_v27 = vld [vmem:[%s7873_s6 + $0x20] sm:$0xff]  ;;  %v640_v28 = vld [vmem:[%s7873_s6 + $0x30] sm:$0xff]  ;;  %v464_v45 = vld [vmem:[#allocation2 + $0x8] sm:$0xff]  ;;  %s7826_s28 = scalar_lea.sflag [#allocation4], %s284_s21  ;;  %s4761_s29 = scalar_lea.vmem %s7820_s13, 4096 }
  0x3e   : > { %4391 = vmatpush1.bf16.msra.mxu1 %v4390_v14  ;;  %450 = vmatprep.mubr.f32.mxu1 %v4832_v0  ;;  %v463_v42 = vld [vmem:[#allocation2] sm:$0xff]  ;;  %v635_v47 = vld [vmem:[%s7873_s6 + $0x8] sm:$0xff]  ;;  %v637_v48 = vld [vmem:[%s7873_s6 + $0x18] sm:$0xff]  ;;  %p4762_p6 = scmp.ne.s32.totalorder %s7820_s13, %s4761_s29  ;;  %p7976_p9 = scmp.ne.s32.totalorder %s7895_s11, 0 }
  0x3f   : > { %535 = vmatprep.mubr.f32.mxu0 %v4832_v0  ;;  %669 = vperm.xlu0 %4590, %v631_v17   ;;  %v639_v49 = vld [vmem:[%s7873_s6 + $0x28] sm:$0xff]  ;;  %v641_v50 = vld [vmem:[%s7873_s6 + $0x38] sm:$0xff]  ;;  %v586_v59 = vld [vmem:[%s7871_s4] sm:$0xff]  ;;  %s4841_s8 = smov [#allocation5]  }
  0x40   : > { %649 = vperm.xlu1 %4589, %v627_v20   ;;  %v587_v61 = vld [vmem:[%s7871_s4 + $0x8] sm:$0xff]  ;;  %v588_v62 = vld [vmem:[%s7871_s4 + $0x10] sm:$0xff]  ;;  %p4763_p10 = pnand %p4762_p6, %p7976_p9  ;;  %s4765_s9 = sshll.u32 %s4841_s8, 4  ;;  %s4766_s9 = int_to_ptr.vmem [resolvable:$false] %s4765_s9 }
  0x41   : > { %4245 = vmatmul.mubr.msk.f32.vlgmr.msra.gmra.mrb[2].mxu1 %vm298_vm0, %v292_v12  ;;  %s4767_s14 = scalar_lea.vmem %s4766_s9, 8192  ;;  %p4768_p2 = scmp.lt.s32.totalorder %s7820_s13, %s4766_s9 }
  0x42   : > { %456 = vmatprep.mubr.f32.mxu1 %v4832_v0  ;;  %p4764_p12 = pneg %p4763_p10  ;;  %p4769_p3 = scmp.lt.s32.totalorder %s4767_s14, %s4761_s29 }
  0x43   : > { %679 = vperm.xlu0 %4590, %v633_v19  }
  0x44   : > { %659 = vperm.xlu1 %4589, %v629_v21   ;;  %p4770_p4 = por %p4769_p3, %p4768_p2 }
  0x45   : > { %4246 = vmatmul.mubr.msk.f32.gmra.mrb[4].mxu1 %vm298_vm0, %v293_v13 }
  0x46   : > { %p4771_p7 = pnand %p4770_p4, %p4764_p12 }
  0x47   : > { %4591 = vset.pattern.permute.xlu0 %v4834_v22 }
  0x48   : > { %664 = vperm.xlu1 %4589, %v630_v23  }
  0x4c   : > { %674 = vperm.xlu1 %4589, %v632_v24  }
  0x50   : > { %700 = vperm.xlu1 %4589, %v634_v25  }
  0x54   : > { %710 = vperm.xlu1 %4589, %v636_v26  }
  0x58   : > { %720 = vperm.xlu1 %4589, %v638_v27  }
  0x5c   : > { %730 = vperm.xlu1 %4589, %v640_v28  }
  0xba   : > { %v5056_v51 = vpop.permute.xlu0 %654 }
  0xbb   : > { %v5060_v53 = vpop.permute.xlu1 %644 }
  0xbe   : > { %v5058_v52 = vpop.permute.xlu0 %669 }
  0xbf   : > { %7902 = vst [vmem:[#allocation8_spill] sm:$0xff] %v5058_v52  ;;  %v5064_v55 = vpop.permute.xlu1 %649 }
  0xc2   : > { %v5062_v54 = vpop.permute.xlu0 %679 }
  0xc3   : > { %v5066_v57 = vpop.permute.xlu1 %659 }
  0xc7   : > { %v5080_v5 = vpop.permute.xlu1 %664 }
  0xcb   : > { %v5082_v12 = vpop.permute.xlu1 %674 }
  0xcc   : > { %7903 = vst [vmem:[#allocation9_spill] sm:$0xff] %v5082_v12 }
  0xcf   : > { %v5084_v16 = vpop.permute.xlu1 %700 }
  0xd3   : > { %v5102_v24 = vpop.permute.xlu1 %710 }
 0x110   : > { %v371_v29 = vpop.f32.mrb[0].mxu0  ;;  %v377_v30 = vpop.f32.mrb[0].mxu1 }
 0x111   : > { %v548_v31 = vadd.f32 1e-06, %v371_v29  ;;  %v549_v32 = vadd.f32 1e-06, %v377_v30  ;;  %v379_v33 = vpop.f32.mrb[1].mxu1  ;;  %v373_v34 = vpop.f32.mrb[1].mxu0 }
 0x113   : > { %4593 = vrcp.f32 %v548_v31 }
 0x114   : > { %v452_v35 = vpop.f32.mrb[2].mxu1  ;;  %4595 = vrcp.f32 %v549_v32 }
 0x115   : > { %v454_v36 = vpop.f32.mrb[3].mxu1 }
 0x118   : > { %v458_v37 = vpop.f32.mrb[4].mxu1 }
 0x119   : > { %v4394_v38 = vpack.c.bf16 %v458_v37, %v452_v35  ;;  %v460_v39 = vpop.f32.mrb[5].mxu1 }
 0x11a   : > { %v4392_v40 = vpack.c.bf16 %v460_v39, %v454_v36 }
 0x11c   : > { %4393 = vmatprep.subr.bf16.mxu0 %v4392_v40 }
 0x11d   : > { %v4594_v41 = vpop.eup %4593  ;;  %4395 = vmatpush1.bf16.msra.mxu0 %v4394_v38 }
 0x11e   : > { %v551_v43 = vmul.f32 6.2831855, %v4594_v41  ;;  %v4596_v44 = vpop.eup %4595 }
 0x11f   : > { %v553_v46 = vmul.f32 6.2831855, %v4596_v44 }
 0x120   : > { %4247 = vmatmul.mubr.msk.f32.vlgmr.msra.gmra.mrb[2].mxu0 %vm298_vm0, %v463_v42  ;;  %556 = vperm.xlu0 %4591, %v551_v43  }
 0x121   : > { %541 = vmatprep.mubr.f32.mxu0 %v4832_v0  ;;  %v589_v0 = vld [vmem:[%s7871_s4 + $0x18] sm:$0xff] }
 0x124   : > { %4248 = vmatmul.mubr.msk.f32.gmra.mrb[4].mxu0 %vm298_vm0, %v464_v45  ;;  %561 = vperm.xlu0 %4591, %v553_v46  }
 0x128   : > { %4592 = vset.pattern.permute.xlu0 %v4833_v15 }
 0x129   : > { %705 = vperm.xlu0 %4592, %v635_v47  }
 0x12d   : > { %715 = vperm.xlu0 %4592, %v637_v48  }
 0x131   : > { %725 = vperm.xlu0 %4592, %v639_v49  }
 0x135   : > { %735 = vperm.xlu0 %4592, %v641_v50  }
 0x19f   : > { %v557_v56 = vpop.permute.xlu0 %556 }
 0x1a0   : > { %v565_v58 = vmul.f32 %v557_v56, %v373_v34  ;;  %v564_v60 = vmul.f32 %v557_v56, %v371_v29 }
 0x1a2   : > { %v590_v3 = vmul.f32 %v586_v59, %v564_v60  ;;  %v591_v4 = vmul.f32 %v587_v61, %v565_v58 }
 0x1a3   : > { %v562_v63 = vpop.permute.xlu0 %561 }
 0x1a4   : > { %v566_v1 = vmul.f32 %v562_v63, %v377_v30  ;;  %v567_v2 = vmul.f32 %v562_v63, %v379_v33 }
 0x1a6   : > { %v592_v6 = vmul.f32 %v588_v62, %v566_v1  ;;  %v593_v7 = vmul.f32 %v589_v0, %v567_v2  ;;  %v7890_v2 = vmov 683565275  }
 0x1a8   : > { %v594_v8 = vadd.f32 %v592_v6, %v590_v3  ;;  %v601_v9 = vadd.f32 %v593_v7, %v591_v4  ;;  %v5094_v21 = vpop.permute.xlu0 %705  ;;  %v7886_v7 = vmov 2475754826  }
 0x1aa   : > { %v595_v10 = vrot.slane %v594_v8, 4  ;;  %v602_v30 = vrot.slane %v601_v9, 4 }
 0x1ac   : > { %v596_v11 = vadd.f32 %v595_v10, %v594_v8  ;;  %v5118_v40 = vpop.permute.xlu0 %715  ;;  %v5120_v41 = vadd.f32 %v602_v30, %v601_v9  ;;  %v7888_v9 = vmov 2131351028   ;;  %v4840_v30 = vmov 1326507024  }
 0x1ae   : > { %v597_v13 = vrot.slane %v596_v11, 2  ;;  %v604_v50 = vrot.slane %v5120_v41, 2 }
 0x1b0   : > { %v598_v14 = vadd.f32 %v597_v13, %v596_v11  ;;  %v4838_v11 = vmov 2102212464  }
 0x1b2   : > { %v599_v15 = vrot.slane %v598_v14, 1 }
 0x1b4   : > { %v5086_v17 = vadd.f32 %v599_v15, %v598_v14  ;;  %v4839_v14 = vmov 920167782  }
 0x1b6   : > { %v682_v18 = vmul.f32 %v5060_v53, %v5086_v17  ;;  %v684_v19 = vmul.f32 %v5064_v55, %v5086_v17  ;;  %v686_v20 = vmul.f32 %v5056_v51, %v5086_v17  ;;  %v688_v33 = vmul.f32 %v5066_v57, %v5086_v17 }
 0x1b8   : > { %v5097_v22 = vadd.f32 %v5084_v16, %v682_v18  ;;  %v5100_v23 = vadd.f32 %v5094_v21, %v684_v19  ;;  %v5105_v25 = vadd.f32 %v5102_v24, %v686_v20  ;;  %v5123_v44 = vadd.f32 %v5118_v40, %v688_v33 }
 0x1ba   : > { %v754_v26 = vand.u32 2147483647, %v5097_v22  ;;  %v757_v27 = vand.u32 2139095040, %v5097_v22  ;;  %v962_v28 = vand.u32 2147483647, %v5100_v23  ;;  %v965_v29 = vand.u32 2139095040, %v5100_v23 }
 0x1bb   : > { %v1173_v36 = vand.u32 2139095040, %v5105_v25  ;;  %v7879_v47 = vand.u32 2147483647, %v5105_v25  ;;  %v1381_v0 = vand.u32 2139095040, %v5123_v44  ;;  %vm756_vm14 = vcmp.lt.s32.totalorder %v5097_v22, 0 }
 0x1bc   : > { %v758_v31 = vshrl.u32 %v757_v27, 23  ;;  %v761_v32 = vand.u32 8388607, %v754_v26  ;;  %v966_v34 = vshrl.u32 %v965_v29, 23  ;;  %v969_v35 = vand.u32 8388607, %v962_v28 }
 0x1bd   : > { %v1174_v39 = vshrl.u32 %v1173_v36, 23  ;;  %v5133_v62 = vand.u32 8388607, %v7879_v47  ;;  %vm5236_vm15 = vcmp.le.f32.partialorder %v754_v26, 0.7853982 }
 0x1be   : > { %v4249_v37 = vadd.s32 4294967169, %v758_v31  ;;  %v4257_v38 = vadd.s32 4294967169, %v966_v34  ;;  %v762_v42 = vor.u32 8388608, %v761_v32  ;;  %v970_v45 = vor.u32 8388608, %v969_v35 }
 0x1bf   : > { %v4265_v48 = vadd.s32 4294967169, %v1174_v39 }
 0x1c0   : > { %v764_v43 = vadd.s32 1, %v4249_v37  ;;  %v972_v46 = vadd.s32 1, %v4257_v38  ;;  %v5127_v59 = vshll.u32 %v762_v42, 8  ;;  %v5129_v61 = vshll.u32 %v970_v45, 8 }
 0x1c1   : > { %v5135_v63 = vadd.s32 1, %v4265_v48 }
 0x1c2   : > { %vm765_vm1 = vcmp.gt.s32.totalorder %v764_v43, 0  ;;  %vm973_vm2 = vcmp.gt.s32.totalorder %v972_v46, 0 }
 0x1c3   : > { %v766_v49 = vsel %vm765_vm1, %v764_v43, 0  ;;  %v974_v60 = vsel %vm973_vm2, %v972_v46, 0  ;;  %vm1181_vm7 = vcmp.gt.s32.totalorder %v5135_v63, 0 }
 0x1c4   : > { %v767_v56 = vshrl.u32 %v766_v49, 5  ;;  %v768_v58 = vand.u32 31, %v766_v49  ;;  %v5139_v4 = vshrl.u32 %v974_v60, 5  ;;  %v976_v6 = vand.u32 31, %v974_v60 }
 0x1c6   : > { %v769_v1 = vsub.s32 32, %v768_v58  ;;  %v771_v3 = vshll.u32 %v7890_v2, %v768_v58  ;;  %v774_v8 = vshll.u32 %v7886_v7, %v768_v58  ;;  %v777_v10 = vshll.u32 %v7888_v9, %v768_v58 }
 0x1c7   : > { %v780_v13 = vshll.u32 %v4838_v11, %v768_v58  ;;  %v783_v15 = vshll.u32 %v4839_v14, %v768_v58  ;;  %vm786_vm3 = vcmp.lt.s32.totalorder %v767_v56, 1  ;;  %vm787_vm4 = vcmp.lt.s32.totalorder %v767_v56, 2 }
 0x1c8   : > { %v772_v18 = vshrl.u32 %v7886_v7, %v769_v1  ;;  %v775_v19 = vshrl.u32 %v7888_v9, %v769_v1  ;;  %v778_v20 = vshrl.u32 %v4838_v11, %v769_v1  ;;  %v770_v27 = vshrl.u32 %v7890_v2, %v769_v1 }
 0x1c9   : > { %v781_v29 = vshrl.u32 %v4839_v14, %v769_v1  ;;  %v784_v31 = vshrl.u32 %v4840_v30, %v769_v1  ;;  %v977_v35 = vsub.s32 32, %v976_v6  ;;  %vm788_vm5 = vcmp.lt.s32.totalorder %v767_v56, 3 }
 0x1ca   : > { %v773_v32 = vor.u32 %v772_v18, %v771_v3  ;;  %v776_v33 = vor.u32 %v775_v19, %v774_v8  ;;  %v779_v34 = vor.u32 %v778_v20, %v777_v10  ;;  %vm789_vm6 = vcmp.lt.s32.totalorder %v767_v56, 4 }
 0x1cb   : > { %v782_v36 = vor.u32 %v781_v29, %v780_v13  ;;  %v785_v37 = vor.u32 %v784_v31, %v783_v15  ;;  %v979_v49 = vshll.u32 %v7890_v2, %v976_v6  ;;  %v980_v1 = vshrl.u32 %v7886_v7, %v977_v35 }
 0x1cc   : > { %v790_v38 = vsel %vm786_vm3, %v770_v27, %v773_v32  ;;  %v791_v39 = vsel %vm789_vm6, %v779_v34, 2102212464  ;;  %v794_v42 = vsel %vm786_vm3, %v773_v32, %v776_v33  ;;  %v798_v43 = vsel %vm786_vm3, %v776_v33, %v779_v34 }
 0x1cd   : > { %v792_v45 = vsel %vm788_vm5, %v776_v33, %v791_v39  ;;  %v795_v46 = vsel %vm789_vm6, %v782_v36, 920167782  ;;  %v799_v48 = vsel %vm789_vm6, %v785_v37, 1326507024  ;;  %v982_v3 = vshll.u32 %v7886_v7, %v976_v6 }
 0x1ce   : > { %v796_v58 = vsel %vm788_vm5, %v779_v34, %v795_v46  ;;  %v800_v60 = vsel %vm788_vm5, %v782_v36, %v799_v48  ;;  %v793_v8 = vsel %vm787_vm4, %v790_v38, %v792_v45  ;;  %v983_v15 = vshrl.u32 %v7888_v9, %v977_v35 }
 0x1cf   : > { %v797_v10 = vsel %vm787_vm4, %v794_v42, %v796_v58  ;;  %v801_v13 = vsel %vm787_vm4, %v798_v43, %v800_v60  ;;  %v981_v29 = vor.u32 %v980_v1, %v979_v49  ;;  %v985_v32 = vshll.u32 %v7888_v9, %v976_v6 }
 0x1d0   : > { %v5163_v18 = vmul.u32.u64.low %v5127_v59, %v801_v13  ;;  %v5164_v19 = vmul.u32.u64.high %v5127_v59, %v801_v13, %v5163_v18  ;;  %v5167_v20 = vmul.u32.u64.low %v5127_v59, %v797_v10  ;;  %v5168_v27 = vmul.u32.u64.high %v5127_v59, %v797_v10, %v5167_v20 }
 0x1d1   : > { %v984_v31 = vor.u32 %v983_v15, %v982_v3  ;;  %v986_v33 = vshrl.u32 %v4838_v11, %v977_v35  ;;  %v978_v34 = vshrl.u32 %v7890_v2, %v977_v35  ;;  %v988_v56 = vshll.u32 %v4838_v11, %v976_v6 }
 0x1d2   : > { %v989_v36 = vshrl.u32 %v4839_v14, %v977_v35  ;;  %v992_v37 = vshrl.u32 %v4840_v30, %v977_v35  ;;  %v809_v38 = vmul.u32 %v5127_v59, %v793_v8  ;;  %v991_v42 = vshll.u32 %v4839_v14, %v976_v6 }
 0x1d3   : > { %v987_v39 = vor.u32 %v986_v33, %v985_v32  ;;  %vm994_vm8 = vcmp.lt.s32.totalorder %v5139_v4, 1  ;;  %vm811_vm9 = vc.u32 %v5164_v19, %v5167_v20  ;;  %v812_v43 = vadd.s32 1, %v5168_v27 }
 0x1d4   : > { %v990_v45 = vor.u32 %v989_v36, %v988_v56  ;;  %vm995_vm10 = vcmp.lt.s32.totalorder %v5139_v4, 2  ;;  %v993_v46 = vor.u32 %v992_v37, %v991_v42  ;;  %vm996_vm11 = vcmp.lt.s32.totalorder %v5139_v4, 3 }
 0x1d5   : > { %vm997_vm12 = vcmp.lt.s32.totalorder %v5139_v4, 4  ;;  %v1002_v35 = vsel %vm994_vm8, %v981_v29, %v984_v31  ;;  %v813_v59 = vsel %vm811_vm9, %v812_v43, %v5168_v27  ;;  %v1006_v6 = vsel %vm994_vm8, %v984_v31, %v987_v39 }
 0x1d6   : > { %v999_v48 = vsel %vm997_vm12, %v987_v39, 2102212464  ;;  %v1003_v49 = vsel %vm997_vm12, %v990_v45, 920167782  ;;  %v814_v58 = vadd.s32 %v813_v59, %v809_v38  ;;  %v998_v60 = vsel %vm994_vm8, %v978_v34, %v981_v29 }
 0x1d7   : > { %v1004_v1 = vsel %vm996_vm11, %v987_v39, %v1003_v49  ;;  %v1007_v3 = vsel %vm997_vm12, %v993_v46, 1326507024  ;;  %v1000_v8 = vsel %vm996_vm11, %v984_v31, %v999_v48  ;;  %v1182_v15 = vsel %vm1181_vm7, %v5135_v63, 0 }
 0x1d8   : > { %v1005_v10 = vsel %vm995_vm10, %v1002_v35, %v1004_v1  ;;  %v1008_v13 = vsel %vm996_vm11, %v990_v45, %v1007_v3  ;;  %v815_v18 = vadd.s32 536870912, %v814_v58  ;;  %v7878_v34 = vand.u32 2147483647, %v5123_v44 }
 0x1d9   : > { %v1009_v27 = vsel %vm995_vm10, %v1006_v6, %v1008_v13  ;;  %v5193_v32 = vmul.u32.u64.low %v5129_v61, %v1005_v10  ;;  %v5194_v33 = vmul.u32.u64.high %v5129_v61, %v1005_v10, %v5193_v32  ;;  %v1001_v36 = vsel %vm995_vm10, %v998_v60, %v1000_v8 }
 0x1da   : > { %v5198_v29 = vmul.u32.u64.low %v5129_v61, %v1009_v27  ;;  %v5199_v31 = vmul.u32.u64.high %v5129_v61, %v1009_v27, %v5198_v29  ;;  %v816_v56 = vshrl.u32 %v815_v18, 30  ;;  %v1178_v63 = vor.u32 8388608, %v5133_v62 }
 0x1db   : > { %v1184_v37 = vand.u32 31, %v1182_v15  ;;  %v5207_v38 = vmul.f32 %v5080_v5, %v5086_v17  ;;  %v5212_v39 = vadd.f32 %v604_v50, %v5120_v41  ;;  %v1020_v43 = vadd.s32 1, %v5194_v33 }
 0x1dc   : > { %v817_v42 = vshll.u32 %v816_v56, 30  ;;  %v1382_v4 = vshrl.u32 %v1381_v0, 23  ;;  %v1017_v46 = vmul.u32 %v5129_v61, %v1001_v36  ;;  %vm1019_vm13 = vc.u32 %v5199_v31, %v5193_v32 }
 0x1dd   : > { %v1185_v45 = vsub.s32 32, %v1184_v37  ;;  %v5222_v62 = vand.u32 8388607, %v7878_v34  ;;  %v5226_v41 = vmul.f32 %v5058_v52, %v5086_v17  ;;  %v1021_v35 = vsel %vm1019_vm13, %v1020_v43, %v5194_v33 }
 0x1de   : > { %v5229_v50 = vsub.s32 %v814_v58, %v817_v42  ;;  %v5232_v0 = vshll.u32 %v1178_v63, 8  ;;  %v810_v59 = vadd.s32 %v5167_v20, %v5164_v19  ;;  %v1022_v48 = vadd.s32 %v1021_v35, %v1017_v46 }
 0x1df   : > { %v5241_v49 = vshrl.u32 %v1182_v15, 5  ;;  %v1188_v6 = vshrl.u32 %v7886_v7, %v1185_v45  ;;  %v1191_v60 = vshrl.u32 %v7888_v9, %v1185_v45  ;;  %v1194_v1 = vshrl.u32 %v4838_v11, %v1185_v45 }
 0x1e0   : > { %v820_v58 = vsub.s32 0, %v5229_v50  ;;  %v4273_v3 = vadd.s32 4294967169, %v1382_v4  ;;  %v840_v8 = vsub.s32 4, %v816_v56  ;;  %v1023_v10 = vadd.s32 536870912, %v1022_v48 }
 0x1e1   : > { %v1187_v26 = vshll.u32 %v7890_v2, %v1184_v37  ;;  %v1190_v20 = vshll.u32 %v7886_v7, %v1184_v37  ;;  %v1193_v15 = vshll.u32 %v7888_v9, %v1184_v37  ;;  %v1197_v18 = vshrl.u32 %v4839_v14, %v1185_v45 }
 0x1e2   : > { %v4250_v19 = vmin.u32 %v820_v58, %v5229_v50  ;;  %v1024_v27 = vshrl.u32 %v1023_v10, 30  ;;  %v1196_v29 = vshll.u32 %v4838_v11, %v1184_v37  ;;  %v1200_v36 = vshrl.u32 %v4840_v30, %v1185_v45 }
 0x1e3   : > { %v1189_v33 = vor.u32 %v1188_v6, %v1187_v26  ;;  %v1192_v42 = vor.u32 %v1191_v60, %v1190_v20  ;;  %v1195_v43 = vor.u32 %v1194_v1, %v1193_v15  ;;  %v1199_v4 = vshll.u32 %v4839_v14, %v1184_v37 }
 0x1e4   : > { %v822_v63 = vclz %v4250_v19  ;;  %v841_v46 = vsel %vm756_vm14, %v840_v8, %v816_v56  ;;  %v1025_v35 = vshll.u32 %v1024_v27, 30  ;;  %v1198_v58 = vor.u32 %v1197_v18, %v1196_v29 }
 0x1e5   : > { %vm1202_vm0 = vcmp.lt.s32.totalorder %v5241_v49, 1  ;;  %v1201_v47 = vor.u32 %v1200_v36, %v1199_v4  ;;  %vm1203_vm1 = vcmp.lt.s32.totalorder %v5241_v49, 2  ;;  %vm1205_vm2 = vcmp.lt.s32.totalorder %v5241_v49, 4 }
 0x1e6   : > { %v4251_v34 = vadd.s32 4294967294, %v822_v63  ;;  %vm964_vm3 = vcmp.lt.s32.totalorder %v5100_v23, 0  ;;  %v5262_v6 = vsub.s32 %v1022_v48, %v1025_v35  ;;  %v1186_v60 = vshrl.u32 %v7890_v2, %v1185_v45 }
 0x1e7   : > { %vm1204_vm4 = vcmp.lt.s32.totalorder %v5241_v49, 3  ;;  %v1211_v56 = vsel %vm1205_vm2, %v1198_v58, 920167782  ;;  %v843_v37 = vsel %vm5236_vm15, 0, %v841_v46  ;;  %v1210_v1 = vsel %vm1202_vm0, %v1189_v33, %v1192_v42 }
 0x1e8   : > { %vm4252_vm5 = vcmp.lt.s32.totalorder %v4251_v34, 0  ;;  %v1212_v8 = vsel %vm1204_vm4, %v1195_v43, %v1211_v56  ;;  %v1028_v48 = vsub.s32 0, %v5262_v6  ;;  %v1048_v26 = vsub.s32 4, %v1024_v27 }
 0x1e9   : > { %v825_v10 = vsel %vm4252_vm5, 0, %v4251_v34  ;;  %v1214_v45 = vsel %vm1202_vm0, %v1192_v42, %v1195_v43  ;;  %vm5279_vm6 = vcmp.le.f32.partialorder %v962_v28, 0.7853982  ;;  %v1207_v18 = vsel %vm1205_vm2, %v1195_v43, 2102212464 }
 0x1ea   : > { %v826_v19 = vsub.s32 32, %v825_v10  ;;  %v830_v20 = vsub.s32 4294967266, %v825_v10  ;;  %v1215_v34 = vsel %vm1205_vm2, %v1201_v47, 1326507024  ;;  %v827_v29 = vshll.u32 %v5229_v50, %v825_v10 }
 0x1eb   : > { %v4258_v36 = vmin.u32 %v1028_v48, %v5262_v6  ;;  %v1213_v63 = vsel %vm1203_vm1, %v1210_v1, %v1212_v8  ;;  %v1216_v4 = vsel %vm1204_vm4, %v1198_v58, %v1215_v34  ;;  %v1388_v56 = vadd.s32 1, %v4273_v3 }
 0x1ec   : > { %v828_v28 = vshrl.u32 %v810_v59, %v826_v19  ;;  %v831_v46 = vadd.s32 127, %v830_v20  ;;  %v1217_v35 = vsel %vm1203_vm1, %v1214_v45, %v1216_v4  ;;  %v847_v43 = vadd.s32 3, %v843_v37 }
 0x1ed   : > { %v1030_v13 = vclz %v4258_v36  ;;  %v1206_v47 = vsel %vm1202_vm0, %v1186_v60, %v1189_v33  ;;  %v1208_v50 = vsel %vm1204_vm4, %v1192_v42, %v1207_v18  ;;  %vm1389_vm7 = vcmp.gt.s32.totalorder %v1388_v56, 0 }
 0x1ee   : > { %v829_v10 = vor.u32 %v828_v28, %v827_v29  ;;  %v832_v48 = vshll.u32 %v831_v46, 23  ;;  %v5300_v1 = vmul.u32.u64.low %v5232_v0, %v1217_v35  ;;  %v5301_v8 = vmul.u32.u64.high %v5232_v0, %v1217_v35, %v5300_v1 }
 0x1ef   : > { %v4259_v59 = vadd.s32 4294967294, %v1030_v13  ;;  %v5304_v58 = vmul.u32.u64.low %v5232_v0, %v1213_v63  ;;  %v5305_v19 = vmul.u32.u64.high %v5232_v0, %v1213_v63, %v5304_v58  ;;  %v1018_v33 = vadd.s32 %v5193_v32, %v5199_v31 }
 0x1f0   : > { %v833_v3 = vor.u32 4788187, %v832_v48  ;;  %v1049_v42 = vsel %vm964_vm3, %v1048_v26, %v1024_v27  ;;  %v1390_v60 = vsel %vm1389_vm7, %v1388_v56, 0  ;;  %v5312_v37 = vand.u32 3, %v847_v43 }
 0x1f1   : > { %vm4260_vm8 = vcmp.lt.s32.totalorder %v4259_v59, 0  ;;  %v1209_v13 = vsel %vm1203_vm1, %v1206_v47, %v1208_v50  ;;  %v1392_v45 = vand.u32 31, %v1390_v60  ;;  %v836_v18 = vcvt.s32.f32 %v829_v10 }
 0x1f2   : > { %v834_v20 = vand.u32 2147483647, %v833_v3  ;;  %v1033_v34 = vsel %vm4260_vm8, 0, %v4259_v59  ;;  %vm1227_vm9 = vc.u32 %v5301_v8, %v5304_v58  ;;  %v1051_v32 = vsel %vm5279_vm6, 0, %v1049_v42 }
 0x1f3   : > { %v1034_v29 = vsub.s32 32, %v1033_v34  ;;  %v1038_v36 = vsub.s32 4294967266, %v1033_v34  ;;  %v1228_v31 = vadd.s32 1, %v5305_v19  ;;  %v1225_v26 = vmul.u32 %v5232_v0, %v1209_v13 }
 0x1f4   : > { %v837_v27 = vmul.f32 %v836_v18, %v834_v20  ;;  %v5322_v63 = vshrl.u32 %v1390_v60, 5  ;;  %v1393_v49 = vsub.s32 32, %v1392_v45  ;;  %v1035_v4 = vshll.u32 %v5262_v6, %v1033_v34 }
 0x1f5   : > { %v1036_v28 = vshrl.u32 %v1018_v33, %v1034_v29  ;;  %v1039_v46 = vadd.s32 127, %v1038_v36  ;;  %v1229_v35 = vsel %vm1227_vm9, %v1228_v31, %v5305_v19  ;;  %v1395_v47 = vshll.u32 %v7890_v2, %v1392_v45 }
 0x1f6   : > { %v838_v56 = vxor.u32 2147483648, %v837_v27  ;;  %v1230_v43 = vadd.s32 %v1229_v35, %v1225_v26  ;;  %v1396_v50 = vshrl.u32 %v7886_v7, %v1393_v49  ;;  %v1398_v1 = vshll.u32 %v7886_v7, %v1392_v45 }
 0x1f7   : > { %v1037_v10 = vor.u32 %v1036_v28, %v1035_v4  ;;  %v1040_v48 = vshll.u32 %v1039_v46, 23  ;;  %v1399_v0 = vshrl.u32 %v7888_v9, %v1393_v49  ;;  %v1401_v3 = vshll.u32 %v7888_v9, %v1392_v45  ;;  %v5349_v28 = vpop.permute.xlu0 %725 }
 0x1f8   : > { %v839_v59 = vsel %vm756_vm14, %v838_v56, %v837_v27  ;;  %v1231_v6 = vadd.s32 536870912, %v1230_v43  ;;  %v1402_v19 = vshrl.u32 %v4838_v11, %v1393_v49  ;;  %v1397_v60 = vor.u32 %v1396_v50, %v1395_v47  ;;  %v5342_v27 = vpop.permute.xlu1 %720  ;;  %7908 = vst [vmem:[#allocation10_spill] sm:$0xff] %v5349_v28 }
 0x1f9   : > { %v842_v33 = vsel %vm5236_vm15, %v5097_v22, %v839_v59  ;;  %v1041_v42 = vor.u32 4788187, %v1040_v48  ;;  %v1404_v13 = vshll.u32 %v4838_v11, %v1392_v45  ;;  %v1044_v20 = vcvt.s32.f32 %v1037_v10 }
 0x1fa   : > { %4597 = vcosq.f32 %v842_v33  ;;  %v5338_v18 = vshrl.u32 %v1231_v6, 30  ;;  %v1405_v34 = vshrl.u32 %v4839_v14, %v1393_v49  ;;  %v1400_v36 = vor.u32 %v1399_v0, %v1398_v1 }
 0x1fb   : > { %4599 = vsinq.f32 %v842_v33  ;;  %v1042_v29 = vand.u32 2147483647, %v1041_v42  ;;  %v1408_v31 = vshrl.u32 %v4840_v30, %v1393_v49  ;;  %v5347_v4 = vadd.f32 %v5342_v27, %v5207_v38 }
 0x1fc   : > { %v1233_v61 = vshll.u32 %v5338_v18, 30  ;;  %v1406_v26 = vor.u32 %v1405_v34, %v1404_v13  ;;  %v606_v46 = vrot.slane %v5212_v39, 1  ;;  %v1403_v56 = vor.u32 %v1402_v19, %v1401_v3 }
 0x1fd   : > { %v1045_v35 = vmul.f32 %v1044_v20, %v1042_v29  ;;  %v1407_v47 = vshll.u32 %v4839_v14, %v1392_v45  ;;  %v5355_v50 = vadd.f32 %v5349_v28, %v5226_v41  ;;  %v1055_v10 = vadd.s32 3, %v1051_v32 }
 0x1fe   : > { %v5357_v48 = vsub.s32 %v1230_v43, %v1233_v61  ;;  %vm1410_vm10 = vcmp.lt.s32.totalorder %v5322_v63, 1  ;;  %v7909_v38 = vor.u32 8388608, %v5222_v62  ;;  %vm850_vm11 = vcmp.eq.s32.totalorder %v5312_v37, 0 }
 0x1ff   : > { %v1046_v0 = vxor.u32 2147483648, %v1045_v35  ;;  %v1409_v59 = vor.u32 %v1408_v31, %v1407_v47  ;;  %vm1413_vm12 = vcmp.lt.s32.totalorder %v5322_v63, 4  ;;  %v1418_v41 = vsel %vm1410_vm10, %v1397_v60, %v1400_v36 }
 0x200   : > { %v5362_v1 = vshll.u32 %v7909_v38, 8  ;;  %vm849_vm13 = vcmp.lt.s32.totalorder %v5312_v37, 2  ;;  %v1236_v45 = vsub.s32 0, %v5357_v48  ;;  %v1394_v32 = vshrl.u32 %v7890_v2, %v1393_v49 }
 0x201   : > { %vm1412_vm14 = vcmp.lt.s32.totalorder %v5322_v63, 3  ;;  %v1419_v62 = vsel %vm1413_vm12, %v1406_v26, 920167782  ;;  %vm846_vm15 = vweird.f32 %v5097_v22  ;;  %v1047_v43 = vsel %vm964_vm3, %v1046_v0, %v1045_v35 }
 0x202   : > { %vm1172_vm0 = vcmp.lt.s32.totalorder %v5105_v25, 0  ;;  %vm1411_vm1 = vcmp.lt.s32.totalorder %v5322_v63, 2  ;;  %v1415_v6 = vsel %vm1413_vm12, %v1403_v56, 2102212464  ;;  %v1420_v49 = vsel %vm1412_vm14, %v1403_v56, %v1419_v62 }
 0x203   : > { %v1050_v3 = vsel %vm5279_vm6, %v5100_v23, %v1047_v43  ;;  %v4266_v19 = vmin.u32 %v1236_v45, %v5357_v48  ;;  %v1421_v33 = vsel %vm1411_vm1, %v1418_v41, %v1420_v49  ;;  %v1422_v42 = vsel %vm1410_vm10, %v1400_v36, %v1403_v56 }
 0x204   : > { %4601 = vcosq.f32 %v1050_v3  ;;  %v1423_v13 = vsel %vm1413_vm12, %v1409_v59, 1326507024  ;;  %v5395_v20 = vmul.u32.u64.low %v5362_v1, %v1421_v33  ;;  %v5396_v34 = vmul.u32.u64.high %v5362_v1, %v1421_v33, %v5395_v20  ;;  %v4598_v29 = vpop.eup %4597 }
 0x205   : > { %vm853_vm2 = vcmp.eq.s32.totalorder %v5312_v37, 2  ;;  %4603 = vsinq.f32 %v1050_v3  ;;  %v5400_v15 = vand.u32 3, %v1055_v10  ;;  %v7910_v31 = vand.u32 2147483647, %v5105_v25  ;;  %v4600_v56 = vpop.eup %4599 }
 0x206   : > { %v1238_v35 = vclz %v4266_v19  ;;  %v854_v47 = vxor.u32 2147483648, %v4598_v29  ;;  %v1414_v38 = vsel %vm1410_vm10, %v1394_v32, %v1397_v60  ;;  %v1416_v0 = vsel %vm1412_vm14, %v1400_v36, %v1415_v6 }
 0x207   : > { %vm5404_vm3 = vcmp.le.f32.partialorder %v7910_v31, 0.7853982  ;;  %v1424_v10 = vsel %vm1412_vm14, %v1406_v26, %v1423_v13  ;;  %v851_v59 = vxor.u32 2147483648, %v4600_v56  ;;  %v1256_v45 = vsub.s32 4, %v5338_v18 }
 0x208   : > { %v4267_v41 = vadd.s32 4294967294, %v1238_v35  ;;  %v1425_v62 = vsel %vm1411_vm1, %v1422_v42, %v1424_v10  ;;  %v855_v43 = vsel %vm853_vm2, %v854_v47, %v4600_v56  ;;  %v1226_v49 = vadd.s32 %v5304_v58, %v5301_v8 }
 0x209   : > { %v5424_v60 = vmul.u32.u64.low %v5362_v1, %v1425_v62  ;;  %v5425_v32 = vmul.u32.u64.high %v5362_v1, %v1425_v62, %v5424_v60  ;;  %v852_v36 = vsel %vm850_vm11, %v4598_v29, %v851_v59  ;;  %v1417_v26 = vsel %vm1411_vm1, %v1414_v38, %v1416_v0 }
 0x20a   : > { %vm4268_vm4 = vcmp.lt.s32.totalorder %v4267_v41, 0  ;;  %v1436_v6 = vadd.s32 1, %v5396_v34  ;;  %v856_v3 = vsel %vm849_vm13, %v852_v36, %v855_v43  ;;  %v1586_v33 = vand.u32 2147483647, %v5347_v4 }
 0x20b   : > { %v1241_v19 = vsel %vm4268_vm4, 0, %v4267_v41  ;;  %v1589_v8 = vand.u32 2139095040, %v5347_v4  ;;  %v857_v58 = vsel %vm846_vm15, nan, %v856_v3  ;;  %vm1054_vm5 = vweird.f32 %v5100_v23 }
 0x20c   : > { %v1242_v42 = vsub.s32 32, %v1241_v19  ;;  %v1246_v13 = vsub.s32 4294967266, %v1241_v19  ;;  %v1257_v63 = vsel %vm1172_vm0, %v1256_v45, %v5338_v18  ;;  %2418 = vst [vmem:[%s5442_s18] sm:$0xff] %v857_v58  ;;  %vm1057_vm6 = vcmp.lt.s32.totalorder %v5400_v15, 2 }
 0x20d   : > { %v1433_v37 = vmul.u32 %v5362_v1, %v1417_v26  ;;  %vm1435_vm7 = vc.u32 %v5425_v32, %v5395_v20  ;;  %v1590_v22 = vshrl.u32 %v1589_v8, 23  ;;  %v1243_v29 = vshll.u32 %v5357_v48, %v1241_v19 }
 0x20e   : > { %v1244_v31 = vshrl.u32 %v1226_v49, %v1242_v42  ;;  %v1247_v35 = vadd.s32 127, %v1246_v13  ;;  %v1437_v56 = vsel %vm1435_vm7, %v1436_v6, %v5396_v34  ;;  %v4602_v47 = vpop.eup %4601  ;;  %v1259_v18 = vsel %vm5404_vm3, 0, %v1257_v63 }
 0x20f   : > { %v1438_v38 = vadd.s32 %v1437_v56, %v1433_v37  ;;  %v4281_v0 = vadd.s32 4294967169, %v1590_v22  ;;  %v1593_v10 = vand.u32 8388607, %v1586_v33  ;;  %v4604_v1 = vpop.eup %4603  ;;  %vm1058_vm8 = vcmp.eq.s32.totalorder %v5400_v15, 0 }
 0x210   : > { %v1062_v59 = vxor.u32 2147483648, %v4602_v47  ;;  %v1245_v41 = vor.u32 %v1244_v31, %v1243_v29  ;;  %v1248_v45 = vshll.u32 %v1247_v35, 23  ;;  %v1059_v48 = vxor.u32 2147483648, %v4604_v1 }
 0x211   : > { %vm1061_vm9 = vcmp.eq.s32.totalorder %v5400_v15, 2  ;;  %v1439_v62 = vadd.s32 536870912, %v1438_v38  ;;  %v1596_v34 = vadd.s32 1, %v4281_v0  ;;  %v1263_v60 = vadd.s32 3, %v1259_v18 }
 0x212   : > { %v1063_v43 = vsel %vm1061_vm9, %v1062_v59, %v4604_v1  ;;  %v1249_v49 = vor.u32 4788187, %v1248_v45  ;;  %v1797_v36 = vand.u32 2139095040, %v5355_v50  ;;  %v1060_v26 = vsel %vm1058_vm8, %v4602_v47, %v1059_v48 }
 0x213   : > { %v1440_v6 = vshrl.u32 %v1439_v62, 30  ;;  %v1594_v3 = vor.u32 8388608, %v1593_v10  ;;  %vm1597_vm10 = vcmp.gt.s32.totalorder %v1596_v34, 0  ;;  %v1064_v19 = vsel %vm1057_vm6, %v1060_v26, %v1063_v43 }
 0x214   : > { %v1250_v8 = vand.u32 2147483647, %v1249_v49  ;;  %v1252_v58 = vcvt.s32.f32 %v1245_v41  ;;  %v1598_v42 = vsel %vm1597_vm10, %v1596_v34, 0  ;;  %v1065_v13 = vsel %vm1054_vm5, nan, %v1064_v19 }
 0x215   : > { %v1441_v63 = vshll.u32 %v1440_v6, 30  ;;  %v1794_v37 = vand.u32 2147483647, %v5355_v50  ;;  %v1798_v22 = vshrl.u32 %v1797_v36, 23  ;;  %2420 = vst [vmem:[%s5442_s18 + $0x10] sm:$0xff] %v1065_v13  ;;  %v1600_v31 = vand.u32 31, %v1598_v42 }
 0x216   : > { %v1253_v29 = vmul.f32 %v1252_v58, %v1250_v8  ;;  %v5467_v35 = vadd.f32 %v606_v46, %v5212_v39  ;;  %v5469_v15 = vand.u32 3, %v1263_v60  ;;  %vm1380_vm11 = vcmp.lt.s32.totalorder %v5123_v44, 0 }
 0x217   : > { %v1434_v23 = vadd.s32 %v5395_v20, %v5425_v32  ;;  %v5474_v56 = vsub.s32 %v1438_v38, %v1441_v63  ;;  %v1464_v18 = vsub.s32 4, %v1440_v6  ;;  %v5476_v0 = vshrl.u32 %v1598_v42, 5 }
 0x218   : > { %v1254_v47 = vxor.u32 2147483648, %v1253_v29  ;;  %v1601_v10 = vsub.s32 32, %v1600_v31  ;;  %v5479_v59 = vshll.u32 %v1594_v3, 8  ;;  %v4289_v39 = vadd.s32 4294967169, %v1798_v22 }
 0x219   : > { %v1444_v1 = vsub.s32 0, %v5474_v56  ;;  %v5483_v46 = vand.u32 8388607, %v1794_v37  ;;  %v1603_v20 = vshll.u32 %v7890_v2, %v1600_v31  ;;  %v1606_v62 = vshll.u32 %v7886_v7, %v1600_v31 }
 0x21a   : > { %v1255_v41 = vsel %vm1172_vm0, %v1254_v47, %v1253_v29  ;;  %v1604_v32 = vshrl.u32 %v7886_v7, %v1601_v10  ;;  %v1607_v38 = vshrl.u32 %v7888_v9, %v1601_v10  ;;  %v1610_v34 = vshrl.u32 %v4838_v11, %v1601_v10 }
 0x21b   : > { %v1258_v45 = vsel %vm5404_vm3, %v5105_v25, %v1255_v41  ;;  %v4274_v48 = vmin.u32 %v1444_v1, %v5474_v56  ;;  %v5498_v43 = vsel %vm1380_vm11, %v1464_v18, %v1440_v6  ;;  %v1609_v49 = vshll.u32 %v7888_v9, %v1600_v31 }
 0x21c   : > { %4605 = vcosq.f32 %v1258_v45  ;;  %vm1618_vm12 = vcmp.lt.s32.totalorder %v5476_v0, 1  ;;  %v1605_v36 = vor.u32 %v1604_v32, %v1603_v20  ;;  %v1608_v61 = vor.u32 %v1607_v38, %v1606_v62 }
 0x21d   : > { %4607 = vsinq.f32 %v1258_v45  ;;  %v1446_v60 = vclz %v4274_v48  ;;  %v1602_v26 = vshrl.u32 %v7890_v2, %v1601_v10  ;;  %v1611_v3 = vor.u32 %v1610_v34, %v1609_v49 }
 0x21e   : > { %v1612_v19 = vshll.u32 %v4838_v11, %v1600_v31  ;;  %v1613_v8 = vshrl.u32 %v4839_v14, %v1601_v10  ;;  %v7913_v58 = vand.u32 2147483647, %v5123_v44  ;;  %v1615_v13 = vshll.u32 %v4839_v14, %v1600_v31 }
 0x21f   : > { %v4275_v42 = vadd.s32 4294967294, %v1446_v60  ;;  %v1616_v63 = vshrl.u32 %v4840_v30, %v1601_v10  ;;  %vm1621_vm14 = vcmp.lt.s32.totalorder %v5476_v0, 4  ;;  %vm1269_vm15 = vcmp.eq.s32.totalorder %v5469_v15, 2 }
 0x220   : > { %vm5507_vm13 = vcmp.le.f32.partialorder %v7913_v58, 0.7853982  ;;  %v1614_v22 = vor.u32 %v1613_v8, %v1612_v19  ;;  %vm1619_vm0 = vcmp.lt.s32.totalorder %v5476_v0, 2  ;;  %vm1620_vm1 = vcmp.lt.s32.totalorder %v5476_v0, 3 }
 0x221   : > { %v1623_v29 = vsel %vm1621_vm14, %v1611_v3, 2102212464  ;;  %vm1266_vm2 = vcmp.eq.s32.totalorder %v5469_v15, 0  ;;  %vm4276_vm3 = vcmp.lt.s32.totalorder %v4275_v42, 0  ;;  %v1617_v47 = vor.u32 %v1616_v63, %v1615_v13 }
 0x222   : > { %v1622_v31 = vsel %vm1618_vm12, %v1602_v26, %v1605_v36  ;;  %v1626_v18 = vsel %vm1618_vm12, %v1605_v36, %v1608_v61  ;;  %vm1265_vm4 = vcmp.lt.s32.totalorder %v5469_v15, 2  ;;  %v1449_v10 = vsel %vm4276_vm3, 0, %v4275_v42 }
 0x223   : > { %v1624_v1 = vsel %vm1620_vm1, %v1608_v61, %v1623_v29  ;;  %v1627_v41 = vsel %vm1621_vm14, %v1614_v22, 920167782  ;;  %v1804_v20 = vadd.s32 1, %v4289_v39  ;;  %vm1262_vm5 = vweird.f32 %v5105_v25 }
 0x224   : > { %v1450_v32 = vsub.s32 32, %v1449_v10  ;;  %v1454_v38 = vsub.s32 4294967266, %v1449_v10  ;;  %v1628_v45 = vsel %vm1620_vm1, %v1611_v3, %v1627_v41  ;;  %v1630_v48 = vsel %vm1618_vm12, %v1608_v61, %v1611_v3 }
 0x225   : > { %v1451_v62 = vshll.u32 %v5474_v56, %v1449_v10  ;;  %v1629_v34 = vsel %vm1619_vm0, %v1626_v18, %v1628_v45  ;;  %v1631_v49 = vsel %vm1621_vm14, %v1617_v47, 1326507024  ;;  %vm1805_vm6 = vcmp.gt.s32.totalorder %v1804_v20, 0 }
 0x226   : > { %v1452_v39 = vshrl.u32 %v1434_v23, %v1450_v32  ;;  %v1455_v60 = vadd.s32 127, %v1454_v38  ;;  %v1632_v36 = vsel %vm1620_vm1, %v1614_v22, %v1631_v49  ;;  %v1806_v26 = vsel %vm1805_vm6, %v1804_v20, 0  ;;  %v4606_v19 = vpop.eup %4605 }
 0x227   : > { %v1625_v8 = vsel %vm1619_vm0, %v1622_v31, %v1624_v1  ;;  %v1633_v56 = vsel %vm1619_vm0, %v1630_v48, %v1632_v36  ;;  %v5546_v61 = vmul.u32.u64.low %v5479_v59, %v1629_v34  ;;  %v5547_v3 = vmul.u32.u64.high %v5479_v59, %v1629_v34, %v5546_v61  ;;  %v4608_v58 = vpop.eup %4607 }
 0x228   : > { %v1270_v42 = vxor.u32 2147483648, %v4606_v19  ;;  %v1453_v23 = vor.u32 %v1452_v39, %v1451_v62  ;;  %v1456_v13 = vshll.u32 %v1455_v60, 23  ;;  %v1808_v63 = vand.u32 31, %v1806_v26 }
 0x229   : > { %v1267_v29 = vxor.u32 2147483648, %v4608_v58  ;;  %v1467_v22 = vsel %vm5507_vm13, 0, %v5498_v43  ;;  %v5554_v47 = vmul.u32.u64.low %v5479_v59, %v1633_v56  ;;  %v5555_v31 = vmul.u32.u64.high %v5479_v59, %v1633_v56, %v5554_v47 }
 0x22a   : > { %v1271_v0 = vsel %vm1269_vm15, %v1270_v42, %v4608_v58  ;;  %v1457_v18 = vor.u32 4788187, %v1456_v13  ;;  %v1641_v10 = vmul.u32 %v5479_v59, %v1625_v8  ;;  %v1809_v1 = vsub.s32 32, %v1808_v63 }
 0x22b   : > { %v1268_v41 = vsel %vm1266_vm2, %v4606_v19, %v1267_v29  ;;  %v1460_v20 = vcvt.s32.f32 %v1453_v23  ;;  %v1644_v32 = vadd.s32 1, %v5547_v3  ;;  %v1807_v38 = vshrl.u32 %v1806_v26, 5 }
 0x22c   : > { %v1272_v43 = vsel %vm1265_vm4, %v1268_v41, %v1271_v0  ;;  %v1458_v45 = vand.u32 2147483647, %v1457_v18  ;;  %v1811_v48 = vshll.u32 %v7890_v2, %v1808_v63  ;;  %v1812_v62 = vshrl.u32 %v7886_v7, %v1809_v1 }
 0x22d   : > { %v1273_v34 = vsel %vm1262_vm5, nan, %v1272_v43  ;;  %vm1643_vm7 = vc.u32 %v5555_v31, %v5546_v61  ;;  %v1814_v59 = vshll.u32 %v7886_v7, %v1808_v63  ;;  %v1815_v49 = vshrl.u32 %v7888_v9, %v1809_v1 }
 0x22e   : > { %2422 = vst [vmem:[%s5442_s18 + $0x20] sm:$0xff] %v1273_v34  ;;  %v1461_v39 = vmul.f32 %v1460_v20, %v1458_v45  ;;  %v1645_v15 = vsel %vm1643_vm7, %v1644_v32, %v5547_v3  ;;  %v1813_v60 = vor.u32 %v1812_v62, %v1811_v48  ;;  %v1817_v36 = vshll.u32 %v7888_v9, %v1808_v63 }
 0x22f   : > { %v1646_v26 = vadd.s32 %v1645_v15, %v1641_v10  ;;  %v1816_v19 = vor.u32 %v1815_v49, %v1814_v59  ;;  %v1818_v8 = vshrl.u32 %v4838_v11, %v1809_v1  ;;  %v1820_v25 = vshll.u32 %v4838_v11, %v1808_v63 }
 0x230   : > { %v1462_v56 = vxor.u32 2147483648, %v1461_v39  ;;  %v1821_v58 = vshrl.u32 %v4839_v14, %v1809_v1  ;;  %v1823_v42 = vshll.u32 %v4839_v14, %v1808_v63  ;;  %v1824_v23 = vshrl.u32 %v4840_v30, %v1809_v1 }
 0x231   : > { %v1471_v13 = vadd.s32 3, %v1467_v22  ;;  %v1647_v29 = vadd.s32 536870912, %v1646_v26  ;;  %v1802_v3 = vor.u32 8388608, %v5483_v46  ;;  %v1819_v47 = vor.u32 %v1818_v8, %v1817_v36 }
 0x232   : > { %v1463_v0 = vsel %vm1380_vm11, %v1462_v56, %v1461_v39  ;;  %v1822_v18 = vor.u32 %v1821_v58, %v1820_v25  ;;  %v1825_v10 = vor.u32 %v1824_v23, %v1823_v42  ;;  %vm1826_vm8 = vcmp.lt.s32.totalorder %v1807_v38, 1 }
 0x233   : > { %v1466_v41 = vsel %vm5507_vm13, %v5123_v44, %v1463_v0  ;;  %v1648_v20 = vshrl.u32 %v1647_v29, 30  ;;  %v1810_v63 = vshrl.u32 %v7890_v2, %v1809_v1  ;;  %vm1829_vm9 = vcmp.lt.s32.totalorder %v1807_v38, 4 }
 0x234   : > { %4609 = vcosq.f32 %v1466_v41  ;;  %vm1827_vm10 = vcmp.lt.s32.totalorder %v1807_v38, 2  ;;  %v1834_v22 = vsel %vm1826_vm8, %v1813_v60, %v1816_v19  ;;  %v1835_v46 = vsel %vm1829_vm9, %v1822_v18, 920167782 }
 0x235   : > { %4611 = vsinq.f32 %v1466_v41  ;;  %v1649_v32 = vshll.u32 %v1648_v20, 30  ;;  %vm1828_vm12 = vcmp.lt.s32.totalorder %v1807_v38, 3  ;;  %v1831_v43 = vsel %vm1829_vm9, %v1819_v47, 2102212464 }
 0x236   : > { %v1836_v45 = vsel %vm1828_vm12, %v1819_v47, %v1835_v46  ;;  %v1838_v48 = vsel %vm1826_vm8, %v1816_v19, %v1819_v47  ;;  %v1839_v62 = vsel %vm1829_vm9, %v1825_v10, 1326507024  ;;  %v1842_v34 = vshll.u32 %v1802_v3, 8 }
 0x237   : > { %v1650_v6 = vsub.s32 %v1646_v26, %v1649_v32  ;;  %v1830_v59 = vsel %vm1826_vm8, %v1810_v63, %v1813_v60  ;;  %v1837_v1 = vsel %vm1827_vm10, %v1834_v22, %v1836_v45  ;;  %v1840_v49 = vsel %vm1828_vm12, %v1822_v18, %v1839_v62 }
 0x238   : > { %v1832_v39 = vsel %vm1828_vm12, %v1816_v19, %v1831_v43  ;;  %v1841_v15 = vsel %vm1827_vm10, %v1838_v48, %v1840_v49  ;;  %v5593_v36 = vmul.u32.u64.low %v1842_v34, %v1837_v1  ;;  %v5594_v8 = vmul.u32.u64.high %v1842_v34, %v1837_v1, %v5593_v36 }
 0x239   : > { %v1652_v25 = vsub.s32 0, %v1650_v6  ;;  %v5597_v56 = vmul.u32.u64.low %v1842_v34, %v1841_v15  ;;  %v5598_v58 = vmul.u32.u64.high %v1842_v34, %v1841_v15, %v5597_v56  ;;  %v683_v42 = vmul.f32 %v5060_v53, %v5467_v35 }
 0x23a   : > { %v1472_v26 = vand.u32 3, %v1471_v13  ;;  %v1833_v60 = vsel %vm1827_vm10, %v1830_v59, %v1832_v39  ;;  %v1852_v29 = vadd.s32 1, %v5594_v8  ;;  %vm1470_vm11 = vweird.f32 %v5123_v44 }
 0x23b   : > { %v4282_v23 = vmin.u32 %v1652_v25, %v1650_v6  ;;  %v685_v3 = vmul.f32 %v5064_v55, %v5467_v35  ;;  %v5608_v47 = vadd.f32 %v5084_v16, %v683_v42  ;;  %vm1588_vm14 = vcmp.lt.s32.totalorder %v5347_v4, 0 }
 0x23c   : > { %vm1473_vm13 = vcmp.lt.s32.totalorder %v1472_v26, 2  ;;  %v1849_v18 = vmul.u32 %v1842_v34, %v1833_v60  ;;  %vm1851_vm15 = vc.u32 %v5598_v58, %v5593_v36  ;;  %v1672_v41 = vsub.s32 4, %v1648_v20 }
 0x23d   : > { %v1654_v19 = vclz %v4282_v23  ;;  %v1853_v63 = vsel %vm1851_vm15, %v1852_v29, %v5594_v8  ;;  %vm1474_vm0 = vcmp.eq.s32.totalorder %v1472_v26, 0  ;;  %vm1477_vm1 = vcmp.eq.s32.totalorder %v1472_v26, 2 }
 0x23e   : > { %v4610_v0 = vpop.eup %4609  ;;  %v1854_v46 = vadd.s32 %v1853_v63, %v1849_v18  ;;  %v1642_v43 = vadd.s32 %v5546_v61, %v5555_v31  ;;  %v858_v45 = vand.u32 2147483647, %v5608_v47  ;;  %v861_v59 = vand.u32 2139095040, %v5608_v47 }
 0x23f   : > { %v4612_v38 = vpop.eup %4611  ;;  %v1478_v13 = vxor.u32 2147483648, %v4610_v0  ;;  %v4283_v10 = vadd.s32 4294967294, %v1654_v19  ;;  %v1673_v15 = vsel %vm1588_vm14, %v1672_v41, %v1648_v20  ;;  %vm5626_vm3 = vcmp.le.f32.partialorder %v1586_v33, 0.7853982 }
 0x240   : > { %v1475_v22 = vxor.u32 2147483648, %v4612_v38  ;;  %v1855_v34 = vadd.s32 536870912, %v1854_v46  ;;  %v862_v61 = vshrl.u32 %v861_v59, 23  ;;  %v1675_v23 = vsel %vm5626_vm3, 0, %v1673_v15 }
 0x241   : > { %v1479_v32 = vsel %vm1477_vm1, %v1478_v13, %v4612_v38  ;;  %vm4284_vm2 = vcmp.lt.s32.totalorder %v4283_v10, 0  ;;  %v865_v44 = vand.u32 8388607, %v858_v45  ;;  %v687_v13 = vmul.f32 %v5056_v51, %v5467_v35 }
 0x242   : > { %v1476_v48 = vsel %vm1474_vm0, %v4610_v0, %v1475_v22  ;;  %v1657_v62 = vsel %vm4284_vm2, 0, %v4283_v10  ;;  %v1856_v25 = vshrl.u32 %v1855_v34, 30  ;;  %v4253_v20 = vadd.s32 4294967169, %v862_v61 }
 0x243   : > { %v1480_v1 = vsel %vm1473_vm13, %v1476_v48, %v1479_v32  ;;  %v1658_v49 = vsub.s32 32, %v1657_v62  ;;  %v1662_v39 = vsub.s32 4294967266, %v1657_v62  ;;  %v1659_v56 = vshll.u32 %v1650_v6, %v1657_v62 }
 0x244   : > { %v1481_v8 = vsel %vm1470_vm11, nan, %v1480_v1  ;;  %v1857_v60 = vshll.u32 %v1856_v25, 30  ;;  %v5635_v0 = vadd.f32 %v5094_v21, %v685_v3  ;;  %v868_v18 = vadd.s32 1, %v4253_v20 }
 0x245   : > { %2424 = vst [vmem:[%s5442_s18 + $0x30] sm:$0xff] %v1481_v8  ;;  %v1660_v42 = vshrl.u32 %v1642_v43, %v1658_v49  ;;  %v1663_v26 = vadd.s32 127, %v1662_v39  ;;  %v1679_v6 = vadd.s32 3, %v1675_v23  ;;  %v1880_v41 = vsub.s32 4, %v1856_v25 }
 0x246   : > { %v5637_v33 = vsub.s32 %v1854_v46, %v1857_v60  ;;  %v866_v63 = vor.u32 8388608, %v865_v44  ;;  %vm869_vm4 = vcmp.gt.s32.totalorder %v868_v18, 0  ;;  %v1069_v48 = vand.u32 2139095040, %v5635_v0 }
 0x247   : > { %v1661_v29 = vor.u32 %v1660_v42, %v1659_v56  ;;  %v1664_v19 = vshll.u32 %v1663_v26, 23  ;;  %v870_v43 = vsel %vm869_vm4, %v868_v18, 0  ;;  %vm1796_vm5 = vcmp.lt.s32.totalorder %v5355_v50, 0 }
 0x248   : > { %v1860_v10 = vsub.s32 0, %v5637_v33  ;;  %v5647_v46 = vmul.f32 %v5066_v57, %v5467_v35  ;;  %v872_v62 = vand.u32 31, %v870_v43  ;;  %v5649_v59 = vand.u32 3, %v1679_v6 }
 0x249   : > { %v1665_v38 = vor.u32 4788187, %v1664_v19  ;;  %v1668_v32 = vcvt.s32.f32 %v1661_v29  ;;  %v1850_v1 = vadd.s32 %v5593_v36, %v5598_v58  ;;  %v5654_v49 = vadd.f32 %v5102_v24, %v687_v13 }
 0x24a   : > { %v4290_v3 = vmin.u32 %v1860_v10, %v5637_v33  ;;  %v5658_v15 = vsel %vm1796_vm5, %v1880_v41, %v1856_v25  ;;  %v5660_v8 = vshll.u32 %v866_v63, 8  ;;  %v1066_v61 = vand.u32 2147483647, %v5635_v0 }
 0x24b   : > { %v1666_v22 = vand.u32 2147483647, %v1665_v38  ;;  %v5663_v42 = vshrl.u32 %v870_v43, 5  ;;  %v873_v26 = vsub.s32 32, %v872_v62  ;;  %v1070_v23 = vshrl.u32 %v1069_v48, 23 }
 0x24c   : > { %v1862_v39 = vclz %v4290_v3  ;;  %v875_v36 = vshll.u32 %v7890_v2, %v872_v62  ;;  %v878_v58 = vshll.u32 %v7886_v7, %v872_v62  ;;  %v881_v20 = vshll.u32 %v7888_v9, %v872_v62 }
 0x24d   : > { %v1669_v34 = vmul.f32 %v1668_v32, %v1666_v22  ;;  %vm5672_vm6 = vcmp.le.f32.partialorder %v1794_v37, 0.7853982  ;;  %v876_v29 = vshrl.u32 %v7886_v7, %v873_v26  ;;  %v879_v19 = vshrl.u32 %v7888_v9, %v873_v26 }
 0x24e   : > { %v4291_v60 = vadd.s32 4294967294, %v1862_v39  ;;  %v884_v18 = vshll.u32 %v4838_v11, %v872_v62  ;;  %v882_v6 = vshrl.u32 %v4838_v11, %v873_v26  ;;  %v885_v13 = vshrl.u32 %v4839_v14, %v873_v26 }
 0x24f   : > { %v1670_v56 = vxor.u32 2147483648, %v1669_v34  ;;  %v877_v10 = vor.u32 %v876_v29, %v875_v36  ;;  %v880_v41 = vor.u32 %v879_v19, %v878_v58  ;;  %v887_v32 = vshll.u32 %v4839_v14, %v872_v62 }
 0x250   : > { %vm4292_vm7 = vcmp.lt.s32.totalorder %v4291_v60, 0  ;;  %v874_v43 = vshrl.u32 %v7890_v2, %v873_v26  ;;  %v883_v48 = vor.u32 %v882_v6, %v881_v20  ;;  %v886_v3 = vor.u32 %v885_v13, %v884_v18 }
 0x251   : > { %v1671_v25 = vsel %vm1588_vm14, %v1670_v56, %v1669_v34  ;;  %v1865_v37 = vsel %vm4292_vm7, 0, %v4291_v60  ;;  %v888_v31 = vshrl.u32 %v4840_v30, %v873_v26  ;;  %vm890_vm8 = vcmp.lt.s32.totalorder %v5663_v42, 1 }
 0x252   : > { %v1674_v38 = vsel %vm5626_vm3, %v5347_v4, %v1671_v25  ;;  %v1866_v63 = vsub.s32 32, %v1865_v37  ;;  %v1870_v22 = vsub.s32 4294967266, %v1865_v37  ;;  %v1867_v34 = vshll.u32 %v5637_v33, %v1865_v37 }
 0x253   : > { %4613 = vcosq.f32 %v1674_v38  ;;  %v889_v60 = vor.u32 %v888_v31, %v887_v32  ;;  %vm892_vm9 = vcmp.lt.s32.totalorder %v5663_v42, 3  ;;  %vm893_vm10 = vcmp.lt.s32.totalorder %v5663_v42, 4 }
 0x254   : > { %4615 = vsinq.f32 %v1674_v38  ;;  %v1868_v39 = vshrl.u32 %v1850_v1, %v1866_v63  ;;  %v1871_v56 = vadd.s32 127, %v1870_v22  ;;  %v898_v36 = vsel %vm890_vm8, %v877_v10, %v880_v41 }
 0x255   : > { %v895_v25 = vsel %vm893_vm10, %v883_v48, 2102212464  ;;  %v899_v29 = vsel %vm893_vm10, %v886_v3, 920167782  ;;  %vm891_vm12 = vcmp.lt.s32.totalorder %v5663_v42, 2  ;;  %v902_v33 = vsel %vm890_vm8, %v880_v41, %v883_v48 }
 0x256   : > { %v1869_v58 = vor.u32 %v1868_v39, %v1867_v34  ;;  %v1872_v62 = vshll.u32 %v1871_v56, 23  ;;  %v900_v26 = vsel %vm892_vm9, %v883_v48, %v899_v29  ;;  %v903_v1 = vsel %vm893_vm10, %v889_v60, 1326507024 }
 0x257   : > { %v1883_v19 = vsel %vm5672_vm6, 0, %v5658_v15  ;;  %v894_v18 = vsel %vm890_vm8, %v874_v43, %v877_v10  ;;  %v901_v38 = vsel %vm891_vm12, %v898_v36, %v900_v26  ;;  %v896_v6 = vsel %vm892_vm9, %v880_v41, %v895_v25 }
 0x258   : > { %v1873_v20 = vor.u32 4788187, %v1872_v62  ;;  %v904_v13 = vsel %vm892_vm9, %v886_v3, %v903_v1  ;;  %v5704_v37 = vmul.u32.u64.low %v5660_v8, %v901_v38  ;;  %v5705_v63 = vmul.u32.u64.high %v5660_v8, %v901_v38, %v5704_v37 }
 0x259   : > { %v1876_v32 = vcvt.s32.f32 %v1869_v58  ;;  %v905_v15 = vsel %vm891_vm12, %v902_v33, %v904_v13  ;;  %v4261_v10 = vadd.s32 4294967169, %v1070_v23  ;;  %vm1681_vm11 = vcmp.lt.s32.totalorder %v5649_v59, 2 }
 0x25a   : > { %v1874_v22 = vand.u32 2147483647, %v1873_v20  ;;  %vm1682_vm13 = vcmp.eq.s32.totalorder %v5649_v59, 0  ;;  %v5713_v41 = vmul.u32.u64.low %v5660_v8, %v905_v15  ;;  %v5714_v48 = vmul.u32.u64.high %v5660_v8, %v905_v15, %v5713_v41 }
 0x25b   : > { %v897_v39 = vsel %vm891_vm12, %v894_v18, %v896_v6  ;;  %v1076_v56 = vadd.s32 1, %v4261_v10  ;;  %vm1685_vm14 = vcmp.eq.s32.totalorder %v5649_v59, 2  ;;  %v1887_v23 = vadd.s32 3, %v1883_v19 }
 0x25c   : > { %v1877_v34 = vmul.f32 %v1876_v32, %v1874_v22  ;;  %v916_v36 = vadd.s32 1, %v5705_v63  ;;  %v1073_v25 = vand.u32 8388607, %v1066_v61  ;;  %v913_v42 = vmul.u32 %v5660_v8, %v897_v39 }
 0x25d   : > { %v4614_v43 = vpop.eup %4613  ;;  %vm1077_vm15 = vcmp.gt.s32.totalorder %v1076_v56, 0  ;;  %vm915_vm0 = vc.u32 %v5714_v48, %v5704_v37  ;;  %vm1678_vm1 = vweird.f32 %v5347_v4  ;;  %v5737_v6 = vand.u32 3, %v1887_v23 }
 0x25e   : > { %v4616_v3 = vpop.eup %4615  ;;  %v1686_v31 = vxor.u32 2147483648, %v4614_v43  ;;  %v1878_v62 = vxor.u32 2147483648, %v1877_v34  ;;  %v1078_v26 = vsel %vm1077_vm15, %v1076_v56, 0  ;;  %v917_v20 = vsel %vm915_vm0, %v916_v36, %v5705_v63 }
 0x25f   : > { %v1683_v60 = vxor.u32 2147483648, %v4616_v3  ;;  %v918_v8 = vadd.s32 %v917_v20, %v913_v42  ;;  %v1080_v38 = vand.u32 31, %v1078_v26  ;;  %v1074_v4 = vor.u32 8388608, %v1073_v25 }
 0x260   : > { %v1687_v58 = vsel %vm1685_vm14, %v1686_v31, %v4616_v3  ;;  %v1879_v1 = vsel %vm1796_vm5, %v1878_v62, %v1877_v34  ;;  %v7880_v59 = vand.u32 2147483647, %v5654_v49  ;;  %v1277_v32 = vand.u32 2139095040, %v5654_v49 }
 0x261   : > { %v1684_v29 = vsel %vm1682_vm13, %v4614_v43, %v1683_v60  ;;  %v1882_v18 = vsel %vm5672_vm6, %v5355_v50, %v1879_v1  ;;  %v919_v13 = vadd.s32 536870912, %v918_v8  ;;  %v1081_v22 = vsub.s32 32, %v1080_v38 }
 0x262   : > { %v1688_v33 = vsel %vm1681_vm11, %v1684_v29, %v1687_v58  ;;  %4617 = vcosq.f32 %v1882_v18  ;;  %v1079_v63 = vshrl.u32 %v1078_v26, 5  ;;  %v1083_v15 = vshll.u32 %v7890_v2, %v1080_v38 }
 0x263   : > { %v1689_v19 = vsel %vm1678_vm1, nan, %v1688_v33  ;;  %4619 = vsinq.f32 %v1882_v18  ;;  %v1086_v44 = vshll.u32 %v7886_v7, %v1080_v38  ;;  %v1089_v10 = vshll.u32 %v7888_v9, %v1080_v38 }
 0x264   : > { %2426 = vst [vmem:[%s5442_s18 + $0x40] sm:$0xff] %v1689_v19  ;;  %v5744_v43 = vshrl.u32 %v919_v13, 30  ;;  %v1084_v41 = vshrl.u32 %v7886_v7, %v1081_v22  ;;  %v1087_v3 = vshrl.u32 %v7888_v9, %v1081_v22  ;;  %v1092_v31 = vshll.u32 %v4838_v11, %v1080_v38 }
 0x265   : > { %vm1893_vm2 = vcmp.eq.s32.totalorder %v5737_v6, 2  ;;  %v1090_v34 = vshrl.u32 %v4838_v11, %v1081_v22  ;;  %v1093_v39 = vshrl.u32 %v4839_v14, %v1081_v22  ;;  %v1095_v56 = vshll.u32 %v4839_v14, %v1080_v38 }
 0x266   : > { %v1096_v60 = vshrl.u32 %v4840_v30, %v1081_v22  ;;  %v921_v23 = vshll.u32 %v5744_v43, 30  ;;  %v1085_v36 = vor.u32 %v1084_v41, %v1083_v15  ;;  %v1088_v58 = vor.u32 %v1087_v3, %v1086_v44 }
 0x267   : > { %v1278_v62 = vshrl.u32 %v1277_v32, 23  ;;  %vm1889_vm3 = vcmp.lt.s32.totalorder %v5737_v6, 2  ;;  %v1091_v25 = vor.u32 %v1090_v34, %v1089_v10  ;;  %v1094_v29 = vor.u32 %v1093_v39, %v1092_v31 }
 0x268   : > { %v1097_v42 = vor.u32 %v1096_v60, %v1095_v56  ;;  %vm1098_vm4 = vcmp.lt.s32.totalorder %v1079_v63, 1  ;;  %vm1886_vm5 = vweird.f32 %v5355_v50  ;;  %v5757_v26 = vsub.s32 %v918_v8, %v921_v23 }
 0x269   : > { %vm1101_vm6 = vcmp.lt.s32.totalorder %v1079_v63, 4  ;;  %v1106_v33 = vsel %vm1098_vm4, %v1085_v36, %v1088_v58  ;;  %v1114_v1 = vshll.u32 %v1074_v4, 8  ;;  %v1082_v20 = vshrl.u32 %v7890_v2, %v1081_v22 }
 0x26a   : > { %vm1100_vm7 = vcmp.lt.s32.totalorder %v1079_v63, 3  ;;  %v1103_v19 = vsel %vm1101_vm6, %v1091_v25, 2102212464  ;;  %v1107_v18 = vsel %vm1101_vm6, %v1094_v29, 920167782  ;;  %v924_v38 = vsub.s32 0, %v5757_v26 }
 0x26b   : > { %vm1099_vm8 = vcmp.lt.s32.totalorder %v1079_v63, 2  ;;  %v1108_v13 = vsel %vm1100_vm7, %v1091_v25, %v1107_v18  ;;  %v1110_v32 = vsel %vm1098_vm4, %v1088_v58, %v1091_v25  ;;  %v1102_v44 = vsel %vm1098_vm4, %v1082_v20, %v1085_v36 }
 0x26c   : > { %v4618_v15 = vpop.eup %4617  ;;  %v1109_v10 = vsel %vm1099_vm8, %v1106_v33, %v1108_v13  ;;  %v1111_v8 = vsel %vm1101_vm6, %v1097_v42, 1326507024  ;;  %v4269_v41 = vadd.s32 4294967169, %v1278_v62  ;;  %v4254_v4 = vmin.u32 %v924_v38, %v5757_v26 }
 0x26d   : > { %v4620_v3 = vpop.eup %4619  ;;  %v1894_v31 = vxor.u32 2147483648, %v4618_v15  ;;  %v1104_v22 = vsel %vm1100_vm7, %v1088_v58, %v1103_v19  ;;  %v1112_v34 = vsel %vm1100_vm7, %v1094_v29, %v1111_v8  ;;  %vm1890_vm9 = vcmp.eq.s32.totalorder %v5737_v6, 0 }
 0x26e   : > { %v1891_v39 = vxor.u32 2147483648, %v4620_v3  ;;  %v1113_v56 = vsel %vm1099_vm8, %v1110_v32, %v1112_v34  ;;  %v5767_v60 = vmul.u32.u64.low %v1114_v1, %v1109_v10  ;;  %v5768_v23 = vmul.u32.u64.high %v1114_v1, %v1109_v10, %v5767_v60 }
 0x26f   : > { %v1895_v36 = vsel %vm1893_vm2, %v1894_v31, %v4620_v3  ;;  %v926_v62 = vclz %v4254_v4  ;;  %v944_v25 = vsub.s32 4, %v5744_v43  ;;  %v1281_v29 = vand.u32 8388607, %v7880_v59 }
 0x270   : > { %v1892_v42 = vsel %vm1890_vm9, %v4618_v15, %v1891_v39  ;;  %v5775_v58 = vmul.u32.u64.low %v1114_v1, %v1113_v56  ;;  %v5776_v33 = vmul.u32.u64.high %v1114_v1, %v1113_v56, %v5775_v58  ;;  %v1105_v18 = vsel %vm1099_vm8, %v1102_v44, %v1104_v22 }
 0x271   : > { %v1896_v20 = vsel %vm1889_vm3, %v1892_v42, %v1895_v36  ;;  %v4255_v19 = vadd.s32 4294967294, %v926_v62  ;;  %v1284_v38 = vadd.s32 1, %v4269_v41  ;;  %vm5787_vm10 = vcmp.le.f32.partialorder %v858_v45, 0.7853982 }
 0x272   : > { %v1897_v13 = vsel %vm1886_vm5, nan, %v1896_v20  ;;  %vm860_vm12 = vcmp.lt.s32.totalorder %v5608_v47, 0  ;;  %v1124_v15 = vadd.s32 1, %v5768_v23  ;;  %v914_v6 = vadd.s32 %v5704_v37, %v5714_v48 }
 0x273   : > { %2428 = vst [vmem:[%s5442_s18 + $0x50] sm:$0xff] %v1897_v13  ;;  %vm4256_vm11 = vcmp.lt.s32.totalorder %v4255_v19, 0  ;;  %v945_v50 = vsel %vm860_vm12, %v944_v25, %v5744_v43  ;;  %vm1285_vm13 = vcmp.gt.s32.totalorder %v1284_v38, 0  ;;  %v1121_v44 = vmul.u32 %v1114_v1, %v1105_v18 }
 0x274   : > { %v929_v63 = vsel %vm4256_vm11, 0, %v4255_v19  ;;  %vm1123_vm14 = vc.u32 %v5776_v33, %v5767_v60  ;;  %v1286_v45 = vsel %vm1285_vm13, %v1284_v38, 0  ;;  %v1282_v3 = vor.u32 8388608, %v1281_v29 }
 0x275   : > { %v930_v10 = vsub.s32 32, %v929_v63  ;;  %v934_v8 = vsub.s32 4294967266, %v929_v63  ;;  %v1125_v41 = vsel %vm1123_vm14, %v1124_v15, %v5768_v23  ;;  %v5804_v37 = vmul.f32 %v5080_v5, %v5467_v35 }
 0x276   : > { %v947_v48 = vsel %vm5787_vm10, 0, %v945_v50  ;;  %v1126_v43 = vadd.s32 %v1125_v41, %v1121_v44  ;;  %v1288_v31 = vand.u32 31, %v1286_v45  ;;  %v5810_v1 = vmul.f32 %v5058_v52, %v5467_v35 }
 0x277   : > { %v931_v4 = vshll.u32 %v5757_v26, %v929_v63  ;;  %v932_v22 = vshrl.u32 %v914_v6, %v930_v10  ;;  %v935_v34 = vadd.s32 127, %v934_v8  ;;  %v5815_v39 = vmul.f32 %v5082_v12, %v5086_v17 }
 0x278   : > { %v5819_v56 = vadd.f32 %v5118_v40, %v5647_v46  ;;  %v1127_v23 = vadd.s32 536870912, %v1126_v43  ;;  %v1289_v36 = vsub.s32 32, %v1288_v31  ;;  %v951_v42 = vadd.s32 3, %v947_v48 }
 0x279   : > { %v933_v62 = vor.u32 %v932_v22, %v931_v4  ;;  %v936_v25 = vshll.u32 %v935_v34, 23  ;;  %v5821_v58 = vshll.u32 %v1282_v3, 8  ;;  %v1291_v26 = vshll.u32 %v7890_v2, %v1288_v31 }
 0x27a   : > { %v1128_v29 = vshrl.u32 %v1127_v23, 30  ;;  %v1292_v20 = vshrl.u32 %v7886_v7, %v1289_v36  ;;  %v1295_v19 = vshrl.u32 %v7888_v9, %v1289_v36  ;;  %v1294_v38 = vshll.u32 %v7886_v7, %v1288_v31 }
 0x27b   : > { %v937_v18 = vor.u32 4788187, %v936_v25  ;;  %v1298_v46 = vshrl.u32 %v4838_v11, %v1289_v36  ;;  %v1301_v13 = vshrl.u32 %v4839_v14, %v1289_v36  ;;  %v1287_v6 = vshrl.u32 %v1286_v45, 5 }
 0x27c   : > { %v1129_v15 = vshll.u32 %v1128_v29, 30  ;;  %v1297_v50 = vshll.u32 %v7888_v9, %v1288_v31  ;;  %v1300_v63 = vshll.u32 %v4838_v11, %v1288_v31  ;;  %v940_v10 = vcvt.s32.f32 %v933_v62 }
 0x27d   : > { %v938_v44 = vand.u32 2147483647, %v937_v18  ;;  %vm1068_vm15 = vcmp.lt.s32.totalorder %v5635_v0, 0  ;;  %v1293_v8 = vor.u32 %v1292_v20, %v1291_v26  ;;  %v1296_v41 = vor.u32 %v1295_v19, %v1294_v38 }
 0x27e   : > { %v5832_v3 = vsub.s32 %v1126_v43, %v1129_v15  ;;  %v1299_v48 = vor.u32 %v1298_v46, %v1297_v50  ;;  %v1302_v4 = vor.u32 %v1301_v13, %v1300_v63  ;;  %v1304_v22 = vshrl.u32 %v4840_v30, %v1289_v36 }
 0x27f   : > { %v941_v34 = vmul.f32 %v940_v10, %v938_v44  ;;  %v1303_v23 = vshll.u32 %v4839_v14, %v1288_v31  ;;  %v1482_v45 = vand.u32 2147483647, %v5819_v56  ;;  %v1485_v25 = vand.u32 2139095040, %v5819_v56 }
 0x280   : > { %v1132_v18 = vsub.s32 0, %v5832_v3  ;;  %v1152_v62 = vsub.s32 4, %v1128_v29  ;;  %v1290_v59 = vshrl.u32 %v7890_v2, %v1289_v36  ;;  %vm1306_vm0 = vcmp.lt.s32.totalorder %v1287_v6, 1 }
 0x281   : > { %v942_v26 = vxor.u32 2147483648, %v941_v34  ;;  %v1305_v43 = vor.u32 %v1304_v22, %v1303_v23  ;;  %vm1308_vm1 = vcmp.lt.s32.totalorder %v1287_v6, 3  ;;  %vm1309_vm2 = vcmp.lt.s32.totalorder %v1287_v6, 4 }
 0x282   : > { %v4262_v20 = vmin.u32 %v1132_v18, %v5832_v3  ;;  %v1311_v19 = vsel %vm1309_vm2, %v1299_v48, 2102212464  ;;  %v1314_v31 = vsel %vm1306_vm0, %v1293_v8, %v1296_v41  ;;  %v1315_v38 = vsel %vm1309_vm2, %v1302_v4, 920167782 }
 0x283   : > { %v943_v46 = vsel %vm860_vm12, %v942_v26, %v941_v34  ;;  %vm1307_vm3 = vcmp.lt.s32.totalorder %v1287_v6, 2  ;;  %v1316_v13 = vsel %vm1308_vm1, %v1299_v48, %v1315_v38  ;;  %v1486_v36 = vshrl.u32 %v1485_v25, 23 }
 0x284   : > { %v946_v15 = vsel %vm5787_vm10, %v5608_v47, %v943_v46  ;;  %v1134_v50 = vclz %v4262_v20  ;;  %v1310_v63 = vsel %vm1306_vm0, %v1290_v59, %v1293_v8  ;;  %v1318_v44 = vsel %vm1306_vm0, %v1296_v41, %v1299_v48 }
 0x285   : > { %4621 = vcosq.f32 %v946_v15  ;;  %v1312_v10 = vsel %vm1308_vm1, %v1296_v41, %v1311_v19  ;;  %v1317_v22 = vsel %vm1307_vm3, %v1314_v31, %v1316_v13  ;;  %v1319_v34 = vsel %vm1309_vm2, %v1305_v43, 1326507024 }
 0x286   : > { %4623 = vsinq.f32 %v946_v15  ;;  %v4263_v23 = vadd.s32 4294967294, %v1134_v50  ;;  %v1153_v25 = vsel %vm1068_vm15, %v1152_v62, %v1128_v29  ;;  %v1320_v32 = vsel %vm1308_vm1, %v1302_v4, %v1319_v34 }
 0x287   : > { %v1321_v18 = vsel %vm1307_vm3, %v1318_v44, %v1320_v32  ;;  %v5860_v59 = vmul.u32.u64.low %v5821_v58, %v1317_v22  ;;  %v5861_v8 = vmul.u32.u64.high %v5821_v58, %v1317_v22, %v5860_v59  ;;  %v4277_v48 = vadd.s32 4294967169, %v1486_v36 }
 0x288   : > { %vm4264_vm4 = vcmp.lt.s32.totalorder %v4263_v23, 0  ;;  %v1313_v41 = vsel %vm1307_vm3, %v1310_v63, %v1312_v10  ;;  %v5866_v26 = vmul.u32.u64.low %v5821_v58, %v1321_v18  ;;  %v5867_v43 = vmul.u32.u64.high %v5821_v58, %v1321_v18, %v5866_v26 }
 0x289   : > { %v952_v20 = vand.u32 3, %v951_v42  ;;  %vm5871_vm5 = vcmp.le.f32.partialorder %v1066_v61, 0.7853982  ;;  %v1137_v4 = vsel %vm4264_vm4, 0, %v4263_v23  ;;  %v1492_v62 = vadd.s32 1, %v4277_v48 }
 0x28a   : > { %v1122_v19 = vadd.s32 %v5767_v60, %v5776_v33  ;;  %v1138_v31 = vsub.s32 32, %v1137_v4  ;;  %v1142_v38 = vsub.s32 4294967266, %v1137_v4  ;;  %v1155_v6 = vsel %vm5871_vm5, 0, %v1153_v25 }
 0x28b   : > { %v1329_v46 = vmul.u32 %v5821_v58, %v1313_v41  ;;  %v1332_v42 = vadd.s32 1, %v5861_v8  ;;  %v1489_v61 = vand.u32 8388607, %v1482_v45  ;;  %vm1493_vm6 = vcmp.gt.s32.totalorder %v1492_v62, 0 }
 0x28c   : > { %v1139_v13 = vshll.u32 %v5832_v3, %v1137_v4  ;;  %v1140_v36 = vshrl.u32 %v1122_v19, %v1138_v31  ;;  %v1143_v15 = vadd.s32 127, %v1142_v38  ;;  %vm1331_vm7 = vc.u32 %v5867_v43, %v5860_v59 }
 0x28d   : > { %v5888_v60 = vadd.f32 %v5342_v27, %v5804_v37  ;;  %v1159_v33 = vadd.s32 3, %v1155_v6  ;;  %v1333_v58 = vsel %vm1331_vm7, %v1332_v42, %v5861_v8  ;;  %v1494_v50 = vsel %vm1493_vm6, %v1492_v62, 0 }
 0x28e   : > { %vm950_vm8 = vweird.f32 %v5608_v47  ;;  %v1141_v63 = vor.u32 %v1140_v36, %v1139_v13  ;;  %v1144_v44 = vshll.u32 %v1143_v15, 23  ;;  %v1334_v10 = vadd.s32 %v1333_v58, %v1329_v46 }
 0x28f   : > { %v4622_v22 = vpop.eup %4621  ;;  %vm953_vm9 = vcmp.lt.s32.totalorder %v952_v20, 2  ;;  %vm954_vm10 = vcmp.eq.s32.totalorder %v952_v20, 0  ;;  %v1490_v3 = vor.u32 8388608, %v1489_v61  ;;  %v1496_v34 = vand.u32 31, %v1494_v50 }
 0x290   : > { %v4624_v23 = vpop.eup %4623  ;;  %vm957_vm12 = vcmp.eq.s32.totalorder %v952_v20, 2  ;;  %v958_v25 = vxor.u32 2147483648, %v4622_v22  ;;  %v1145_v32 = vor.u32 4788187, %v1144_v44  ;;  %v1335_v37 = vadd.s32 536870912, %v1334_v10 }
 0x291   : > { %v955_v18 = vxor.u32 2147483648, %v4624_v23  ;;  %v5892_v48 = vand.u32 3, %v1159_v33  ;;  %v1497_v8 = vsub.s32 32, %v1496_v34  ;;  %v1690_v41 = vand.u32 2147483647, %v5888_v60 }
 0x292   : > { %v959_v26 = vsel %vm957_vm12, %v958_v25, %v4624_v23  ;;  %v1146_v4 = vand.u32 2147483647, %v1145_v32  ;;  %v1148_v62 = vcvt.s32.f32 %v1141_v63  ;;  %vm1276_vm11 = vcmp.lt.s32.totalorder %v5654_v49, 0 }
 0x293   : > { %v1336_v19 = vshrl.u32 %v1335_v37, 30  ;;  %v956_v31 = vsel %vm954_vm10, %v4622_v22, %v955_v18  ;;  %v1500_v38 = vshrl.u32 %v7886_v7, %v1497_v8  ;;  %v5898_v6 = vshll.u32 %v1490_v3, 8 }
 0x294   : > { %v1693_v46 = vand.u32 2139095040, %v5888_v60  ;;  %v960_v42 = vsel %vm953_vm9, %v956_v31, %v959_v26  ;;  %v1149_v61 = vmul.f32 %v1148_v62, %v1146_v4  ;;  %v1495_v36 = vshrl.u32 %v1494_v50, 5 }
 0x295   : > { %v1337_v13 = vshll.u32 %v1336_v19, 30  ;;  %v961_v15 = vsel %vm950_vm8, nan, %v960_v42  ;;  %v1499_v33 = vshll.u32 %v7890_v2, %v1496_v34  ;;  %v1503_v58 = vshrl.u32 %v7888_v9, %v1497_v8 }
 0x296   : > { %v1506_v63 = vshrl.u32 %v4838_v11, %v1497_v8  ;;  %v1150_v44 = vxor.u32 2147483648, %v1149_v61  ;;  %v1502_v3 = vshll.u32 %v7886_v7, %v1496_v34  ;;  %v1505_v20 = vshll.u32 %v7888_v9, %v1496_v34  ;;  %2419 = vst [vmem:[%s5442_s18 + $0x8] sm:$0xff] %v961_v15 }
 0x297   : > { %v5907_v22 = vsub.s32 %v1334_v10, %v1337_v13  ;;  %v1360_v23 = vsub.s32 4, %v1336_v19  ;;  %v1501_v25 = vor.u32 %v1500_v38, %v1499_v33  ;;  %v1508_v50 = vshll.u32 %v4838_v11, %v1496_v34 }
 0x298   : > { %v1509_v47 = vshrl.u32 %v4839_v14, %v1497_v8  ;;  %v1151_v32 = vsel %vm1068_vm15, %v1150_v44, %v1149_v61  ;;  %v1511_v18 = vshll.u32 %v4839_v14, %v1496_v34  ;;  %v1512_v10 = vshrl.u32 %v4840_v30, %v1497_v8 }
 0x299   : > { %v1340_v37 = vsub.s32 0, %v5907_v22  ;;  %v1154_v26 = vsel %vm5871_vm5, %v5635_v0, %v1151_v32  ;;  %v1504_v4 = vor.u32 %v1503_v58, %v1502_v3  ;;  %v1507_v62 = vor.u32 %v1506_v63, %v1505_v20 }
 0x29a   : > { %v1510_v31 = vor.u32 %v1509_v47, %v1508_v50  ;;  %4625 = vcosq.f32 %v1154_v26  ;;  %v7924_v38 = vand.u32 2147483647, %v5654_v49  ;;  %v1513_v13 = vor.u32 %v1512_v10, %v1511_v18 }
 0x29b   : > { %v4270_v61 = vmin.u32 %v1340_v37, %v5907_v22  ;;  %v1694_v34 = vshrl.u32 %v1693_v46, 23  ;;  %4627 = vsinq.f32 %v1154_v26  ;;  %v1361_v15 = vsel %vm1276_vm11, %v1360_v23, %v1336_v19 }
 0x29c   : > { %vm5924_vm13 = vcmp.le.f32.partialorder %v7924_v38, 0.7853982  ;;  %v1498_v29 = vshrl.u32 %v7890_v2, %v1497_v8  ;;  %vm1514_vm14 = vcmp.lt.s32.totalorder %v1495_v36, 1  ;;  %vm1515_vm15 = vcmp.lt.s32.totalorder %v1495_v36, 2 }
 0x29d   : > { %v1342_v33 = vclz %v4270_v61  ;;  %vm1516_vm0 = vcmp.lt.s32.totalorder %v1495_v36, 3  ;;  %vm1517_vm1 = vcmp.lt.s32.totalorder %v1495_v36, 4  ;;  %v1522_v63 = vsel %vm1514_vm14, %v1501_v25, %v1504_v4 }
 0x29e   : > { %v1519_v58 = vsel %vm1517_vm1, %v1507_v62, 2102212464  ;;  %v1523_v44 = vsel %vm1517_vm1, %v1510_v31, 920167782  ;;  %v1526_v3 = vsel %vm1514_vm14, %v1504_v4, %v1507_v62  ;;  %v1518_v50 = vsel %vm1514_vm14, %v1498_v29, %v1501_v25 }
 0x29f   : > { %v4271_v20 = vadd.s32 4294967294, %v1342_v33  ;;  %v1524_v47 = vsel %vm1516_vm0, %v1507_v62, %v1523_v44  ;;  %v1527_v32 = vsel %vm1517_vm1, %v1513_v13, 1326507024  ;;  %vm1162_vm2 = vcmp.eq.s32.totalorder %v5892_v48, 0 }
 0x2a0   : > { %v1520_v46 = vsel %vm1516_vm0, %v1504_v4, %v1519_v58  ;;  %v1525_v19 = vsel %vm1515_vm15, %v1522_v63, %v1524_v47  ;;  %v1528_v23 = vsel %vm1516_vm0, %v1510_v31, %v1527_v32  ;;  %v4285_v8 = vadd.s32 4294967169, %v1694_v34 }
 0x2a1   : > { %vm4272_vm3 = vcmp.lt.s32.totalorder %v4271_v20, 0  ;;  %v1529_v37 = vsel %vm1515_vm15, %v1526_v3, %v1528_v23  ;;  %v5936_v18 = vmul.u32.u64.low %v5898_v6, %v1525_v19  ;;  %v5937_v10 = vmul.u32.u64.high %v5898_v6, %v1525_v19, %v5936_v18 }
 0x2a2   : > { %v1330_v25 = vadd.s32 %v5860_v59, %v5867_v43  ;;  %v1345_v26 = vsel %vm4272_vm3, 0, %v4271_v20  ;;  %v5943_v62 = vmul.u32.u64.low %v5898_v6, %v1529_v37  ;;  %v5944_v38 = vmul.u32.u64.high %v5898_v6, %v1529_v37, %v5943_v62 }
 0x2a3   : > { %v1346_v4 = vsub.s32 32, %v1345_v26  ;;  %v1350_v61 = vsub.s32 4294967266, %v1345_v26  ;;  %v1521_v31 = vsel %vm1515_vm15, %v1518_v50, %v1520_v46  ;;  %v1700_v13 = vadd.s32 1, %v4285_v8  ;;  %v5960_v8 = vpop.permute.xlu1 %730 }
 0x2a4   : > { %vm1165_vm4 = vcmp.eq.s32.totalorder %v5892_v48, 2  ;;  %v1347_v34 = vshll.u32 %v5907_v22, %v1345_v26  ;;  %v1363_v29 = vsel %vm5924_vm13, 0, %v1361_v15  ;;  %v1697_v59 = vand.u32 8388607, %v1690_v41  ;;  %v4626_v43 = vpop.eup %4625 }
 0x2a5   : > { %v1348_v33 = vshrl.u32 %v1330_v25, %v1346_v4  ;;  %v1351_v58 = vadd.s32 127, %v1350_v61  ;;  %v1540_v63 = vadd.s32 1, %v5937_v10  ;;  %vm1701_vm5 = vcmp.gt.s32.totalorder %v1700_v13, 0  ;;  %v4628_v44 = vpop.eup %4627 }
 0x2a6   : > { %v1166_v36 = vxor.u32 2147483648, %v4626_v43  ;;  %v1537_v3 = vmul.u32 %v5898_v6, %v1521_v31  ;;  %vm1539_vm6 = vc.u32 %v5944_v38, %v5936_v18  ;;  %v1702_v22 = vsel %vm1701_vm5, %v1700_v13, 0 }
 0x2a7   : > { %v1163_v20 = vxor.u32 2147483648, %v4628_v44  ;;  %v1349_v50 = vor.u32 %v1348_v33, %v1347_v34  ;;  %v1352_v15 = vshll.u32 %v1351_v58, 23  ;;  %v1541_v47 = vsel %vm1539_vm6, %v1540_v63, %v5937_v10 }
 0x2a8   : > { %v1167_v32 = vsel %vm1165_vm4, %v1166_v36, %v4628_v44  ;;  %v1367_v46 = vadd.s32 3, %v1363_v29  ;;  %v1542_v19 = vadd.s32 %v1541_v47, %v1537_v3  ;;  %v1704_v23 = vand.u32 31, %v1702_v22 }
 0x2a9   : > { %vm1158_vm7 = vweird.f32 %v5635_v0  ;;  %vm1161_vm8 = vcmp.lt.s32.totalorder %v5892_v48, 2  ;;  %v1164_v6 = vsel %vm1162_vm2, %v4626_v43, %v1163_v20  ;;  %v1353_v37 = vor.u32 4788187, %v1352_v15 }
 0x2aa   : > { %v1168_v25 = vsel %vm1161_vm8, %v1164_v6, %v1167_v32  ;;  %v1543_v26 = vadd.s32 536870912, %v1542_v19  ;;  %v1698_v10 = vor.u32 8388608, %v1697_v59  ;;  %v1705_v62 = vsub.s32 32, %v1704_v23 }
 0x2ab   : > { %v5968_v4 = vadd.f32 %v5349_v28, %v5810_v1  ;;  %v1169_v61 = vsel %vm1158_vm7, nan, %v1168_v25  ;;  %v1354_v31 = vand.u32 2147483647, %v1353_v37  ;;  %v1356_v13 = vcvt.s32.f32 %v1349_v50 }
 0x2ac   : > { %v5972_v0 = vadd.f32 %v5960_v8, %v5815_v39  ;;  %v5974_v34 = vand.u32 3, %v1367_v46  ;;  %v1544_v48 = vshrl.u32 %v1543_v26, 30  ;;  %v1708_v29 = vshrl.u32 %v7886_v7, %v1705_v62  ;;  %2421 = vst [vmem:[%s5442_s18 + $0x18] sm:$0xff] %v1169_v61 }
 0x2ad   : > { %v1357_v43 = vmul.f32 %v1356_v13, %v1354_v31  ;;  %v1711_v59 = vshrl.u32 %v7888_v9, %v1705_v62  ;;  %v1714_v33 = vshrl.u32 %v4838_v11, %v1705_v62  ;;  %v1717_v1 = vshrl.u32 %v4839_v14, %v1705_v62 }
 0x2ae   : > { %v1545_v58 = vshll.u32 %v1544_v48, 30  ;;  %v1703_v63 = vshrl.u32 %v1702_v22, 5  ;;  %v1713_v44 = vshll.u32 %v7888_v9, %v1704_v23  ;;  %v5982_v36 = vshll.u32 %v1698_v10, 8 }
 0x2af   : > { %v1358_v39 = vxor.u32 2147483648, %v1357_v43  ;;  %vm1484_vm9 = vcmp.lt.s32.totalorder %v5819_v56, 0  ;;  %v1707_v3 = vshll.u32 %v7890_v2, %v1704_v23  ;;  %v1710_v20 = vshll.u32 %v7886_v7, %v1704_v23 }
 0x2b0   : > { %v1716_v50 = vshll.u32 %v4838_v11, %v1704_v23  ;;  %v5988_v15 = vsub.s32 %v1542_v19, %v1545_v58  ;;  %v1715_v47 = vor.u32 %v1714_v33, %v1713_v44  ;;  %v1719_v32 = vshll.u32 %v4839_v14, %v1704_v23 }
 0x2b1   : > { %v1720_v22 = vshrl.u32 %v4840_v30, %v1705_v62  ;;  %v1359_v46 = vsel %vm1276_vm11, %v1358_v39, %v1357_v43  ;;  %v1709_v6 = vor.u32 %v1708_v29, %v1707_v3  ;;  %v1712_v37 = vor.u32 %v1711_v59, %v1710_v20 }
 0x2b2   : > { %v1718_v25 = vor.u32 %v1717_v1, %v1716_v50  ;;  %v1362_v26 = vsel %vm5924_vm13, %v5654_v49, %v1359_v46  ;;  %v1548_v10 = vsub.s32 0, %v5988_v15  ;;  %v1901_v19 = vand.u32 2139095040, %v5968_v4 }
 0x2b3   : > { %v1721_v61 = vor.u32 %v1720_v22, %v1719_v32  ;;  %4629 = vcosq.f32 %v1362_v26  ;;  %v1568_v31 = vsub.s32 4, %v1544_v48  ;;  %v1706_v23 = vshrl.u32 %v7890_v2, %v1705_v62 }
 0x2b4   : > { %vm1725_vm10 = vcmp.lt.s32.totalorder %v1703_v63, 4  ;;  %4631 = vsinq.f32 %v1362_v26  ;;  %v4278_v13 = vmin.u32 %v1548_v10, %v5988_v15  ;;  %vm1722_vm12 = vcmp.lt.s32.totalorder %v1703_v63, 1 }
 0x2b5   : > { %v1727_v29 = vsel %vm1725_vm10, %v1715_v47, 2102212464  ;;  %v1730_v43 = vsel %vm1722_vm12, %v1709_v6, %v1712_v37  ;;  %v1731_v59 = vsel %vm1725_vm10, %v1718_v25, 920167782  ;;  %v1734_v33 = vsel %vm1722_vm12, %v1712_v37, %v1715_v47 }
 0x2b6   : > { %v1735_v42 = vsel %vm1725_vm10, %v1721_v61, 1326507024  ;;  %v1550_v1 = vclz %v4278_v13  ;;  %vm1723_vm11 = vcmp.lt.s32.totalorder %v1703_v63, 2  ;;  %vm1724_vm13 = vcmp.lt.s32.totalorder %v1703_v63, 3 }
 0x2b7   : > { %v1726_v58 = vsel %vm1722_vm12, %v1706_v23, %v1709_v6  ;;  %v1728_v44 = vsel %vm1724_vm13, %v1712_v37, %v1727_v29  ;;  %v1732_v39 = vsel %vm1724_vm13, %v1715_v47, %v1731_v59  ;;  %v1736_v3 = vsel %vm1724_vm13, %v1718_v25, %v1735_v42 }
 0x2b8   : > { %v1902_v20 = vshrl.u32 %v1901_v19, 23  ;;  %v4279_v50 = vadd.s32 4294967294, %v1550_v1  ;;  %v1569_v62 = vsel %vm1484_vm9, %v1568_v31, %v1544_v48  ;;  %v1733_v32 = vsel %vm1723_vm11, %v1730_v43, %v1732_v39 }
 0x2b9   : > { %v1737_v22 = vsel %vm1723_vm11, %v1734_v33, %v1736_v3  ;;  %v6010_v10 = vmul.u32.u64.low %v5982_v36, %v1733_v32  ;;  %v6011_v61 = vmul.u32.u64.high %v5982_v36, %v1733_v32, %v6010_v10  ;;  %vm1366_vm14 = vweird.f32 %v5654_v49 }
 0x2ba   : > { %v6006_v46 = vmul.u32.u64.low %v5982_v36, %v1737_v22  ;;  %v6007_v26 = vmul.u32.u64.high %v5982_v36, %v1737_v22, %v6006_v46  ;;  %vm6017_vm15 = vcmp.le.f32.partialorder %v1482_v45, 0.7853982  ;;  %vm4280_vm0 = vcmp.lt.s32.totalorder %v4279_v50, 0 }
 0x2bb   : > { %v1729_v48 = vsel %vm1723_vm11, %v1726_v58, %v1728_v44  ;;  %v4293_v6 = vadd.s32 4294967169, %v1902_v20  ;;  %vm1369_vm1 = vcmp.lt.s32.totalorder %v5974_v34, 2  ;;  %vm1370_vm2 = vcmp.eq.s32.totalorder %v5974_v34, 0 }
 0x2bc   : > { %v1553_v37 = vsel %vm4280_vm0, 0, %v4279_v50  ;;  %v1898_v25 = vand.u32 2147483647, %v5968_v4  ;;  %v1538_v19 = vadd.s32 %v5936_v18, %v5944_v38  ;;  %v1571_v45 = vsel %vm6017_vm15, 0, %v1569_v62 }
 0x2bd   : > { %v1554_v31 = vsub.s32 32, %v1553_v37  ;;  %v1558_v23 = vsub.s32 4294967266, %v1553_v37  ;;  %v4630_v13 = vpop.eup %4629  ;;  %v1745_v63 = vmul.u32 %v5982_v36, %v1729_v48  ;;  %vm1747_vm3 = vc.u32 %v6007_v26, %v6010_v10 }
 0x2be   : > { %v1748_v29 = vadd.s32 1, %v6011_v61  ;;  %v1908_v43 = vadd.s32 1, %v4293_v6  ;;  %v4632_v59 = vpop.eup %4631  ;;  %v1374_v33 = vxor.u32 2147483648, %v4630_v13  ;;  %v1555_v42 = vshll.u32 %v5988_v15, %v1553_v37 }
 0x2bf   : > { %v1556_v1 = vshrl.u32 %v1538_v19, %v1554_v31  ;;  %v1559_v18 = vadd.s32 127, %v1558_v23  ;;  %v1371_v38 = vxor.u32 2147483648, %v4632_v59  ;;  %vm1373_vm4 = vcmp.eq.s32.totalorder %v5974_v34, 2 }
 0x2c0   : > { %v1749_v58 = vsel %vm1747_vm3, %v1748_v29, %v6011_v61  ;;  %vm1909_vm5 = vcmp.gt.s32.totalorder %v1908_v43, 0  ;;  %v1375_v44 = vsel %vm1373_vm4, %v1374_v33, %v4632_v59  ;;  %v1575_v50 = vadd.s32 3, %v1571_v45 }
 0x2c1   : > { %v1557_v36 = vor.u32 %v1556_v1, %v1555_v42  ;;  %v1560_v39 = vshll.u32 %v1559_v18, 23  ;;  %v1750_v3 = vadd.s32 %v1749_v58, %v1745_v63  ;;  %v1372_v20 = vsel %vm1370_vm2, %v4630_v13, %v1371_v38 }
 0x2c2   : > { %v1905_v15 = vand.u32 8388607, %v1898_v25  ;;  %v1910_v62 = vsel %vm1909_vm5, %v1908_v43, 0  ;;  %v1376_v32 = vsel %vm1369_vm1, %v1372_v20, %v1375_v44  ;;  %v2005_v61 = vand.u32 2139095040, %v5972_v0 }
 0x2c3   : > { %v1561_v22 = vor.u32 4788187, %v1560_v39  ;;  %v1751_v46 = vadd.s32 536870912, %v1750_v3  ;;  %v1377_v48 = vsel %vm1366_vm14, nan, %v1376_v32  ;;  %v1912_v6 = vand.u32 31, %v1910_v62 }
 0x2c4   : > { %v6047_v37 = vmul.f32 %v5082_v12, %v5467_v35  ;;  %v1564_v31 = vcvt.s32.f32 %v1557_v36  ;;  %2423 = vst [vmem:[%s5442_s18 + $0x28] sm:$0xff] %v1377_v48  ;;  %v6052_v45 = vand.u32 3, %v1575_v50  ;;  %v1906_v34 = vor.u32 8388608, %v1905_v15 }
 0x2c5   : > { %v1562_v19 = vand.u32 2147483647, %v1561_v22  ;;  %v6049_v23 = vshrl.u32 %v1751_v46, 30  ;;  %v1913_v13 = vsub.s32 32, %v1912_v6  ;;  %v7881_v63 = vand.u32 2147483647, %v5972_v0 }
 0x2c6   : > { %v1915_v43 = vshll.u32 %v7890_v2, %v1912_v6  ;;  %v2006_v59 = vshrl.u32 %v2005_v61, 23  ;;  %v1918_v42 = vshll.u32 %v7886_v7, %v1912_v6  ;;  %v1921_v44 = vshll.u32 %v7888_v9, %v1912_v6 }
 0x2c7   : > { %v1565_v29 = vmul.f32 %v1564_v31, %v1562_v19  ;;  %v1753_v49 = vshll.u32 %v6049_v23, 30  ;;  %v1916_v33 = vshrl.u32 %v7886_v7, %v1913_v13  ;;  %v1919_v1 = vshrl.u32 %v7888_v9, %v1913_v13 }
 0x2c8   : > { %v1922_v18 = vshrl.u32 %v4838_v11, %v1913_v13  ;;  %v1925_v36 = vshrl.u32 %v4839_v14, %v1913_v13  ;;  %v1746_v39 = vadd.s32 %v6010_v10, %v6007_v26  ;;  %v1911_v20 = vshrl.u32 %v1910_v62, 5 }
 0x2c9   : > { %v1566_v38 = vxor.u32 2147483648, %v1565_v29  ;;  %v6061_v58 = vsub.s32 %v1750_v3, %v1753_v49  ;;  %v1917_v50 = vor.u32 %v1916_v33, %v1915_v43  ;;  %v1924_v15 = vshll.u32 %v4838_v11, %v1912_v6 }
 0x2ca   : > { %v1920_v46 = vor.u32 %v1919_v1, %v1918_v42  ;;  %v1923_v61 = vor.u32 %v1922_v18, %v1921_v44  ;;  %vm1692_vm6 = vcmp.lt.s32.totalorder %v5888_v60, 0  ;;  %v1927_v26 = vshll.u32 %v4839_v14, %v1912_v6 }
 0x2cb   : > { %v1567_v32 = vsel %vm1484_vm9, %v1566_v38, %v1565_v29  ;;  %v1756_v22 = vsub.s32 0, %v6061_v58  ;;  %v1926_v48 = vor.u32 %v1925_v36, %v1924_v15  ;;  %v1928_v10 = vshrl.u32 %v4840_v30, %v1913_v13 }
 0x2cc   : > { %v1570_v3 = vsel %vm6017_vm15, %v5819_v56, %v1567_v32  ;;  %v6078_v19 = vshll.u32 %v1906_v34, 8  ;;  %v4297_v31 = vadd.s32 4294967169, %v2006_v59  ;;  %v1776_v29 = vsub.s32 4, %v6049_v23 }
 0x2cd   : > { %4633 = vcosq.f32 %v1570_v3  ;;  %v4286_v62 = vmin.u32 %v1756_v22, %v6061_v58  ;;  %v1914_v49 = vshrl.u32 %v7890_v2, %v1913_v13  ;;  %v1929_v47 = vor.u32 %v1928_v10, %v1927_v26 }
 0x2ce   : > { %4635 = vsinq.f32 %v1570_v3  ;;  %vm6084_vm7 = vcmp.le.f32.partialorder %v1690_v41, 0.7853982  ;;  %vm1930_vm8 = vcmp.lt.s32.totalorder %v1911_v20, 1  ;;  %vm1931_vm9 = vcmp.lt.s32.totalorder %v1911_v20, 2 }
 0x2cf   : > { %v1758_v6 = vclz %v4286_v62  ;;  %vm1933_vm10 = vcmp.lt.s32.totalorder %v1911_v20, 4  ;;  %vm1932_vm12 = vcmp.lt.s32.totalorder %v1911_v20, 3  ;;  %v1938_v33 = vsel %vm1930_vm8, %v1917_v50, %v1920_v46 }
 0x2d0   : > { %v1935_v34 = vsel %vm1933_vm10, %v1923_v61, 2102212464  ;;  %v1939_v59 = vsel %vm1933_vm10, %v1926_v48, 920167782  ;;  %vm1581_vm11 = vcmp.eq.s32.totalorder %v6052_v45, 2  ;;  %v1934_v1 = vsel %vm1930_vm8, %v1914_v49, %v1917_v50 }
 0x2d1   : > { %v4287_v42 = vadd.s32 4294967294, %v1758_v6  ;;  %v1940_v13 = vsel %vm1932_vm12, %v1923_v61, %v1939_v59  ;;  %v1942_v18 = vsel %vm1930_vm8, %v1920_v46, %v1923_v61  ;;  %vm1578_vm13 = vcmp.eq.s32.totalorder %v6052_v45, 0 }
 0x2d2   : > { %v1936_v41 = vsel %vm1932_vm12, %v1920_v46, %v1935_v34  ;;  %v1941_v38 = vsel %vm1931_vm9, %v1938_v33, %v1940_v13  ;;  %v1943_v44 = vsel %vm1933_vm10, %v1929_v47, 1326507024  ;;  %v2012_v36 = vadd.s32 1, %v4297_v31 }
 0x2d3   : > { %vm1577_vm14 = vcmp.lt.s32.totalorder %v6052_v45, 2  ;;  %vm4288_vm15 = vcmp.lt.s32.totalorder %v4287_v42, 0  ;;  %v1944_v15 = vsel %vm1932_vm12, %v1926_v48, %v1943_v44  ;;  %vm1574_vm0 = vweird.f32 %v5819_v56 }
 0x2d4   : > { %v6096_v32 = vmul.u32.u64.low %v6078_v19, %v1941_v38  ;;  %v6097_v22 = vmul.u32.u64.high %v6078_v19, %v1941_v38, %v6096_v32  ;;  %v1761_v50 = vsel %vm4288_vm15, 0, %v4287_v42  ;;  %v1945_v61 = vsel %vm1931_vm9, %v1942_v18, %v1944_v15 }
 0x2d5   : > { %v6104_v46 = vand.u32 8388607, %v7881_v63  ;;  %vm2013_vm1 = vcmp.gt.s32.totalorder %v2012_v36, 0  ;;  %v1762_v3 = vsub.s32 32, %v1761_v50  ;;  %v1766_v26 = vsub.s32 4294967266, %v1761_v50 }
 0x2d6   : > { %v1777_v48 = vsel %vm1692_vm6, %v1776_v29, %v6049_v23  ;;  %v2014_v10 = vsel %vm2013_vm1, %v2012_v36, 0  ;;  %v1937_v62 = vsel %vm1931_vm9, %v1934_v1, %v1936_v41  ;;  %v1763_v34 = vshll.u32 %v6061_v58, %v1761_v50 }
 0x2d7   : > { %v6111_v31 = vmul.u32.u64.low %v6078_v19, %v1945_v61  ;;  %v6112_v49 = vmul.u32.u64.high %v6078_v19, %v1945_v61, %v6111_v31  ;;  %v2016_v47 = vand.u32 31, %v2014_v10  ;;  %v4634_v6 = vpop.eup %4633  ;;  %v1764_v33 = vshrl.u32 %v1746_v39, %v1762_v3 }
 0x2d8   : > { %v1767_v59 = vadd.s32 127, %v1766_v26  ;;  %v1956_v42 = vadd.s32 1, %v6097_v22  ;;  %v4636_v13 = vpop.eup %4635  ;;  %v1582_v18 = vxor.u32 2147483648, %v4634_v6  ;;  %v1779_v23 = vsel %vm6084_vm7, 0, %v1777_v48 }
 0x2d9   : > { %v2010_v20 = vor.u32 8388608, %v6104_v46  ;;  %v2017_v29 = vsub.s32 32, %v2016_v47  ;;  %v1579_v1 = vxor.u32 2147483648, %v4636_v13  ;;  %v1765_v41 = vor.u32 %v1764_v33, %v1763_v34 }
 0x2da   : > { %v1768_v38 = vshll.u32 %v1767_v59, 23  ;;  %v1953_v44 = vmul.u32 %v6078_v19, %v1937_v62  ;;  %v1583_v58 = vsel %vm1581_vm11, %v1582_v18, %v4636_v13  ;;  %vm1955_vm2 = vc.u32 %v6112_v49, %v6096_v32  ;;  %v6131_v19 = vpop.f32.mrb[2].mxu0 }
 0x2db   : > { %v6124_v39 = vshrl.u32 %v2014_v10, 5  ;;  %v2019_v36 = vshll.u32 %v7890_v2, %v2016_v47  ;;  %v1580_v15 = vsel %vm1578_vm13, %v4634_v6, %v1579_v1  ;;  %v1957_v61 = vsel %vm1955_vm2, %v1956_v42, %v6097_v22  ;;  %v6137_v62 = vpop.f32.mrb[3].mxu0 }
 0x2dc   : > { %v1769_v50 = vor.u32 4788187, %v1768_v38  ;;  %v2022_v46 = vshll.u32 %v7886_v7, %v2016_v47  ;;  %v1584_v3 = vsel %vm1577_vm14, %v1580_v15, %v1583_v58  ;;  %v1958_v26 = vadd.s32 %v1957_v61, %v1953_v44  ;;  %v6147_v44 = vpop.f32.mrb[4].mxu0 }
 0x2dd   : > { %v2020_v48 = vshrl.u32 %v7886_v7, %v2017_v29  ;;  %v2023_v10 = vshrl.u32 %v7888_v9, %v2017_v29  ;;  %v1585_v31 = vsel %vm1574_vm0, nan, %v1584_v3  ;;  %v1772_v22 = vcvt.s32.f32 %v1765_v41 }
 0x2de   : > { %v1770_v6 = vand.u32 2147483647, %v1769_v50  ;;  %v2026_v34 = vshrl.u32 %v4838_v11, %v2017_v29  ;;  %v1959_v33 = vadd.s32 536870912, %v1958_v26  ;;  %v2025_v59 = vshll.u32 %v7888_v9, %v2016_v47  ;;  %2425 = vst [vmem:[%s5442_s18 + $0x38] sm:$0xff] %v1585_v31 }
 0x2df   : > { %v2028_v45 = vshll.u32 %v4838_v11, %v2016_v47  ;;  %v2029_v42 = vshrl.u32 %v4839_v14, %v2017_v29  ;;  %v2021_v18 = vor.u32 %v2020_v48, %v2019_v36  ;;  %v2024_v1 = vor.u32 %v2023_v10, %v2022_v46 }
 0x2e0   : > { %v1773_v13 = vmul.f32 %v1772_v22, %v1770_v6  ;;  %v2032_v38 = vshrl.u32 %v4840_v30, %v2017_v29  ;;  %v6151_v56 = vadd.f32 %v5960_v8, %v6047_v37  ;;  %v1960_v41 = vshrl.u32 %v1959_v33, 30 }
 0x2e1   : > { %v2030_v58 = vor.u32 %v2029_v42, %v2028_v45  ;;  %v1783_v50 = vadd.s32 3, %v1779_v23  ;;  %v2027_v61 = vor.u32 %v2026_v34, %v2025_v59  ;;  %v2031_v3 = vshll.u32 %v4839_v14, %v2016_v47 }
 0x2e2   : > { %v1774_v15 = vxor.u32 2147483648, %v1773_v13  ;;  %v1961_v63 = vshll.u32 %v1960_v41, 30  ;;  %vm2034_vm3 = vcmp.lt.s32.totalorder %v6124_v39, 1  ;;  %vm2037_vm4 = vcmp.lt.s32.totalorder %v6124_v39, 4 }
 0x2e3   : > { %v2050_v36 = vshll.u32 %v2010_v20, 8  ;;  %v2033_v48 = vor.u32 %v2032_v38, %v2031_v3  ;;  %v2042_v37 = vsel %vm2034_vm3, %v2021_v18, %v2024_v1  ;;  %v2043_v10 = vsel %vm2037_vm4, %v2030_v58, 920167782 }
 0x2e4   : > { %v1775_v46 = vsel %vm1692_vm6, %v1774_v15, %v1773_v13  ;;  %v6165_v23 = vsub.s32 %v1958_v26, %v1961_v63  ;;  %v2018_v31 = vshrl.u32 %v7890_v2, %v2017_v29  ;;  %vm2036_vm5 = vcmp.lt.s32.totalorder %v6124_v39, 3 }
 0x2e5   : > { %v1778_v47 = vsel %vm6084_vm7, %v5888_v60, %v1775_v46  ;;  %vm2035_vm6 = vcmp.lt.s32.totalorder %v6124_v39, 2  ;;  %v2039_v20 = vsel %vm2037_vm4, %v2027_v61, 2102212464  ;;  %v2044_v6 = vsel %vm2036_vm5, %v2027_v61, %v2043_v10 }
 0x2e6   : > { %4637 = vcosq.f32 %v1778_v47  ;;  %v1964_v22 = vsub.s32 0, %v6165_v23  ;;  %v2045_v63 = vsel %vm2035_vm6, %v2042_v37, %v2044_v6  ;;  %v2046_v43 = vsel %vm2034_vm3, %v2024_v1, %v2027_v61 }
 0x2e7   : > { %4639 = vsinq.f32 %v1778_v47  ;;  %v1984_v29 = vsub.s32 4, %v1960_v41  ;;  %v2047_v26 = vsel %vm2037_vm4, %v2033_v48, 1326507024  ;;  %v1784_v59 = vand.u32 3, %v1783_v50 }
 0x2e8   : > { %v6181_v34 = vmul.u32.u64.low %v2050_v36, %v2045_v63  ;;  %v6182_v33 = vmul.u32.u64.high %v2050_v36, %v2045_v63, %v6181_v34  ;;  %v4294_v45 = vmin.u32 %v1964_v22, %v6165_v23  ;;  %v2048_v42 = vsel %vm2036_vm5, %v2030_v58, %v2047_v26 }
 0x2e9   : > { %v2038_v13 = vsel %vm2034_vm3, %v2018_v31, %v2021_v18  ;;  %v2040_v38 = vsel %vm2036_vm5, %v2024_v1, %v2039_v20  ;;  %v2049_v15 = vsel %vm2035_vm6, %v2046_v43, %v2048_v42  ;;  %v2109_v61 = vand.u32 2139095040, %v6151_v56 }
 0x2ea   : > { %vm1900_vm7 = vcmp.lt.s32.totalorder %v5968_v4, 0  ;;  %v1966_v3 = vclz %v4294_v45  ;;  %v6198_v46 = vmul.u32.u64.low %v2050_v36, %v2049_v15  ;;  %v6199_v48 = vmul.u32.u64.high %v2050_v36, %v2049_v15, %v6198_v46 }
 0x2eb   : > { %v1985_v50 = vsel %vm1900_vm7, %v1984_v29, %v1960_v41  ;;  %v2041_v18 = vsel %vm2035_vm6, %v2038_v13, %v2040_v38  ;;  %v2110_v37 = vshrl.u32 %v2109_v61, 23  ;;  %vm1786_vm8 = vcmp.eq.s32.totalorder %v1784_v59, 0 }
 0x2ec   : > { %v4295_v58 = vadd.s32 4294967294, %v1966_v3  ;;  %vm1789_vm9 = vcmp.eq.s32.totalorder %v1784_v59, 2  ;;  %vm6205_vm10 = vcmp.le.f32.partialorder %v1898_v25, 0.7853982  ;;  %v2060_v10 = vadd.s32 1, %v6182_v33  ;;  %v6224_v3 = vpop.permute.xlu0 %735 }
 0x2ed   : > { %v1954_v41 = vadd.s32 %v6096_v32, %v6112_v49  ;;  %v1987_v47 = vsel %vm6205_vm10, 0, %v1985_v50  ;;  %v4301_v39 = vadd.s32 4294967169, %v2110_v37  ;;  %v2057_v6 = vmul.u32 %v2050_v36, %v2041_v18 }
 0x2ee   : > { %vm4296_vm12 = vcmp.lt.s32.totalorder %v4295_v58, 0  ;;  %vm2059_vm11 = vc.u32 %v6199_v48, %v6181_v34  ;;  %v2106_v25 = vand.u32 2147483647, %v6151_v56  ;;  %v696_v32 = vmul.f32 %v5062_v54, %v5086_v17 }
 0x2ef   : > { %v1969_v20 = vsel %vm4296_vm12, 0, %v4295_v58  ;;  %v2061_v45 = vsel %vm2059_vm11, %v2060_v10, %v6182_v33  ;;  %v2116_v42 = vadd.s32 1, %v4301_v39  ;;  %vm1782_vm13 = vweird.f32 %v5888_v60 }
 0x2f0   : > { %v4638_v31 = vpop.eup %4637  ;;  %v1970_v43 = vsub.s32 32, %v1969_v20  ;;  %v1974_v29 = vsub.s32 4294967266, %v1969_v20  ;;  %v1971_v26 = vshll.u32 %v6165_v23, %v1969_v20  ;;  %v2062_v15 = vadd.s32 %v2061_v45, %v2057_v6 }
 0x2f1   : > { %v4640_v22 = vpop.eup %4639  ;;  %v1790_v63 = vxor.u32 2147483648, %v4638_v31  ;;  %vm1785_vm14 = vcmp.lt.s32.totalorder %v1784_v59, 2  ;;  %vm2117_vm15 = vcmp.gt.s32.totalorder %v2116_v42, 0  ;;  %v1991_v58 = vadd.s32 3, %v1987_v47 }
 0x2f2   : > { %v1787_v49 = vxor.u32 2147483648, %v4640_v22  ;;  %v1972_v13 = vshrl.u32 %v1954_v41, %v1970_v43  ;;  %v1975_v38 = vadd.s32 127, %v1974_v29  ;;  %v2063_v46 = vadd.s32 536870912, %v2062_v15 }
 0x2f3   : > { %v1791_v36 = vsel %vm1789_vm9, %v1790_v63, %v4640_v22  ;;  %v2113_v18 = vand.u32 8388607, %v2106_v25  ;;  %v2118_v37 = vsel %vm2117_vm15, %v2116_v42, 0  ;;  %v6232_v60 = vadd.f32 %v6224_v3, %v696_v32 }
 0x2f4   : > { %v1788_v61 = vsel %vm1786_vm8, %v4638_v31, %v1787_v49  ;;  %v1973_v50 = vor.u32 %v1972_v13, %v1971_v26  ;;  %v1976_v23 = vshll.u32 %v1975_v38, 23  ;;  %v6228_v41 = vshrl.u32 %v2063_v46, 30 }
 0x2f5   : > { %v1792_v17 = vsel %vm1785_vm14, %v1788_v61, %v1791_v36  ;;  %v2120_v59 = vand.u32 31, %v2118_v37  ;;  %v6235_v6 = vand.u32 3, %v1991_v58  ;;  %v2114_v22 = vor.u32 8388608, %v2113_v18 }
 0x2f6   : > { %v1793_v33 = vsel %vm1782_vm13, nan, %v1792_v17  ;;  %v1977_v10 = vor.u32 4788187, %v1976_v23  ;;  %v1980_v31 = vcvt.s32.f32 %v1973_v50  ;;  %v2065_v20 = vshll.u32 %v6228_v41, 30 }
 0x2f7   : > { %2427 = vst [vmem:[%s5442_s18 + $0x48] sm:$0xff] %v1793_v33  ;;  %v2121_v47 = vsub.s32 32, %v2120_v59  ;;  %v6239_v63 = vmul.f32 %v5062_v54, %v5467_v35  ;;  %v2058_v29 = vadd.s32 %v6181_v34, %v6199_v48  ;;  %v2213_v32 = vand.u32 2139095040, %v6232_v60 }
 0x2f8   : > { %v1978_v39 = vand.u32 2147483647, %v1977_v10  ;;  %v6243_v49 = vsub.s32 %v2062_v15, %v2065_v20  ;;  %v2119_v26 = vshrl.u32 %v2118_v37, 5  ;;  %v2123_v45 = vshll.u32 %v7890_v2, %v2120_v59 }
 0x2f9   : > { %v2124_v42 = vshrl.u32 %v7886_v7, %v2121_v47  ;;  %v2127_v36 = vshrl.u32 %v7888_v9, %v2121_v47  ;;  %v2126_v35 = vshll.u32 %v7886_v7, %v2120_v59  ;;  %v2130_v61 = vshrl.u32 %v4838_v11, %v2121_v47 }
 0x2fa   : > { %v1981_v43 = vmul.f32 %v1980_v31, %v1978_v39  ;;  %v2068_v38 = vsub.s32 0, %v6243_v49  ;;  %v2129_v34 = vshll.u32 %v7888_v9, %v2120_v59  ;;  %v2132_v48 = vshll.u32 %v4838_v11, %v2120_v59 }
 0x2fb   : > { %v2125_v17 = vor.u32 %v2124_v42, %v2123_v45  ;;  %v2133_v15 = vshrl.u32 %v4839_v14, %v2121_v47  ;;  %v2128_v46 = vor.u32 %v2127_v36, %v2126_v35  ;;  %v2135_v33 = vshll.u32 %v4839_v14, %v2120_v59 }
 0x2fc   : > { %v1982_v13 = vxor.u32 2147483648, %v1981_v43  ;;  %v4298_v23 = vmin.u32 %v2068_v38, %v6243_v49  ;;  %v2131_v18 = vor.u32 %v2130_v61, %v2129_v34  ;;  %v2136_v10 = vshrl.u32 %v4840_v30, %v2121_v47 }
 0x2fd   : > { %v2134_v37 = vor.u32 %v2133_v15, %v2132_v48  ;;  %v6263_v31 = vshll.u32 %v2114_v22, 8  ;;  %v2214_v20 = vshrl.u32 %v2213_v32, 23  ;;  %vm2004_vm0 = vcmp.lt.s32.totalorder %v5972_v0, 0 }
 0x2fe   : > { %v1983_v50 = vsel %vm1900_vm7, %v1982_v13, %v1981_v43  ;;  %v2070_v39 = vclz %v4298_v23  ;;  %v2122_v43 = vshrl.u32 %v7890_v2, %v2121_v47  ;;  %v2137_v45 = vor.u32 %v2136_v10, %v2135_v33 }
 0x2ff   : > { %v1986_v58 = vsel %vm6205_vm10, %v5968_v4, %v1983_v50  ;;  %vm2138_vm1 = vcmp.lt.s32.totalorder %v2119_v26, 1  ;;  %vm2140_vm2 = vcmp.lt.s32.totalorder %v2119_v26, 3  ;;  %vm2141_vm3 = vcmp.lt.s32.totalorder %v2119_v26, 4 }
 0x300   : > { %4641 = vcosq.f32 %v1986_v58  ;;  %v4299_v59 = vadd.s32 4294967294, %v2070_v39  ;;  %v2146_v1 = vsel %vm2138_vm1, %v2125_v17, %v2128_v46  ;;  %v2143_v42 = vsel %vm2141_vm3, %v2131_v18, 2102212464 }
 0x301   : > { %4643 = vsinq.f32 %v1986_v58  ;;  %v2147_v36 = vsel %vm2141_vm3, %v2134_v37, 920167782  ;;  %v2150_v13 = vsel %vm2138_vm1, %v2128_v46, %v2131_v18  ;;  %v2151_v38 = vsel %vm2141_vm3, %v2137_v45, 1326507024 }
 0x302   : > { %v7933_v22 = vand.u32 2147483647, %v5972_v0  ;;  %vm4300_vm5 = vcmp.lt.s32.totalorder %v4299_v59, 0  ;;  %vm2139_vm6 = vcmp.lt.s32.totalorder %v2119_v26, 2  ;;  %v2148_v47 = vsel %vm2140_vm2, %v2131_v18, %v2147_v36 }
 0x303   : > { %v2152_v35 = vsel %vm2140_vm2, %v2134_v37, %v2151_v38  ;;  %v2073_v61 = vsel %vm4300_vm5, 0, %v4299_v59  ;;  %v2088_v34 = vsub.s32 4, %v6228_v41  ;;  %v2149_v48 = vsel %vm2139_vm6, %v2146_v1, %v2148_v47 }
 0x304   : > { %vm6271_vm4 = vcmp.le.f32.partialorder %v7933_v22, 0.7853982  ;;  %v2153_v15 = vsel %vm2139_vm6, %v2150_v13, %v2152_v35  ;;  %vm1993_vm7 = vcmp.lt.s32.totalorder %v6235_v6, 2  ;;  %v2074_v50 = vsub.s32 32, %v2073_v61 }
 0x305   : > { %v2078_v23 = vsub.s32 4294967266, %v2073_v61  ;;  %v2142_v33 = vsel %vm2138_vm1, %v2122_v43, %v2125_v17  ;;  %v2144_v58 = vsel %vm2140_vm2, %v2128_v46, %v2143_v42  ;;  %v2075_v45 = vshll.u32 %v6243_v49, %v2073_v61 }
 0x306   : > { %v6284_v10 = vmul.u32.u64.low %v6263_v31, %v2153_v15  ;;  %v6285_v18 = vmul.u32.u64.high %v6263_v31, %v2153_v15, %v6284_v10  ;;  %v6288_v37 = vmul.u32.u64.low %v6263_v31, %v2149_v48  ;;  %v6289_v39 = vmul.u32.u64.high %v6263_v31, %v2149_v48, %v6288_v37 }
 0x307   : > { %v2076_v59 = vshrl.u32 %v2058_v29, %v2074_v50  ;;  %v2079_v1 = vadd.s32 127, %v2078_v23  ;;  %v4305_v36 = vadd.s32 4294967169, %v2214_v20  ;;  %vm1994_vm8 = vcmp.eq.s32.totalorder %v6235_v6, 0 }
 0x308   : > { %vm1997_vm9 = vcmp.eq.s32.totalorder %v6235_v6, 2  ;;  %v2145_v17 = vsel %vm2139_vm6, %v2142_v33, %v2144_v58  ;;  %v6298_v46 = vadd.f32 %v6224_v3, %v6239_v63  ;;  %v2089_v49 = vsel %vm2004_vm0, %v2088_v34, %v6228_v41 }
 0x309   : > { %v2077_v42 = vor.u32 %v2076_v59, %v2075_v45  ;;  %v2080_v13 = vshll.u32 %v2079_v1, 23  ;;  %v2220_v29 = vadd.s32 1, %v4305_v36  ;;  %vm2163_vm10 = vc.u32 %v6285_v18, %v6288_v37 }
 0x30a   : > { %v4642_v43 = vpop.eup %4641  ;;  %v2164_v26 = vadd.s32 1, %v6289_v39  ;;  %v2210_v22 = vand.u32 2147483647, %v6232_v60  ;;  %v2161_v35 = vmul.u32 %v6263_v31, %v2145_v17  ;;  %v2091_v41 = vsel %vm6271_vm4, 0, %v2089_v49 }
 0x30b   : > { %v4644_v38 = vpop.eup %4643  ;;  %v1998_v20 = vxor.u32 2147483648, %v4642_v43  ;;  %v2081_v63 = vor.u32 4788187, %v2080_v13  ;;  %vm2221_vm12 = vcmp.gt.s32.totalorder %v2220_v29, 0  ;;  %v2084_v23 = vcvt.s32.f32 %v2077_v42 }
 0x30c   : > { %v1995_v47 = vxor.u32 2147483648, %v4644_v38  ;;  %v2165_v34 = vsel %vm2163_vm10, %v2164_v26, %v6289_v39  ;;  %v2222_v48 = vsel %vm2221_vm12, %v2220_v29, 0  ;;  %vm1990_vm11 = vweird.f32 %v5968_v4 }
 0x30d   : > { %v1999_v61 = vsel %vm1997_vm9, %v1998_v20, %v4644_v38  ;;  %v2082_v50 = vand.u32 2147483647, %v2081_v63  ;;  %v2166_v33 = vadd.s32 %v2165_v34, %v2161_v35  ;;  %v2224_v58 = vand.u32 31, %v2222_v48 }
 0x30e   : > { %v1996_v15 = vsel %vm1994_vm8, %v4642_v43, %v1995_v47  ;;  %v6319_v10 = vadd.f32 1e-06, %v6147_v44  ;;  %v2217_v39 = vand.u32 8388607, %v2210_v22  ;;  %v2095_v36 = vadd.s32 3, %v2091_v41 }
 0x30f   : > { %v2000_v31 = vsel %vm1993_vm7, %v1996_v15, %v1999_v61  ;;  %v2085_v59 = vmul.f32 %v2084_v23, %v2082_v50  ;;  %v2167_v1 = vadd.s32 536870912, %v2166_v33  ;;  %v2223_v17 = vshrl.u32 %v2222_v48, 5 }
 0x310   : > { %v2001_v45 = vsel %vm1990_vm11, nan, %v2000_v31  ;;  %v2225_v43 = vsub.s32 32, %v2224_v58  ;;  %v2317_v42 = vand.u32 2139095040, %v6298_v46  ;;  %v2227_v6 = vshll.u32 %v7890_v2, %v2224_v58 }
 0x311   : > { %2429 = vst [vmem:[%s5442_s18 + $0x58] sm:$0xff] %v2001_v45  ;;  %v2086_v4 = vxor.u32 2147483648, %v2085_v59  ;;  %v6325_v13 = vshrl.u32 %v2167_v1, 30  ;;  %v2230_v49 = vshll.u32 %v7886_v7, %v2224_v58  ;;  %v2233_v20 = vshll.u32 %v7888_v9, %v2224_v58 }
 0x312   : > { %v2228_v29 = vshrl.u32 %v7886_v7, %v2225_v43  ;;  %v2231_v38 = vshrl.u32 %v7888_v9, %v2225_v43  ;;  %v2234_v26 = vshrl.u32 %v4838_v11, %v2225_v43  ;;  %v2236_v35 = vshll.u32 %v4838_v11, %v2224_v58 }
 0x313   : > { %v2087_v47 = vsel %vm2004_vm0, %v2086_v4, %v2085_v59  ;;  %v2169_v63 = vshll.u32 %v6325_v13, 30  ;;  %v2237_v61 = vshrl.u32 %v4839_v14, %v2225_v43  ;;  %v6341_v34 = vand.u32 3, %v2095_v36 }
 0x314   : > { %v2090_v41 = vsel %vm6271_vm4, %v5972_v0, %v2087_v47  ;;  %v2229_v48 = vor.u32 %v2228_v29, %v2227_v6  ;;  %v2235_v15 = vor.u32 %v2234_v26, %v2233_v20  ;;  %v2232_v23 = vor.u32 %v2231_v38, %v2230_v49 }
 0x315   : > { %4645 = vcosq.f32 %v2090_v41  ;;  %v6343_v50 = vsub.s32 %v2166_v33, %v2169_v63  ;;  %v2238_v31 = vor.u32 %v2237_v61, %v2236_v35  ;;  %v2218_v45 = vor.u32 8388608, %v2217_v39 }
 0x316   : > { %4647 = vsinq.f32 %v2090_v41  ;;  %v2239_v59 = vshll.u32 %v4839_v14, %v2224_v58  ;;  %v2240_v1 = vshrl.u32 %v4840_v30, %v2225_v43  ;;  %vm2245_vm13 = vcmp.lt.s32.totalorder %v2223_v17, 4 }
 0x317   : > { %v2172_v4 = vsub.s32 0, %v6343_v50  ;;  %v2314_v32 = vand.u32 2147483647, %v6298_v46  ;;  %v2318_v36 = vshrl.u32 %v2317_v42, 23  ;;  %v2226_v6 = vshrl.u32 %v7890_v2, %v2225_v43 }
 0x318   : > { %v2241_v29 = vor.u32 %v2240_v1, %v2239_v59  ;;  %vm2242_vm14 = vcmp.lt.s32.totalorder %v2223_v17, 1  ;;  %v2247_v33 = vsel %vm2245_vm13, %v2235_v15, 2102212464  ;;  %vm2244_vm15 = vcmp.lt.s32.totalorder %v2223_v17, 3 }
 0x319   : > { %v4302_v49 = vmin.u32 %v2172_v4, %v6343_v50  ;;  %v2250_v38 = vsel %vm2242_vm14, %v2229_v48, %v2232_v23  ;;  %v2251_v39 = vsel %vm2245_vm13, %v2238_v31, 920167782  ;;  %v2254_v58 = vsel %vm2242_vm14, %v2232_v23, %v2235_v15 }
 0x31a   : > { %v2252_v20 = vsel %vm2244_vm15, %v2235_v15, %v2251_v39  ;;  %v2255_v26 = vsel %vm2245_vm13, %v2241_v29, 1326507024  ;;  %v2258_v47 = vshll.u32 %v2218_v45, 8  ;;  %vm2097_vm0 = vcmp.lt.s32.totalorder %v6341_v34, 2 }
 0x31b   : > { %v2174_v63 = vclz %v4302_v49  ;;  %vm2243_vm1 = vcmp.lt.s32.totalorder %v2223_v17, 2  ;;  %v2246_v35 = vsel %vm2242_vm14, %v2226_v6, %v2229_v48  ;;  %v2248_v42 = vsel %vm2244_vm15, %v2232_v23, %v2247_v33 }
 0x31c   : > { %vm2094_vm2 = vweird.f32 %v5972_v0  ;;  %vm2098_vm3 = vcmp.eq.s32.totalorder %v6341_v34, 0  ;;  %v2253_v43 = vsel %vm2243_vm1, %v2250_v38, %v2252_v20  ;;  %v2256_v61 = vsel %vm2244_vm15, %v2238_v31, %v2255_v26 }
 0x31d   : > { %v4309_v41 = vadd.s32 4294967169, %v2318_v36  ;;  %v4303_v59 = vadd.s32 4294967294, %v2174_v63  ;;  %v2257_v1 = vsel %vm2243_vm1, %v2254_v58, %v2256_v61  ;;  %v2249_v15 = vsel %vm2243_vm1, %v2246_v35, %v2248_v42 }
 0x31e   : > { %v6354_v4 = vmul.u32.u64.low %v2258_v47, %v2253_v43  ;;  %v6355_v39 = vmul.u32.u64.high %v2258_v47, %v2253_v43, %v6354_v4  ;;  %v6358_v45 = vmul.u32.u64.low %v2258_v47, %v2257_v1  ;;  %v6359_v29 = vmul.u32.u64.high %v2258_v47, %v2257_v1, %v6358_v45 }
 0x31f   : > { %v2324_v17 = vadd.s32 1, %v4309_v41  ;;  %v4646_v48 = vpop.eup %4645  ;;  %vm2101_vm4 = vcmp.eq.s32.totalorder %v6341_v34, 2  ;;  %v2162_v23 = vadd.s32 %v6288_v37, %v6285_v18  ;;  %vm4304_vm5 = vcmp.lt.s32.totalorder %v4303_v59, 0 }
 0x320   : > { %v6366_v31 = vand.u32 8388607, %v2314_v32  ;;  %v4648_v36 = vpop.eup %4647  ;;  %v2102_v6 = vxor.u32 2147483648, %v4646_v48  ;;  %v2177_v33 = vsel %vm4304_vm5, 0, %v4303_v59  ;;  %v2192_v49 = vsub.s32 4, %v6325_v13 }
 0x321   : > { %vm2325_vm6 = vcmp.gt.s32.totalorder %v2324_v17, 0  ;;  %v2099_v38 = vxor.u32 2147483648, %v4648_v36  ;;  %v2178_v20 = vsub.s32 32, %v2177_v33  ;;  %v2182_v58 = vsub.s32 4294967266, %v2177_v33 }
 0x322   : > { %v2265_v26 = vmul.u32 %v2258_v47, %v2249_v15  ;;  %v2103_v63 = vsel %vm2101_vm4, %v2102_v6, %v4648_v36  ;;  %v2179_v35 = vshll.u32 %v6343_v50, %v2177_v33  ;;  %vm2267_vm7 = vc.u32 %v6359_v29, %v6354_v4 }
 0x323   : > { %v2268_v18 = vadd.s32 1, %v6355_v39  ;;  %v2100_v37 = vsel %vm2098_vm3, %v4646_v48, %v2099_v38  ;;  %v2180_v42 = vshrl.u32 %v2162_v23, %v2178_v20  ;;  %v2183_v43 = vadd.s32 127, %v2182_v58 }
 0x324   : > { %v2326_v61 = vsel %vm2325_vm6, %v2324_v17, 0  ;;  %v2104_v41 = vsel %vm2097_vm0, %v2100_v37, %v2103_v63  ;;  %vm2108_vm8 = vcmp.lt.s32.totalorder %v6151_v56, 0  ;;  %v2322_v17 = vor.u32 8388608, %v6366_v31 }
 0x325   : > { %v2269_v47 = vsel %vm2267_vm7, %v2268_v18, %v6355_v39  ;;  %v2328_v50 = vand.u32 31, %v2326_v61  ;;  %v2105_v59 = vsel %vm2094_vm2, nan, %v2104_v41  ;;  %v2181_v1 = vor.u32 %v2180_v42, %v2179_v35 }
 0x326   : > { %v2184_v15 = vshll.u32 %v2183_v43, 23  ;;  %v2270_v45 = vadd.s32 %v2269_v47, %v2265_v26  ;;  %v2193_v48 = vsel %vm2108_vm8, %v2192_v49, %v6325_v13  ;;  %2430 = vst [vmem:[%s5442_s18 + $0x60] sm:$0xff] %v2105_v59  ;;  %v574_v23 = vlaneseq }
 0x327   : > { %v2329_v34 = vsub.s32 32, %v2328_v50  ;;  %v2331_v39 = vshll.u32 %v7890_v2, %v2328_v50  ;;  %4649 = vrcp.f32 %v6319_v10  ;;  %v2334_v33 = vshll.u32 %v7886_v7, %v2328_v50 }
 0x328   : > { %v2185_v36 = vor.u32 4788187, %v2184_v15  ;;  %v2271_v6 = vadd.s32 536870912, %v2270_v45  ;;  %v2188_v49 = vcvt.s32.f32 %v2181_v1  ;;  %v2327_v26 = vshrl.u32 %v2326_v61, 5 }
 0x329   : > { %v2332_v0 = vshrl.u32 %v7886_v7, %v2329_v34  ;;  %v2335_v38 = vshrl.u32 %v7888_v9, %v2329_v34  ;;  %v2338_v20 = vshrl.u32 %v4838_v11, %v2329_v34  ;;  %v2341_v31 = vshrl.u32 %v4839_v14, %v2329_v34 }
 0x32a   : > { %v2186_v13 = vand.u32 2147483647, %v2185_v36  ;;  %v6392_v58 = vshrl.u32 %v2271_v6, 30  ;;  %v2337_v63 = vshll.u32 %v7888_v9, %v2328_v50  ;;  %v2340_v35 = vshll.u32 %v4838_v11, %v2328_v50 }
 0x32b   : > { %v2344_v10 = vshrl.u32 %v4840_v30, %v2329_v34  ;;  %v2333_v42 = vor.u32 %v2332_v0, %v2331_v39  ;;  %v2336_v43 = vor.u32 %v2335_v38, %v2334_v33  ;;  %vm6401_vm9 = vcmp.le.f32.partialorder %v2106_v25, 0.7853982 }
 0x32c   : > { %v2189_v18 = vmul.f32 %v2188_v49, %v2186_v13  ;;  %v2273_v37 = vshll.u32 %v6392_v58, 30  ;;  %v2339_v47 = vor.u32 %v2338_v20, %v2337_v63  ;;  %v2342_v59 = vor.u32 %v2341_v31, %v2340_v35 }
 0x32d   : > { %v2343_v61 = vshll.u32 %v4839_v14, %v2328_v50  ;;  %v2195_v15 = vsel %vm6401_vm9, 0, %v2193_v48  ;;  %v6410_v6 = vshrl.u32 %v574_v23, 7  ;;  %v2330_v39 = vshrl.u32 %v7890_v2, %v2329_v34 }
 0x32e   : > { %v2190_v1 = vxor.u32 2147483648, %v2189_v18  ;;  %v6408_v36 = vsub.s32 %v2270_v45, %v2273_v37  ;;  %vm2346_vm10 = vcmp.lt.s32.totalorder %v2327_v26, 1  ;;  %v2362_v25 = vshll.u32 %v2322_v17, 8 }
 0x32f   : > { %v2345_v0 = vor.u32 %v2344_v10, %v2343_v61  ;;  %vm2349_vm12 = vcmp.lt.s32.totalorder %v2327_v26, 4  ;;  %v2354_v50 = vsel %vm2346_vm10, %v2333_v42, %v2336_v43  ;;  %vm2348_vm11 = vcmp.lt.s32.totalorder %v2327_v26, 3 }
 0x330   : > { %v2191_v33 = vsel %vm2108_vm8, %v2190_v1, %v2189_v18  ;;  %v2276_v38 = vsub.s32 0, %v6408_v36  ;;  %v2351_v48 = vsel %vm2349_vm12, %v2339_v47, 2102212464  ;;  %v2355_v23 = vsel %vm2349_vm12, %v2342_v59, 920167782 }
 0x331   : > { %v2194_v45 = vsel %vm6401_vm9, %v6151_v56, %v2191_v33  ;;  %v4650_v20 = vpop.eup %4649  ;;  %vm2347_vm13 = vcmp.lt.s32.totalorder %v2327_v26, 2  ;;  %v2356_v17 = vsel %vm2348_vm11, %v2339_v47, %v2355_v23  ;;  %v2358_v49 = vsel %vm2346_vm10, %v2336_v43, %v2339_v47 }
 0x332   : > { %4651 = vcosq.f32 %v2194_v45  ;;  %v4306_v34 = vmin.u32 %v2276_v38, %v6408_v36  ;;  %v2357_v13 = vsel %vm2347_vm13, %v2354_v50, %v2356_v17  ;;  %v2359_v31 = vsel %vm2349_vm12, %v2345_v0, 1326507024 }
 0x333   : > { %4653 = vsinq.f32 %v2194_v45  ;;  %v2199_v63 = vadd.s32 3, %v2195_v15  ;;  %v2350_v10 = vsel %vm2346_vm10, %v2330_v39, %v2333_v42  ;;  %v2352_v18 = vsel %vm2348_vm11, %v2336_v43, %v2351_v48 }
 0x334   : > { %v2278_v35 = vclz %v4306_v34  ;;  %v2360_v37 = vsel %vm2348_vm11, %v2342_v59, %v2359_v31  ;;  %v6427_v41 = vmul.u32.u64.low %v2362_v25, %v2357_v13  ;;  %v6428_v61 = vmul.u32.u64.high %v2362_v25, %v2357_v13, %v6427_v41 }
 0x335   : > { %v571_v1 = vmul.f32 6.2831855, %v4650_v20  ;;  %v2361_v38 = vsel %vm2347_vm13, %v2358_v49, %v2360_v37  ;;  %v7882_v50 = vsub.s32 7, %v6410_v6  ;;  %v2353_v42 = vsel %vm2347_vm13, %v2350_v10, %v2352_v18 }
 0x336   : > { %v4307_v33 = vadd.s32 4294967294, %v2278_v35  ;;  %v6433_v47 = vmul.u32.u64.low %v2362_v25, %v2361_v38  ;;  %v6434_v0 = vmul.u32.u64.high %v2362_v25, %v2361_v38, %v6433_v47  ;;  %v2200_v59 = vand.u32 3, %v2199_v63 }
 0x337   : > { %v577_v43 = vrot.slane %v571_v1, %v7882_v50  ;;  %v2372_v39 = vadd.s32 1, %v6428_v61  ;;  %v2266_v45 = vadd.s32 %v6354_v4, %v6359_v29  ;;  %v2369_v17 = vmul.u32 %v2362_v25, %v2353_v42  ;;  %v4729_v4 = vld [vmem:[%s7871_s4] sm:$0xff] }
 0x338   : > { %vm4308_vm14 = vcmp.lt.s32.totalorder %v4307_v33, 0  ;;  %vm2371_vm15 = vc.u32 %v6434_v0, %v6427_v41  ;;  %vm2205_vm0 = vcmp.eq.s32.totalorder %v2200_v59, 2  ;;  %vm2202_vm1 = vcmp.eq.s32.totalorder %v2200_v59, 0 }
 0x339   : > { %v2281_v15 = vsel %vm4308_vm14, 0, %v4307_v33  ;;  %v582_v20 = vmul.f32 %v577_v43, %v6131_v19  ;;  %v584_v26 = vmul.f32 %v577_v43, %v6147_v44  ;;  %v2373_v63 = vsel %vm2371_vm15, %v2372_v39, %v6428_v61 }
 0x33a   : > { %v2282_v48 = vsub.s32 32, %v2281_v15  ;;  %v2286_v23 = vsub.s32 4294967266, %v2281_v15  ;;  %v2283_v34 = vshll.u32 %v6408_v36, %v2281_v15  ;;  %v2374_v10 = vadd.s32 %v2373_v63, %v2369_v17  ;;  %v4730_v36 = vld [vmem:[%s7871_s4 + $0x10] sm:$0xff] }
 0x33b   : > { %v608_v29 = vmul.f32 %v4729_v4, %v582_v20  ;;  %v610_v25 = vmul.f32 %v4730_v36, %v584_v26  ;;  %vm2201_vm2 = vcmp.lt.s32.totalorder %v2200_v59, 2  ;;  %vm2198_vm3 = vweird.f32 %v6151_v56 }
 0x33c   : > { %v4652_v13 = vpop.eup %4651  ;;  %v2284_v49 = vshrl.u32 %v2266_v45, %v2282_v48  ;;  %v2287_v31 = vadd.s32 127, %v2286_v23  ;;  %v2375_v1 = vadd.s32 536870912, %v2374_v10  ;;  %v2296_v23 = vsub.s32 4, %v6392_v58 }
 0x33d   : > { %v4654_v35 = vpop.eup %4653  ;;  %v2206_v19 = vxor.u32 2147483648, %v4652_v13  ;;  %v612_v33 = vadd.f32 %v610_v25, %v608_v29  ;;  %vm2212_vm4 = vcmp.lt.s32.totalorder %v6232_v60, 0  ;;  %vm2211_vm5 = vcmp.le.f32.partialorder %v2210_v22, 0.7853982 }
 0x33e   : > { %v2203_v18 = vxor.u32 2147483648, %v4654_v35  ;;  %v2285_v44 = vor.u32 %v2284_v49, %v2283_v34  ;;  %v2288_v37 = vshll.u32 %v2287_v31, 23  ;;  %v2376_v43 = vshrl.u32 %v2375_v1, 30 }
 0x33f   : > { %v2207_v61 = vsel %vm2205_vm0, %v2206_v19, %v4654_v35  ;;  %v613_v15 = vrot.slane %v612_v33, 4  ;;  %v2297_v49 = vsel %vm2212_vm4, %v2296_v23, %v6392_v58  ;;  %vm2316_vm7 = vcmp.lt.s32.totalorder %v6298_v46, 0 }
 0x340   : > { %v2204_v38 = vsel %vm2202_vm1, %v4652_v13, %v2203_v18  ;;  %v2289_v47 = vor.u32 4788187, %v2288_v37  ;;  %v2292_v48 = vcvt.s32.f32 %v2285_v44  ;;  %v2377_v20 = vshll.u32 %v2376_v43, 30 }
 0x341   : > { %v2208_v42 = vsel %vm2201_vm2, %v2204_v38, %v2207_v61  ;;  %v614_v34 = vadd.f32 %v613_v15, %v612_v33  ;;  %v2299_v29 = vsel %vm2211_vm5, 0, %v2297_v49  ;;  %v2400_v44 = vsub.s32 4, %v2376_v43 }
 0x342   : > { %v2209_v39 = vsel %vm2198_vm3, nan, %v2208_v42  ;;  %v2290_v45 = vand.u32 2147483647, %v2289_v47  ;;  %v2378_v26 = vsub.s32 %v2374_v10, %v2377_v20  ;;  %v2303_v25 = vadd.s32 3, %v2299_v29 }
 0x343   : > { %2431 = vst [vmem:[%s5442_s18 + $0x68] sm:$0xff] %v2209_v39  ;;  %v615_v59 = vrot.slane %v614_v34, 2  ;;  %v2370_v33 = vadd.s32 %v6427_v41, %v6434_v0  ;;  %v2401_v42 = vsel %vm2316_vm7, %v2400_v44, %v2376_v43  ;;  %vm2302_vm8 = vweird.f32 %v6232_v60 }
 0x344   : > { %v2293_v17 = vmul.f32 %v2292_v48, %v2290_v45  ;;  %v2380_v56 = vsub.s32 0, %v2378_v26  ;;  %v2304_v37 = vand.u32 3, %v2303_v25  ;;  %vm6479_vm9 = vcmp.le.f32.partialorder %v2314_v32, 0.7853982 }
 0x345   : > { %v616_v31 = vadd.f32 %v615_v59, %v614_v34  ;;  %v2403_v43 = vsel %vm6479_vm9, 0, %v2401_v42  ;;  %v6492_v34 = vpop.f32.mrb[5].mxu0  ;;  %vm2406_vm3 = vweird.f32 %v6298_v46 }
 0x346   : > { %v2294_v13 = vxor.u32 2147483648, %v2293_v17  ;;  %v4310_v35 = vmin.u32 %v2380_v56, %v2378_v26  ;;  %vm2305_vm10 = vcmp.lt.s32.totalorder %v2304_v37, 2  ;;  %vm2309_vm12 = vcmp.eq.s32.totalorder %v2304_v37, 2 }
 0x347   : > { %v617_v19 = vrot.slane %v616_v31, 1  ;;  %vm2306_vm11 = vcmp.eq.s32.totalorder %v2304_v37, 0 }
 0x348   : > { %v2295_v63 = vsel %vm2212_vm4, %v2294_v13, %v2293_v17  ;;  %v2382_v36 = vclz %v4310_v35  ;;  %v2407_v35 = vadd.s32 3, %v2403_v43 }
 0x349   : > { %v2298_v4 = vsel %vm2211_vm5, %v6232_v60, %v2295_v63  ;;  %v6462_v10 = vadd.f32 %v617_v19, %v616_v31 }
 0x34a   : > { %4655 = vcosq.f32 %v2298_v4  ;;  %v4311_v18 = vadd.s32 4294967294, %v2382_v36  ;;  %v6510_v43 = vand.u32 3, %v2407_v35 }
 0x34b   : > { %4657 = vsinq.f32 %v2298_v4  ;;  %v2434_v58 = vmul.f32 %v5060_v53, %v6462_v10  ;;  %v2436_v22 = vmul.f32 %v5064_v55, %v6462_v10  ;;  %v2438_v20 = vmul.f32 %v5056_v51, %v6462_v10 }
 0x34c   : > { %vm4312_vm6 = vcmp.lt.s32.totalorder %v4311_v18, 0  ;;  %vm2409_vm4 = vcmp.lt.s32.totalorder %v6510_v43, 2  ;;  %vm2410_vm5 = vcmp.eq.s32.totalorder %v6510_v43, 0 }
 0x34d   : > { %v2385_v61 = vsel %vm4312_vm6, 0, %v4311_v18  ;;  %v6470_v1 = vadd.f32 %v2434_v58, %v5084_v16  ;;  %v6484_v39 = vadd.f32 %v2436_v22, %v5094_v21  ;;  %v6498_v36 = vadd.f32 %v2438_v20, %v5102_v24 }
 0x34e   : > { %v2386_v38 = vsub.s32 32, %v2385_v61  ;;  %v2390_v47 = vsub.s32 4294967266, %v2385_v61  ;;  %v2387_v45 = vshll.u32 %v2378_v26, %v2385_v61  ;;  %vm2413_vm6 = vcmp.eq.s32.totalorder %v6510_v43, 2 }
 0x34f   : > { %v2466_v41 = vand.u32 2147483647, %v6470_v1  ;;  %v2469_v32 = vand.u32 2139095040, %v6470_v1  ;;  %v7884_v63 = vand.u32 2147483647, %v6484_v39  ;;  %v2677_v18 = vand.u32 2139095040, %v6484_v39 }
 0x350   : > { %v2388_v48 = vshrl.u32 %v2370_v33, %v2386_v38  ;;  %v2391_v23 = vadd.s32 127, %v2390_v47 }
 0x351   : > { %v2470_v56 = vshrl.u32 %v2469_v32, 23  ;;  %v2473_v31 = vand.u32 8388607, %v2466_v41  ;;  %v2678_v47 = vshrl.u32 %v2677_v18, 23  ;;  %v6506_v42 = vand.u32 8388607, %v7884_v63 }
 0x352   : > { %v2389_v26 = vor.u32 %v2388_v48, %v2387_v45  ;;  %v2392_v13 = vshll.u32 %v2391_v23, 23  ;;  %v2885_v23 = vand.u32 2139095040, %v6498_v36 }
 0x353   : > { %v4313_v25 = vadd.s32 4294967169, %v2470_v56  ;;  %v2474_v61 = vor.u32 8388608, %v2473_v31  ;;  %v4321_v48 = vadd.s32 4294967169, %v2678_v47  ;;  %v2682_v60 = vor.u32 8388608, %v6506_v42 }
 0x354   : > { %v4656_v0 = vpop.eup %4655  ;;  %v2393_v29 = vor.u32 4788187, %v2392_v13  ;;  %v2396_v22 = vcvt.s32.f32 %v2389_v26  ;;  %v7883_v13 = vand.u32 2147483647, %v6498_v36 }
 0x355   : > { %v4658_v17 = vpop.eup %4657  ;;  %v2310_v59 = vxor.u32 2147483648, %v4656_v0  ;;  %v2476_v38 = vadd.s32 1, %v4313_v25  ;;  %v6512_v32 = vshll.u32 %v2474_v61, 8  ;;  %v2684_v26 = vadd.s32 1, %v4321_v48 }
 0x356   : > { %v2307_v49 = vxor.u32 2147483648, %v4658_v17  ;;  %v2394_v58 = vand.u32 2147483647, %v2393_v29 }
 0x357   : > { %v2311_v4 = vsel %vm2309_vm12, %v2310_v59, %v4658_v17  ;;  %vm2477_vm13 = vcmp.gt.s32.totalorder %v2476_v38, 0  ;;  %vm2685_vm2 = vcmp.gt.s32.totalorder %v2684_v26, 0 }
 0x358   : > { %v2308_v19 = vsel %vm2306_vm11, %v4656_v0, %v2307_v49  ;;  %v2397_v45 = vmul.f32 %v2396_v22, %v2394_v58  ;;  %v2478_v0 = vsel %vm2477_vm13, %v2476_v38, 0  ;;  %vm2468_vm13 = vcmp.lt.s32.totalorder %v6470_v1, 0 }
 0x359   : > { %v2312_v44 = vsel %vm2305_vm10, %v2308_v19, %v2311_v4  ;;  %v2480_v20 = vand.u32 31, %v2478_v0  ;;  %v2479_v59 = vshrl.u32 %v2478_v0, 5  ;;  %v2886_v4 = vshrl.u32 %v2885_v23, 23 }
 0x35a   : > { %v2313_v33 = vsel %vm2302_vm8, nan, %v2312_v44  ;;  %v2398_v37 = vxor.u32 2147483648, %v2397_v45 }
 0x35b   : > { %2432 = vst [vmem:[%s5442_s18 + $0x70] sm:$0xff] %v2313_v33  ;;  %v2481_v56 = vsub.s32 32, %v2480_v20  ;;  %v2483_v31 = vshll.u32 %v7890_v2, %v2480_v20  ;;  %v2486_v29 = vshll.u32 %v7886_v7, %v2480_v20  ;;  %v2489_v35 = vshll.u32 %v7888_v9, %v2480_v20 }
 0x35c   : > { %v2399_v17 = vsel %vm2316_vm7, %v2398_v37, %v2397_v45  ;;  %v2492_v19 = vshll.u32 %v4838_v11, %v2480_v20  ;;  %v2495_v44 = vshll.u32 %v4839_v14, %v2480_v20  ;;  %vm2498_vm14 = vcmp.lt.s32.totalorder %v2479_v59, 1 }
 0x35d   : > { %v2402_v49 = vsel %vm6479_vm9, %v6298_v46, %v2399_v17  ;;  %v2484_v25 = vshrl.u32 %v7886_v7, %v2481_v56  ;;  %v2487_v18 = vshrl.u32 %v7888_v9, %v2481_v56  ;;  %v2482_v15 = vshrl.u32 %v7890_v2, %v2481_v56 }
 0x35e   : > { %4659 = vcosq.f32 %v2402_v49  ;;  %v2490_v58 = vshrl.u32 %v4838_v11, %v2481_v56  ;;  %v2493_v22 = vshrl.u32 %v4839_v14, %v2481_v56  ;;  %v2496_v61 = vshrl.u32 %v4840_v30, %v2481_v56 }
 0x35f   : > { %4661 = vsinq.f32 %v2402_v49  ;;  %v2485_v33 = vor.u32 %v2484_v25, %v2483_v31  ;;  %v2488_v38 = vor.u32 %v2487_v18, %v2486_v29  ;;  %vm2499_vm15 = vcmp.lt.s32.totalorder %v2479_v59, 2 }
 0x360   : > { %v2491_v47 = vor.u32 %v2490_v58, %v2489_v35  ;;  %v2494_v42 = vor.u32 %v2493_v22, %v2492_v19  ;;  %v2497_v45 = vor.u32 %v2496_v61, %v2495_v44  ;;  %vm2500_vm0 = vcmp.lt.s32.totalorder %v2479_v59, 3 }
 0x361   : > { %vm2501_vm1 = vcmp.lt.s32.totalorder %v2479_v59, 4  ;;  %v2502_v48 = vsel %vm2498_vm14, %v2482_v15, %v2485_v33  ;;  %v2506_v23 = vsel %vm2498_vm14, %v2485_v33, %v2488_v38  ;;  %v2686_v29 = vsel %vm2685_vm2, %v2684_v26, 0 }
 0x362   : > { %v2503_v37 = vsel %vm2501_vm1, %v2491_v47, 2102212464  ;;  %v2507_v0 = vsel %vm2501_vm1, %v2494_v42, 920167782  ;;  %v2510_v20 = vsel %vm2498_vm14, %v2488_v38, %v2491_v47  ;;  %v2511_v17 = vsel %vm2501_vm1, %v2497_v45, 1326507024 }
 0x363   : > { %v2504_v49 = vsel %vm2500_vm0, %v2488_v38, %v2503_v37  ;;  %v2508_v56 = vsel %vm2500_vm0, %v2491_v47, %v2507_v0  ;;  %v2512_v31 = vsel %vm2500_vm0, %v2494_v42, %v2511_v17  ;;  %v6550_v26 = vmul.f32 %v5066_v57, %v6462_v10 }
 0x364   : > { %v2505_v35 = vsel %vm2499_vm15, %v2502_v48, %v2504_v49  ;;  %v2509_v19 = vsel %vm2499_vm15, %v2506_v23, %v2508_v56  ;;  %v2513_v25 = vsel %vm2499_vm15, %v2510_v20, %v2512_v31  ;;  %v2688_v59 = vand.u32 31, %v2686_v29 }
 0x365   : > { %v6538_v18 = vmul.u32.u64.low %v6512_v32, %v2513_v25  ;;  %v6539_v44 = vmul.u32.u64.high %v6512_v32, %v2513_v25, %v6538_v18  ;;  %v6542_v15 = vmul.u32.u64.low %v6512_v32, %v2509_v19  ;;  %v6543_v58 = vmul.u32.u64.high %v6512_v32, %v2509_v19, %v6542_v15 }
 0x366   : > { %v6552_v38 = vshll.u32 %v2682_v60, 8  ;;  %v4329_v47 = vadd.s32 4294967169, %v2886_v4  ;;  %v6556_v42 = vand.u32 8388607, %v7883_v13  ;;  %v2521_v48 = vmul.u32 %v6512_v32, %v2505_v35 }
 0x367   : > { %v2687_v23 = vshrl.u32 %v2686_v29, 5  ;;  %v2689_v37 = vsub.s32 32, %v2688_v59  ;;  %vm2523_vm7 = vc.u32 %v6539_v44, %v6542_v15  ;;  %v2524_v20 = vadd.s32 1, %v6543_v58 }
 0x368   : > { %v4660_v22 = vpop.eup %4659  ;;  %v2691_v60 = vshll.u32 %v7890_v2, %v2688_v59  ;;  %v2694_v49 = vshll.u32 %v7886_v7, %v2688_v59  ;;  %v2697_v29 = vshll.u32 %v7888_v9, %v2688_v59  ;;  %vm6635_vm1 = vcmp.le.f32.partialorder %v2466_v41, 0.7853982 }
 0x369   : > { %v4662_v61 = vpop.eup %4661  ;;  %v2414_v33 = vxor.u32 2147483648, %v4660_v22  ;;  %v2692_v17 = vshrl.u32 %v7886_v7, %v2689_v37  ;;  %v2695_v32 = vshrl.u32 %v7888_v9, %v2689_v37  ;;  %v2525_v31 = vsel %vm2523_vm7, %v2524_v20, %v6543_v58 }
 0x36a   : > { %v2411_v45 = vxor.u32 2147483648, %v4662_v61  ;;  %v2698_v35 = vshrl.u32 %v4838_v11, %v2689_v37  ;;  %v2526_v25 = vadd.s32 %v2525_v31, %v2521_v48  ;;  %vm2706_vm8 = vcmp.lt.s32.totalorder %v2687_v23, 1 }
 0x36b   : > { %v2415_v0 = vsel %vm2413_vm6, %v2414_v33, %v4662_v61  ;;  %v2693_v18 = vor.u32 %v2692_v17, %v2691_v60  ;;  %v2700_v33 = vshll.u32 %v4838_v11, %v2688_v59  ;;  %v2703_v58 = vshll.u32 %v4839_v14, %v2688_v59 }
 0x36c   : > { %v2412_v4 = vsel %vm2410_vm5, %v4660_v22, %v2411_v45  ;;  %v2696_v22 = vor.u32 %v2695_v32, %v2694_v49  ;;  %v2699_v61 = vor.u32 %v2698_v35, %v2697_v29  ;;  %v2701_v45 = vshrl.u32 %v4839_v14, %v2689_v37 }
 0x36d   : > { %v2416_v56 = vsel %vm2409_vm4, %v2412_v4, %v2415_v0  ;;  %v2527_v43 = vadd.s32 536870912, %v2526_v25  ;;  %v2704_v0 = vshrl.u32 %v4840_v30, %v2689_v37  ;;  %vm2707_vm9 = vcmp.lt.s32.totalorder %v2687_v23, 2 }
 0x36e   : > { %v2417_v19 = vsel %vm2406_vm3, nan, %v2416_v56  ;;  %v2690_v20 = vshrl.u32 %v7890_v2, %v2689_v37  ;;  %v2702_v46 = vor.u32 %v2701_v45, %v2700_v33  ;;  %vm2709_vm10 = vcmp.lt.s32.totalorder %v2687_v23, 4 }
 0x36f   : > { %2433 = vst [vmem:[%s5442_s18 + $0x78] sm:$0xff] %v2417_v19  ;;  %v2892_v48 = vadd.s32 1, %v4329_v47  ;;  %v2528_v60 = vshrl.u32 %v2527_v43, 30  ;;  %v2705_v4 = vor.u32 %v2704_v0, %v2703_v58  ;;  %v2711_v17 = vsel %vm2709_vm10, %v2699_v61, 2102212464 }
 0x370   : > { %v2714_v49 = vsel %vm2706_vm8, %v2693_v18, %v2696_v22  ;;  %vm2708_vm12 = vcmp.lt.s32.totalorder %v2687_v23, 3  ;;  %v2715_v32 = vsel %vm2709_vm10, %v2702_v46, 920167782  ;;  %v2718_v56 = vsel %vm2706_vm8, %v2696_v22, %v2699_v61 }
 0x371   : > { %vm2893_vm11 = vcmp.gt.s32.totalorder %v2892_v48, 0  ;;  %v2529_v31 = vshll.u32 %v2528_v60, 30  ;;  %v2710_v59 = vsel %vm2706_vm8, %v2690_v20, %v2693_v18  ;;  %v2716_v29 = vsel %vm2708_vm12, %v2699_v61, %v2715_v32 }
 0x372   : > { %v2719_v35 = vsel %vm2709_vm10, %v2705_v4, 1326507024  ;;  %v2712_v19 = vsel %vm2708_vm12, %v2696_v22, %v2711_v17  ;;  %v2717_v37 = vsel %vm2707_vm9, %v2714_v49, %v2716_v29  ;;  %v2894_v47 = vsel %vm2893_vm11, %v2892_v48, 0 }
 0x373   : > { %v2720_v33 = vsel %vm2708_vm12, %v2702_v46, %v2719_v35  ;;  %v6585_v45 = vsub.s32 %v2526_v25, %v2529_v31  ;;  %v2890_v58 = vor.u32 8388608, %v6556_v42  ;;  %v2552_v0 = vsub.s32 4, %v2528_v60 }
 0x374   : > { %v2721_v43 = vsel %vm2707_vm9, %v2718_v56, %v2720_v33  ;;  %v2896_v63 = vand.u32 31, %v2894_v47  ;;  %v2713_v22 = vsel %vm2707_vm9, %v2710_v59, %v2712_v19  ;;  %v6602_v25 = vadd.f32 %v6550_v26, %v5118_v40 }
 0x375   : > { %v6590_v50 = vmul.u32.u64.low %v6552_v38, %v2721_v43  ;;  %v6591_v13 = vmul.u32.u64.high %v6552_v38, %v2721_v43, %v6590_v50  ;;  %v2532_v18 = vsub.s32 0, %v6585_v45  ;;  %v6608_v48 = vshll.u32 %v2890_v58, 8 }
 0x376   : > { %v6596_v61 = vmul.u32.u64.low %v6552_v38, %v2717_v37  ;;  %v6597_v20 = vmul.u32.u64.high %v6552_v38, %v2717_v37, %v6596_v61  ;;  %v2897_v42 = vsub.s32 32, %v2896_v63  ;;  %v2522_v50 = vadd.s32 %v6542_v15, %v6539_v44 }
 0x377   : > { %v4314_v46 = vmin.u32 %v2532_v18, %v6585_v45  ;;  %v6612_v23 = vsel %vm2468_vm13, %v2552_v0, %v2528_v60  ;;  %v2729_v4 = vmul.u32 %v6552_v38, %v2713_v22  ;;  %v6615_v17 = vshrl.u32 %v2894_v47, 5 }
 0x378   : > { %v2900_v26 = vshrl.u32 %v7886_v7, %v2897_v42  ;;  %vm2731_vm14 = vc.u32 %v6591_v13, %v6596_v61  ;;  %v2899_v44 = vshll.u32 %v7890_v2, %v2896_v63  ;;  %v2902_v15 = vshll.u32 %v7886_v7, %v2896_v63 }
 0x379   : > { %v2534_v49 = vclz %v4314_v46  ;;  %v2732_v32 = vadd.s32 1, %v6597_v20  ;;  %v2903_v56 = vshrl.u32 %v7888_v9, %v2897_v42  ;;  %v2905_v60 = vshll.u32 %v7888_v9, %v2896_v63 }
 0x37a   : > { %v2906_v38 = vshrl.u32 %v4838_v11, %v2897_v42  ;;  %v2908_v59 = vshll.u32 %v4838_v11, %v2896_v63  ;;  %v2909_v29 = vshrl.u32 %v4839_v14, %v2897_v42  ;;  %v2912_v35 = vshrl.u32 %v4840_v30, %v2897_v42 }
 0x37b   : > { %v4315_v31 = vadd.s32 4294967294, %v2534_v49  ;;  %v2733_v19 = vsel %vm2731_vm14, %v2732_v32, %v6597_v20  ;;  %v2898_v37 = vshrl.u32 %v7890_v2, %v2897_v42  ;;  %v2901_v33 = vor.u32 %v2900_v26, %v2899_v44 }
 0x37c   : > { %v2911_v47 = vshll.u32 %v4839_v14, %v2896_v63  ;;  %v2734_v43 = vadd.s32 %v2733_v19, %v2729_v4  ;;  %v2904_v58 = vor.u32 %v2903_v56, %v2902_v15  ;;  %v2910_v0 = vor.u32 %v2909_v29, %v2908_v59 }
 0x37d   : > { %vm4316_vm15 = vcmp.lt.s32.totalorder %v4315_v31, 0  ;;  %v2907_v22 = vor.u32 %v2906_v38, %v2905_v60  ;;  %vm2914_vm0 = vcmp.lt.s32.totalorder %v6615_v17, 1  ;;  %vm2917_vm2 = vcmp.lt.s32.totalorder %v6615_v17, 4 }
 0x37e   : > { %v2537_v18 = vsel %vm4316_vm15, 0, %v4315_v31  ;;  %v2913_v46 = vor.u32 %v2912_v35, %v2911_v47  ;;  %v2735_v26 = vadd.s32 536870912, %v2734_v43  ;;  %vm2676_vm3 = vcmp.lt.s32.totalorder %v6484_v39, 0 }
 0x37f   : > { %v2538_v20 = vsub.s32 32, %v2537_v18  ;;  %v2542_v42 = vsub.s32 4294967266, %v2537_v18  ;;  %v2539_v63 = vshll.u32 %v6585_v45, %v2537_v18  ;;  %vm2915_vm4 = vcmp.lt.s32.totalorder %v6615_v17, 2 }
 0x380   : > { %vm2916_vm5 = vcmp.lt.s32.totalorder %v6615_v17, 3  ;;  %v2923_v4 = vsel %vm2917_vm2, %v2910_v0, 920167782  ;;  %v2736_v41 = vshrl.u32 %v2735_v26, 30  ;;  %v2922_v32 = vsel %vm2914_vm0, %v2901_v33, %v2904_v58 }
 0x381   : > { %v2540_v44 = vshrl.u32 %v2522_v50, %v2538_v20  ;;  %v2543_v15 = vadd.s32 127, %v2542_v42  ;;  %v2919_v56 = vsel %vm2917_vm2, %v2907_v22, 2102212464  ;;  %v2924_v60 = vsel %vm2916_vm5, %v2907_v22, %v2923_v4 }
 0x382   : > { %v2927_v38 = vsel %vm2917_vm2, %v2913_v46, 1326507024  ;;  %v3093_v45 = vand.u32 2139095040, %v6602_v25  ;;  %v2737_v29 = vshll.u32 %v2736_v41, 30  ;;  %v2926_v35 = vsel %vm2914_vm0, %v2904_v58, %v2907_v22 }
 0x383   : > { %v2541_v31 = vor.u32 %v2540_v44, %v2539_v63  ;;  %v2544_v59 = vshll.u32 %v2543_v15, 23  ;;  %v2918_v50 = vsel %vm2914_vm0, %v2898_v37, %v2901_v33  ;;  %v2925_v19 = vsel %vm2915_vm4, %v2922_v32, %v2924_v60 }
 0x384   : > { %v2928_v47 = vsel %vm2916_vm5, %v2910_v0, %v2927_v38  ;;  %v3094_v18 = vshrl.u32 %v3093_v45, 23  ;;  %v6657_v46 = vsub.s32 %v2734_v43, %v2737_v29  ;;  %v2760_v42 = vsub.s32 4, %v2736_v41 }
 0x385   : > { %v2545_v20 = vor.u32 4788187, %v2544_v59  ;;  %v2920_v26 = vsel %vm2916_vm5, %v2904_v58, %v2919_v56  ;;  %v2929_v22 = vsel %vm2915_vm4, %v2926_v35, %v2928_v47  ;;  %v7885_v33 = vand.u32 2147483647, %v6602_v25 }
 0x386   : > { %v6664_v63 = vmul.u32.u64.low %v6608_v48, %v2925_v19  ;;  %v6665_v37 = vmul.u32.u64.high %v6608_v48, %v2925_v19, %v6664_v63  ;;  %v2548_v44 = vcvt.s32.f32 %v2541_v31  ;;  %v2740_v0 = vsub.s32 0, %v6657_v46 }
 0x387   : > { %v2546_v4 = vand.u32 2147483647, %v2545_v20  ;;  %v4337_v15 = vadd.s32 4294967169, %v3094_v18  ;;  %v2555_v43 = vsel %vm6635_vm1, 0, %v6612_v23  ;;  %v2921_v58 = vsel %vm2915_vm4, %v2918_v50, %v2920_v26 }
 0x388   : > { %v6675_v32 = vmul.u32.u64.low %v6608_v48, %v2929_v22  ;;  %v6676_v56 = vmul.u32.u64.high %v6608_v48, %v2929_v22, %v6675_v32  ;;  %v4322_v38 = vmin.u32 %v2740_v0, %v6657_v46  ;;  %v2761_v45 = vsel %vm2676_vm3, %v2760_v42, %v2736_v41 }
 0x389   : > { %v2549_v60 = vmul.f32 %v2548_v44, %v2546_v4  ;;  %v3100_v31 = vadd.s32 1, %v4337_v15  ;;  %v2442_v59 = vmul.f32 %v5080_v5, %v6462_v10  ;;  %v7942_v29 = vand.u32 2147483647, %v6484_v39 }
 0x38a   : > { %v2940_v17 = vadd.s32 1, %v6665_v37  ;;  %v2559_v50 = vadd.s32 3, %v2555_v43  ;;  %v2742_v19 = vclz %v4322_v38  ;;  %v2937_v47 = vmul.u32 %v6608_v48, %v2921_v58 }
 0x38b   : > { %vm6685_vm6 = vcmp.le.f32.partialorder %v7942_v29, 0.7853982  ;;  %v2550_v35 = vxor.u32 2147483648, %v2549_v60  ;;  %vm2939_vm7 = vc.u32 %v6676_v56, %v6664_v63  ;;  %v3097_v18 = vand.u32 8388607, %v7885_v33 }
 0x38c   : > { %v2763_v41 = vsel %vm6685_vm6, 0, %v2761_v45  ;;  %vm3101_vm8 = vcmp.gt.s32.totalorder %v3100_v31, 0  ;;  %v4323_v42 = vadd.s32 4294967294, %v2742_v19  ;;  %v2941_v26 = vsel %vm2939_vm7, %v2940_v17, %v6665_v37 }
 0x38d   : > { %v2551_v20 = vsel %vm2468_vm13, %v2550_v35, %v2549_v60  ;;  %v3102_v22 = vsel %vm3101_vm8, %v3100_v31, 0  ;;  %v2444_v4 = vmul.f32 %v5058_v52, %v6462_v10  ;;  %v2942_v44 = vadd.s32 %v2941_v26, %v2937_v47 }
 0x38e   : > { %v2554_v48 = vsel %vm6635_vm1, %v6470_v1, %v2551_v20  ;;  %v3104_v0 = vand.u32 31, %v3102_v22  ;;  %v6704_v15 = vand.u32 3, %v2559_v50  ;;  %vm4324_vm9 = vcmp.lt.s32.totalorder %v4323_v42, 0 }
 0x38f   : > { %4663 = vcosq.f32 %v2554_v48  ;;  %v2767_v43 = vadd.s32 3, %v2763_v41  ;;  %v2745_v58 = vsel %vm4324_vm9, 0, %v4323_v42  ;;  %v2943_v32 = vadd.s32 536870912, %v2942_v44 }
 0x390   : > { %4665 = vsinq.f32 %v2554_v48  ;;  %v3105_v60 = vsub.s32 32, %v3104_v0  ;;  %v2730_v37 = vadd.s32 %v6596_v61, %v6591_v13  ;;  %v2746_v38 = vsub.s32 32, %v2745_v58 }
 0x391   : > { %v2750_v45 = vsub.s32 4294967266, %v2745_v58  ;;  %v3098_v31 = vor.u32 8388608, %v3097_v18  ;;  %v6710_v49 = vmul.f32 %v5082_v12, %v6462_v10  ;;  %v6713_v29 = vadd.f32 %v2442_v59, %v5342_v27 }
 0x392   : > { %v6716_v17 = vadd.f32 %v2444_v4, %v5349_v28  ;;  %v6718_v35 = vshrl.u32 %v2943_v32, 30  ;;  %vm2565_vm10 = vcmp.eq.s32.totalorder %v6704_v15, 2  ;;  %v2747_v50 = vshll.u32 %v6657_v46, %v2745_v58 }
 0x393   : > { %v2748_v13 = vshrl.u32 %v2730_v37, %v2746_v38  ;;  %v2751_v61 = vadd.s32 127, %v2750_v45  ;;  %v6722_v19 = vand.u32 3, %v2767_v43  ;;  %vm2562_vm12 = vcmp.eq.s32.totalorder %v6704_v15, 0 }
 0x394   : > { %v6726_v47 = vadd.s32 %v6664_v63, %v6676_v56  ;;  %v2945_v59 = vshll.u32 %v6718_v35, 30  ;;  %v3108_v41 = vshrl.u32 %v7886_v7, %v3105_v60  ;;  %v3111_v18 = vshrl.u32 %v7888_v9, %v3105_v60 }
 0x395   : > { %vm2561_vm11 = vcmp.lt.s32.totalorder %v6704_v15, 2  ;;  %v2749_v20 = vor.u32 %v2748_v13, %v2747_v50  ;;  %v2752_v42 = vshll.u32 %v2751_v61, 23  ;;  %v6732_v46 = vshrl.u32 %v3102_v22, 5 }
 0x396   : > { %v6734_v26 = vshll.u32 %v3098_v31, 8  ;;  %vm2558_vm13 = vweird.f32 %v6470_v1  ;;  %v6737_v4 = vsub.s32 %v2942_v44, %v2945_v59  ;;  %v3107_v63 = vshll.u32 %v7890_v2, %v3104_v0 }
 0x397   : > { %v3110_v56 = vshll.u32 %v7886_v7, %v3104_v0  ;;  %v3114_v48 = vshrl.u32 %v4838_v11, %v3105_v60  ;;  %v2753_v43 = vor.u32 4788187, %v2752_v42  ;;  %v3106_v58 = vshrl.u32 %v7890_v2, %v3105_v60 }
 0x398   : > { %v3113_v32 = vshll.u32 %v7888_v9, %v3104_v0  ;;  %v3117_v22 = vshrl.u32 %v4839_v14, %v3105_v60  ;;  %v2948_v37 = vsub.s32 0, %v6737_v4  ;;  %v2968_v38 = vsub.s32 4, %v6718_v35 }
 0x399   : > { %v3109_v45 = vor.u32 %v3108_v41, %v3107_v63  ;;  %v3112_v44 = vor.u32 %v3111_v18, %v3110_v56  ;;  %v4664_v31 = vpop.eup %4663  ;;  %v2754_v50 = vand.u32 2147483647, %v2753_v43  ;;  %v2756_v13 = vcvt.s32.f32 %v2749_v20 }
 0x39a   : > { %v3116_v61 = vshll.u32 %v4838_v11, %v3104_v0  ;;  %v3120_v59 = vshrl.u32 %v4840_v30, %v3105_v60  ;;  %v4666_v42 = vpop.eup %4665  ;;  %v2566_v33 = vxor.u32 2147483648, %v4664_v31  ;;  %v4330_v7 = vmin.u32 %v2948_v37, %v6737_v4 }
 0x39b   : > { %v3115_v9 = vor.u32 %v3114_v48, %v3113_v32  ;;  %v3119_v2 = vshll.u32 %v4839_v14, %v3104_v0  ;;  %v2563_v28 = vxor.u32 2147483648, %v4666_v42  ;;  %v2757_v12 = vmul.f32 %v2756_v13, %v2754_v50 }
 0x39c   : > { %v3118_v52 = vor.u32 %v3117_v22, %v3116_v61  ;;  %vm3122_vm14 = vcmp.lt.s32.totalorder %v6732_v46, 1  ;;  %v2567_v41 = vsel %vm2565_vm10, %v2566_v33, %v4666_v42  ;;  %vm2884_vm15 = vcmp.lt.s32.totalorder %v6498_v36, 0 }
 0x39d   : > { %v2950_v18 = vclz %v4330_v7  ;;  %vm3123_vm0 = vcmp.lt.s32.totalorder %v6732_v46, 2  ;;  %vm3124_vm1 = vcmp.lt.s32.totalorder %v6732_v46, 3  ;;  %v2564_v60 = vsel %vm2562_vm12, %v4664_v31, %v2563_v28 }
 0x39e   : > { %v2758_v0 = vxor.u32 2147483648, %v2757_v12  ;;  %v3121_v20 = vor.u32 %v3120_v59, %v3119_v2  ;;  %vm3125_vm2 = vcmp.lt.s32.totalorder %v6732_v46, 4  ;;  %v2568_v63 = vsel %vm2561_vm11, %v2564_v60, %v2567_v41 }
 0x39f   : > { %v4331_v56 = vadd.s32 4294967294, %v2950_v18  ;;  %v3126_v33 = vsel %vm3122_vm14, %v3106_v58, %v3109_v45  ;;  %v3130_v7 = vsel %vm3122_vm14, %v3109_v45, %v3112_v44  ;;  %v2569_v48 = vsel %vm2558_vm13, nan, %v2568_v63 }
 0x3a0   : > { %v2759_v28 = vsel %vm2676_vm3, %v2758_v0, %v2757_v12  ;;  %v3127_v2 = vsel %vm3125_vm2, %v3115_v9, 2102212464  ;;  %v3131_v15 = vsel %vm3125_vm2, %v3118_v52, 920167782  ;;  %v3134_v1 = vsel %vm3122_vm14, %v3112_v44, %v3115_v9  ;;  %4130 = vst [vmem:[%s5442_s18 + $0x80] sm:$0xff] %v2569_v48 }
 0x3a1   : > { %v2762_v43 = vsel %vm6685_vm6, %v6484_v39, %v2759_v28  ;;  %vm4332_vm4 = vcmp.lt.s32.totalorder %v4331_v56, 0  ;;  %v3132_v58 = vsel %vm3124_vm1, %v3115_v9, %v3131_v15  ;;  %v3135_v22 = vsel %vm3125_vm2, %v3121_v20, 1326507024 }
 0x3a2   : > { %4667 = vcosq.f32 %v2762_v43  ;;  %v2953_v12 = vsel %vm4332_vm4, 0, %v4331_v56  ;;  %v3133_v32 = vsel %vm3123_vm0, %v3130_v7, %v3132_v58  ;;  %v3128_v45 = vsel %vm3124_vm1, %v3112_v44, %v3127_v2 }
 0x3a3   : > { %4669 = vsinq.f32 %v2762_v43  ;;  %v2954_v37 = vsub.s32 32, %v2953_v12  ;;  %v2958_v23 = vsub.s32 4294967266, %v2953_v12  ;;  %v2955_v31 = vshll.u32 %v6737_v4, %v2953_v12 }
 0x3a4   : > { %v3136_v9 = vsel %vm3124_vm1, %v3118_v52, %v3135_v22  ;;  %v6792_v50 = vmul.u32.u64.low %v6734_v26, %v3133_v32  ;;  %v6793_v13 = vmul.u32.u64.high %v6734_v26, %v3133_v32, %v6792_v50  ;;  %v3301_v41 = vand.u32 2139095040, %v6713_v29 }
 0x3a5   : > { %v2956_v61 = vshrl.u32 %v6726_v47, %v2954_v37  ;;  %v2959_v59 = vadd.s32 127, %v2958_v23  ;;  %v3137_v42 = vsel %vm3123_vm0, %v3134_v1, %v3136_v9  ;;  %v6801_v44 = vadd.f32 %v6710_v49, %v5960_v8 }
 0x3a6   : > { %v2969_v52 = vsel %vm2884_vm15, %v2968_v38, %v6718_v35  ;;  %v6807_v4 = vmul.u32.u64.low %v6734_v26, %v3137_v42  ;;  %v6808_v18 = vmul.u32.u64.high %v6734_v26, %v3137_v42, %v6807_v4  ;;  %v3129_v0 = vsel %vm3123_vm0, %v3126_v33, %v3128_v45 }
 0x3a7   : > { %v2957_v60 = vor.u32 %v2956_v61, %v2955_v31  ;;  %v2960_v47 = vshll.u32 %v2959_v59, 23  ;;  %v3302_v20 = vshrl.u32 %v3301_v41, 23  ;;  %v7945_v63 = vand.u32 2147483647, %v6498_v36 }
 0x3a8   : > { %v3148_v49 = vadd.s32 1, %v6793_v13  ;;  %v3298_v35 = vand.u32 2147483647, %v6713_v29  ;;  %v3509_v38 = vand.u32 2139095040, %v6716_v17  ;;  %vm2766_vm5 = vweird.f32 %v6484_v39 }
 0x3a9   : > { %vm6814_vm3 = vcmp.le.f32.partialorder %v7945_v63, 0.7853982  ;;  %vm2769_vm6 = vcmp.lt.s32.totalorder %v6722_v19, 2  ;;  %v2961_v7 = vor.u32 4788187, %v2960_v47  ;;  %v4345_v33 = vadd.s32 4294967169, %v3302_v20 }
 0x3aa   : > { %v2971_v46 = vsel %vm6814_vm3, 0, %v2969_v52  ;;  %v2964_v48 = vcvt.s32.f32 %v2957_v60  ;;  %v3145_v28 = vmul.u32 %v6734_v26, %v3129_v0  ;;  %vm3147_vm7 = vc.u32 %v6808_v18, %v6792_v50 }
 0x3ab   : > { %v3506_v2 = vand.u32 2147483647, %v6716_v17  ;;  %v2962_v15 = vand.u32 2147483647, %v2961_v7  ;;  %v3149_v43 = vsel %vm3147_vm7, %v3148_v49, %v6793_v13  ;;  %v3308_v58 = vadd.s32 1, %v4345_v33 }
 0x3ac   : > { %v3510_v1 = vshrl.u32 %v3509_v38, 23  ;;  %v4668_v12 = vpop.eup %4667  ;;  %vm2770_vm8 = vcmp.eq.s32.totalorder %v6722_v19, 0  ;;  %v2975_v32 = vadd.s32 3, %v2971_v46  ;;  %v3150_v22 = vadd.s32 %v3149_v43, %v3145_v28 }
 0x3ad   : > { %v3305_v37 = vand.u32 8388607, %v3298_v35  ;;  %v4670_v23 = vpop.eup %4669  ;;  %vm2773_vm9 = vcmp.eq.s32.totalorder %v6722_v19, 2  ;;  %v2774_v26 = vxor.u32 2147483648, %v4668_v12  ;;  %v2965_v45 = vmul.f32 %v2964_v48, %v2962_v15 }
 0x3ae   : > { %vm3309_vm10 = vcmp.gt.s32.totalorder %v3308_v58, 0  ;;  %v2771_v31 = vxor.u32 2147483648, %v4670_v23  ;;  %v3151_v9 = vadd.s32 536870912, %v3150_v22  ;;  %v3513_v13 = vand.u32 8388607, %v3506_v2 }
 0x3af   : > { %v3310_v61 = vsel %vm3309_vm10, %v3308_v58, 0  ;;  %v2775_v59 = vsel %vm2773_vm9, %v2774_v26, %v4670_v23  ;;  %v2966_v42 = vxor.u32 2147483648, %v2965_v45  ;;  %v4353_v52 = vadd.s32 4294967169, %v3510_v1 }
 0x3b0   : > { %v3312_v41 = vand.u32 31, %v3310_v61  ;;  %v2772_v4 = vsel %vm2770_vm8, %v4668_v12, %v2771_v31  ;;  %v6837_v60 = vand.u32 3, %v2975_v32  ;;  %vm3092_vm12 = vcmp.lt.s32.totalorder %v6602_v25, 0 }
 0x3b1   : > { %v3152_v47 = vshrl.u32 %v3151_v9, 30  ;;  %v3306_v0 = vor.u32 8388608, %v3305_v37  ;;  %v2776_v20 = vsel %vm2769_vm6, %v2772_v4, %v2775_v59  ;;  %v2967_v63 = vsel %vm2884_vm15, %v2966_v42, %v2965_v45 }
 0x3b2   : > { %v6845_v49 = vadd.s32 %v6792_v50, %v6808_v18  ;;  %v3313_v38 = vsub.s32 32, %v3312_v41  ;;  %v2777_v7 = vsel %vm2766_vm5, nan, %v2776_v20  ;;  %v2970_v46 = vsel %vm6814_vm3, %v6498_v36, %v2967_v63 }
 0x3b3   : > { %v3153_v33 = vshll.u32 %v3152_v47, 30  ;;  %v3514_v48 = vor.u32 8388608, %v3513_v13  ;;  %4671 = vcosq.f32 %v2970_v46  ;;  %v7948_v28 = vmov 683565275   ;;  %4132 = vst [vmem:[%s5442_s18 + $0x90] sm:$0xff] %v2777_v7 }
 0x3b4   : > { %v3315_v19 = vshll.u32 %v7948_v28, %v3312_v41  ;;  %v7949_v15 = vmov 2475754826   ;;  %v3516_v58 = vadd.s32 1, %v4353_v52  ;;  %4673 = vsinq.f32 %v2970_v46 }
 0x3b5   : > { %v3316_v43 = vshrl.u32 %v7949_v15, %v3313_v38  ;;  %v7950_v50 = vand.u32 2147483647, %v6602_v25  ;;  %v6861_v39 = vsub.s32 %v3150_v22, %v3153_v33  ;;  %v3318_v56 = vshll.u32 %v7949_v15, %v3312_v41 }
 0x3b6   : > { %v7953_v1 = vmov 2131351028   ;;  %v3176_v32 = vsub.s32 4, %v3152_v47  ;;  %v3311_v37 = vshrl.u32 %v3310_v61, 5  ;;  %v3322_v26 = vshrl.u32 %v4838_v11, %v3313_v38 }
 0x3b7   : > { %vm6857_vm11 = vcmp.le.f32.partialorder %v7950_v50, 0.7853982  ;;  %v3319_v12 = vshrl.u32 %v7953_v1, %v3313_v38  ;;  %v3321_v23 = vshll.u32 %v7953_v1, %v3312_v41  ;;  %v3156_v45 = vsub.s32 0, %v6861_v39 }
 0x3b8   : > { %v3317_v31 = vor.u32 %v3316_v43, %v3315_v19  ;;  %v3324_v13 = vshll.u32 %v4838_v11, %v3312_v41  ;;  %vm2981_vm13 = vcmp.eq.s32.totalorder %v6837_v60, 2  ;;  %v3325_v59 = vshrl.u32 %v4839_v14, %v3313_v38 }
 0x3b9   : > { %v3320_v9 = vor.u32 %v3319_v12, %v3318_v56  ;;  %v3323_v22 = vor.u32 %v3322_v26, %v3321_v23  ;;  %v3327_v42 = vshll.u32 %v4839_v14, %v3312_v41  ;;  %v3328_v52 = vshrl.u32 %v4840_v30, %v3313_v38 }
 0x3ba   : > { %vm2978_vm14 = vcmp.eq.s32.totalorder %v6837_v60, 0  ;;  %v4338_v61 = vmin.u32 %v3156_v45, %v6861_v39  ;;  %v6875_v4 = vshll.u32 %v3306_v0, 8  ;;  %vm3517_vm15 = vcmp.gt.s32.totalorder %v3516_v58, 0 }
 0x3bb   : > { %v6877_v20 = vshll.u32 %v3514_v48, 8  ;;  %vm2977_vm0 = vcmp.lt.s32.totalorder %v6837_v60, 2  ;;  %v6882_v63 = vsel %vm3092_vm12, %v3176_v32, %v3152_v47  ;;  %v3314_v7 = vshrl.u32 %v7948_v28, %v3313_v38 }
 0x3bc   : > { %v3326_v41 = vor.u32 %v3325_v59, %v3324_v13  ;;  %v3329_v46 = vor.u32 %v3328_v52, %v3327_v42  ;;  %vm2974_vm1 = vweird.f32 %v6498_v36  ;;  %v3158_v33 = vclz %v4338_v61 }
 0x3bd   : > { %vm3330_vm2 = vcmp.lt.s32.totalorder %v3311_v37, 1  ;;  %vm3332_vm4 = vcmp.lt.s32.totalorder %v3311_v37, 3  ;;  %vm3333_vm3 = vcmp.lt.s32.totalorder %v3311_v37, 4  ;;  %v4672_v32 = vpop.eup %4671  ;;  %v3179_v38 = vsel %vm6857_vm11, 0, %v6882_v63 }
 0x3be   : > { %v3334_v0 = vsel %vm3330_vm2, %v3314_v7, %v3317_v31  ;;  %v3335_v19 = vsel %vm3333_vm3, %v3323_v22, 2102212464  ;;  %v3338_v48 = vsel %vm3330_vm2, %v3317_v31, %v3320_v9  ;;  %v3339_v43 = vsel %vm3333_vm3, %v3326_v41, 920167782  ;;  %v4674_v45 = vpop.eup %4673 }
 0x3bf   : > { %v4339_v50 = vadd.s32 4294967294, %v3158_v33  ;;  %v3336_v56 = vsel %vm3332_vm4, %v3320_v9, %v3335_v19  ;;  %v3340_v47 = vsel %vm3332_vm4, %v3323_v22, %v3339_v43  ;;  %v3342_v12 = vsel %vm3330_vm2, %v3320_v9, %v3323_v22 }
 0x3c0   : > { %vm3331_vm5 = vcmp.lt.s32.totalorder %v3311_v37, 2  ;;  %v3343_v23 = vsel %vm3333_vm3, %v3329_v46, 1326507024  ;;  %v3518_v26 = vsel %vm3517_vm15, %v3516_v58, 0  ;;  %v2982_v13 = vxor.u32 2147483648, %v4672_v32 }
 0x3c1   : > { %vm4340_vm6 = vcmp.lt.s32.totalorder %v4339_v50, 0  ;;  %v3337_v31 = vsel %vm3331_vm5, %v3334_v0, %v3336_v56  ;;  %v3344_v59 = vsel %vm3332_vm4, %v3326_v41, %v3343_v23  ;;  %v2979_v42 = vxor.u32 2147483648, %v4674_v45 }
 0x3c2   : > { %v3161_v52 = vsel %vm4340_vm6, 0, %v4339_v50  ;;  %v3341_v61 = vsel %vm3331_vm5, %v3338_v48, %v3340_v47  ;;  %v3345_v7 = vsel %vm3331_vm5, %v3342_v12, %v3344_v59  ;;  %v2983_v9 = vsel %vm2981_vm13, %v2982_v13, %v4674_v45 }
 0x3c3   : > { %v3162_v22 = vsub.s32 32, %v3161_v52  ;;  %v3166_v33 = vsub.s32 4294967266, %v3161_v52  ;;  %v6895_v19 = vshrl.u32 %v3518_v26, 5  ;;  %v2980_v58 = vsel %vm2978_vm14, %v4672_v32, %v2979_v42 }
 0x3c4   : > { %v6900_v46 = vmul.u32.u64.low %v6875_v4, %v3345_v7  ;;  %v6901_v0 = vmul.u32.u64.high %v6875_v4, %v3345_v7, %v6900_v46  ;;  %v3520_v37 = vand.u32 31, %v3518_v26  ;;  %v2984_v41 = vsel %vm2977_vm0, %v2980_v58, %v2983_v9 }
 0x3c5   : > { %v3163_v48 = vshll.u32 %v6861_v39, %v3161_v52  ;;  %v3164_v43 = vshrl.u32 %v6845_v49, %v3162_v22  ;;  %v3167_v50 = vadd.s32 127, %v3166_v33  ;;  %v2985_v56 = vsel %vm2974_vm1, nan, %v2984_v41 }
 0x3c6   : > { %v6910_v47 = vmul.u32.u64.low %v6875_v4, %v3341_v61  ;;  %v6911_v12 = vmul.u32.u64.high %v6875_v4, %v3341_v61, %v6910_v47  ;;  %v3521_v32 = vsub.s32 32, %v3520_v37  ;;  %v3353_v26 = vmul.u32 %v6875_v4, %v3337_v31  ;;  %4134 = vst [vmem:[%s5442_s18 + $0xa0] sm:$0xff] %v2985_v56 }
 0x3c7   : > { %v3165_v23 = vor.u32 %v3164_v43, %v3163_v48  ;;  %v3168_v45 = vshll.u32 %v3167_v50, 23  ;;  %vm3538_vm7 = vcmp.lt.s32.totalorder %v6895_v19, 1  ;;  %v3523_v60 = vshll.u32 %v7948_v28, %v3520_v37 }
 0x3c8   : > { %vm3355_vm8 = vc.u32 %v6901_v0, %v6910_v47  ;;  %v3524_v36 = vshrl.u32 %v7949_v15, %v3521_v32  ;;  %v3526_v49 = vshll.u32 %v7949_v15, %v3520_v37  ;;  %v3522_v59 = vshrl.u32 %v7948_v28, %v3521_v32 }
 0x3c9   : > { %v3169_v39 = vor.u32 4788187, %v3168_v45  ;;  %v3172_v13 = vcvt.s32.f32 %v3165_v23  ;;  %v3527_v42 = vshrl.u32 %v7953_v1, %v3521_v32  ;;  %v3356_v4 = vadd.s32 1, %v6911_v12 }
 0x3ca   : > { %v3525_v31 = vor.u32 %v3524_v36, %v3523_v60  ;;  %v3529_v52 = vshll.u32 %v7953_v1, %v3520_v37  ;;  %v3530_v61 = vshrl.u32 %v4838_v11, %v3521_v32  ;;  %v3532_v22 = vshll.u32 %v4838_v11, %v3520_v37 }
 0x3cb   : > { %v3170_v7 = vand.u32 2147483647, %v3169_v39  ;;  %v3528_v9 = vor.u32 %v3527_v42, %v3526_v49  ;;  %v3533_v33 = vshrl.u32 %v4839_v14, %v3521_v32  ;;  %v3357_v58 = vsel %vm3355_vm8, %v3356_v4, %v6911_v12 }
 0x3cc   : > { %v3531_v46 = vor.u32 %v3530_v61, %v3529_v52  ;;  %v3535_v41 = vshll.u32 %v4839_v14, %v3520_v37  ;;  %v3536_v48 = vshrl.u32 %v4840_v30, %v3521_v32  ;;  %v3358_v50 = vadd.s32 %v3357_v58, %v3353_v26 }
 0x3cd   : > { %v3173_v43 = vmul.f32 %v3172_v13, %v3170_v7  ;;  %v3534_v56 = vor.u32 %v3533_v33, %v3532_v22  ;;  %vm3539_vm9 = vcmp.lt.s32.totalorder %v6895_v19, 2  ;;  %vm3540_vm10 = vcmp.lt.s32.totalorder %v6895_v19, 3 }
 0x3ce   : > { %v3537_v23 = vor.u32 %v3536_v48, %v3535_v41  ;;  %vm3541_vm13 = vcmp.lt.s32.totalorder %v6895_v19, 4  ;;  %v3546_v45 = vsel %vm3538_vm7, %v3525_v31, %v3528_v9  ;;  %v3359_v12 = vadd.s32 536870912, %v3358_v50 }
 0x3cf   : > { %v3174_v60 = vxor.u32 2147483648, %v3173_v43  ;;  %v3543_v36 = vsel %vm3541_vm13, %v3531_v46, 2102212464  ;;  %v3547_v49 = vsel %vm3541_vm13, %v3534_v56, 920167782  ;;  %v3542_v37 = vsel %vm3538_vm7, %v3522_v59, %v3525_v31 }
 0x3d0   : > { %v3548_v32 = vsel %vm3540_vm10, %v3531_v46, %v3547_v49  ;;  %v3550_v26 = vsel %vm3538_vm7, %v3528_v9, %v3531_v46  ;;  %v3551_v39 = vsel %vm3541_vm13, %v3537_v23, 1326507024  ;;  %v3360_v42 = vshrl.u32 %v3359_v12, 30 }
 0x3d1   : > { %v3175_v13 = vsel %vm3092_vm12, %v3174_v60, %v3173_v43  ;;  %v3544_v4 = vsel %vm3540_vm10, %v3528_v9, %v3543_v36  ;;  %v3549_v52 = vsel %vm3539_vm9, %v3546_v45, %v3548_v32  ;;  %v3552_v31 = vsel %vm3540_vm10, %v3534_v56, %v3551_v39 }
 0x3d2   : > { %v3178_v59 = vsel %vm6857_vm11, %v6602_v25, %v3175_v13  ;;  %v6958_v61 = vmul.u32.u64.low %v6877_v20, %v3549_v52  ;;  %v6959_v7 = vmul.u32.u64.high %v6877_v20, %v3549_v52, %v6958_v61  ;;  %v3361_v22 = vshll.u32 %v3360_v42, 30 }
 0x3d3   : > { %4675 = vcosq.f32 %v3178_v59  ;;  %v3553_v9 = vsel %vm3539_vm9, %v3550_v26, %v3552_v31  ;;  %v3183_v46 = vadd.s32 3, %v3179_v38  ;;  %v3545_v48 = vsel %vm3539_vm9, %v3542_v37, %v3544_v4 }
 0x3d4   : > { %4677 = vsinq.f32 %v3178_v59  ;;  %v6965_v33 = vmul.u32.u64.low %v6877_v20, %v3553_v9  ;;  %v6966_v58 = vmul.u32.u64.high %v6877_v20, %v3553_v9, %v6965_v33  ;;  %v3362_v41 = vsub.s32 %v3358_v50, %v3361_v22 }
 0x3d5   : > { %v3564_v43 = vadd.s32 1, %v6959_v7  ;;  %v3717_v56 = vand.u32 2139095040, %v6801_v44  ;;  %v2448_v23 = vmul.f32 %v5062_v54, %v6462_v10  ;;  %v3561_v60 = vmul.u32 %v6877_v20, %v3545_v48 }
 0x3d6   : > { %v3364_v45 = vsub.s32 0, %v3362_v41  ;;  %vm3563_vm12 = vc.u32 %v6966_v58, %v6958_v61  ;;  %v3184_v63 = vand.u32 3, %v3183_v46  ;;  %v3384_v50 = vsub.s32 4, %v3360_v42 }
 0x3d7   : > { %v3718_v18 = vshrl.u32 %v3717_v56, 23  ;;  %v3565_v19 = vsel %vm3563_vm12, %v3564_v43, %v6959_v7  ;;  %v3714_v36 = vand.u32 2147483647, %v6801_v44  ;;  %v6984_v37 = vadd.f32 %v2448_v23, %v6224_v3 }
 0x3d8   : > { %v4346_v38 = vmin.u32 %v3364_v45, %v3362_v41  ;;  %v3566_v12 = vadd.s32 %v3565_v19, %v3561_v60  ;;  %vm3182_vm11 = vweird.f32 %v6602_v25  ;;  %vm6989_vm14 = vcmp.le.f32.partialorder %v3298_v35, 0.7853982 }
 0x3d9   : > { %v4361_v49 = vadd.s32 4294967169, %v3718_v18  ;;  %vm3300_vm15 = vcmp.lt.s32.totalorder %v6713_v29, 0  ;;  %vm3185_vm0 = vcmp.lt.s32.totalorder %v3184_v63, 2  ;;  %vm3186_vm1 = vcmp.eq.s32.totalorder %v3184_v63, 0 }
 0x3da   : > { %v3366_v10 = vclz %v4346_v38  ;;  %v3567_v32 = vadd.s32 536870912, %v3566_v12  ;;  %v3385_v4 = vsel %vm3300_vm15, %v3384_v50, %v3360_v42  ;;  %v3721_v35 = vand.u32 8388607, %v3714_v36 }
 0x3db   : > { %v3724_v26 = vadd.s32 1, %v4361_v49  ;;  %vm3189_vm4 = vcmp.eq.s32.totalorder %v3184_v63, 2  ;;  %v3354_v22 = vadd.s32 %v6910_v47, %v6901_v0  ;;  %v3387_v46 = vsel %vm6989_vm14, 0, %v3385_v4 }
 0x3dc   : > { %v4347_v13 = vadd.s32 4294967294, %v3366_v10  ;;  %v6996_v31 = vshrl.u32 %v3567_v32, 30  ;;  %v3722_v18 = vor.u32 8388608, %v3721_v35  ;;  %v3925_v0 = vand.u32 2139095040, %v6984_v37 }
 0x3dd   : > { %v4676_v39 = vpop.eup %4675  ;;  %vm3725_vm2 = vcmp.gt.s32.totalorder %v3724_v26, 0  ;;  %vm3508_vm7 = vcmp.lt.s32.totalorder %v6716_v17, 0  ;;  %vm7080_vm13 = vcmp.le.f32.partialorder %v3506_v2, 0.7853982  ;;  %v569_v2 = vadd.f32 1e-06, %v6492_v34 }
 0x3de   : > { %v4678_v52 = vpop.eup %4677  ;;  %v3190_v59 = vxor.u32 2147483648, %v4676_v39  ;;  %vm4348_vm3 = vcmp.lt.s32.totalorder %v4347_v13, 0  ;;  %v3569_v42 = vshll.u32 %v6996_v31, 30  ;;  %v3726_v23 = vsel %vm3725_vm2, %v3724_v26, 0 }
 0x3df   : > { %v3187_v7 = vxor.u32 2147483648, %v4678_v52  ;;  %v3369_v33 = vsel %vm4348_vm3, 0, %v4347_v13  ;;  %v7013_v10 = vshrl.u32 %v3726_v23, 5  ;;  %v3728_v32 = vand.u32 31, %v3726_v23 }
 0x3e0   : > { %v3191_v9 = vsel %vm3189_vm4, %v3190_v59, %v4678_v52  ;;  %v3370_v43 = vsub.s32 32, %v3369_v33  ;;  %v3374_v56 = vsub.s32 4294967266, %v3369_v33  ;;  %v7007_v60 = vsub.s32 %v3566_v12, %v3569_v42 }
 0x3e1   : > { %v3188_v48 = vsel %vm3186_vm1, %v4676_v39, %v3187_v7  ;;  %v3371_v38 = vshll.u32 %v3362_v41, %v3369_v33  ;;  %v3391_v39 = vadd.s32 3, %v3387_v46  ;;  %v3562_v12 = vadd.s32 %v6958_v61, %v6966_v58 }
 0x3e2   : > { %v3192_v45 = vsel %vm3185_vm0, %v3188_v48, %v3191_v9  ;;  %v3372_v50 = vshrl.u32 %v3354_v22, %v3370_v43  ;;  %v3375_v19 = vadd.s32 127, %v3374_v56  ;;  %v3572_v49 = vsub.s32 0, %v7007_v60 }
 0x3e3   : > { %v3193_v47 = vsel %vm3182_vm11, nan, %v3192_v45  ;;  %v3729_v4 = vsub.s32 32, %v3728_v32  ;;  %v3592_v41 = vsub.s32 4, %v6996_v31  ;;  %v7020_v52 = vshll.u32 %v3722_v18, 8 }
 0x3e4   : > { %4136 = vst [vmem:[%s5442_s18 + $0xb0] sm:$0xff] %v3193_v47  ;;  %v3373_v26 = vor.u32 %v3372_v50, %v3371_v38  ;;  %v3376_v63 = vshll.u32 %v3375_v19, 23  ;;  %v4354_v13 = vmin.u32 %v3572_v49, %v7007_v60  ;;  %v3926_v59 = vshrl.u32 %v3925_v0, 23 }
 0x3e5   : > { %v3731_v22 = vshll.u32 %v7948_v28, %v3728_v32  ;;  %vm3746_vm5 = vcmp.lt.s32.totalorder %v7013_v10, 1  ;;  %v3732_v33 = vshrl.u32 %v7949_v15, %v3729_v4  ;;  %v3734_v61 = vshll.u32 %v7949_v15, %v3728_v32 }
 0x3e6   : > { %v3377_v25 = vor.u32 4788187, %v3376_v63  ;;  %v3380_v35 = vcvt.s32.f32 %v3373_v26  ;;  %v3574_v7 = vclz %v4354_v13  ;;  %v3735_v58 = vshrl.u32 %v7953_v1, %v3729_v4 }
 0x3e7   : > { %vm3747_vm6 = vcmp.lt.s32.totalorder %v7013_v10, 2  ;;  %v3738_v42 = vshrl.u32 %v4838_v11, %v3729_v4  ;;  %v3740_v48 = vshll.u32 %v4838_v11, %v3728_v32  ;;  %v3741_v43 = vshrl.u32 %v4839_v14, %v3729_v4 }
 0x3e8   : > { %v3378_v9 = vand.u32 2147483647, %v3377_v25  ;;  %v4355_v46 = vadd.s32 4294967294, %v3574_v7  ;;  %v3733_v23 = vor.u32 %v3732_v33, %v3731_v22  ;;  %v3736_v45 = vor.u32 %v3735_v58, %v3734_v61 }
 0x3e9   : > { %v3737_v18 = vshll.u32 %v7953_v1, %v3728_v32  ;;  %v3742_v0 = vor.u32 %v3741_v43, %v3740_v48  ;;  %v3744_v47 = vshrl.u32 %v4840_v30, %v3729_v4  ;;  %vm3748_vm9 = vcmp.lt.s32.totalorder %v7013_v10, 3 }
 0x3ea   : > { %v3381_v56 = vmul.f32 %v3380_v35, %v3378_v9  ;;  %vm4356_vm8 = vcmp.lt.s32.totalorder %v4355_v46, 0  ;;  %v3743_v49 = vshll.u32 %v4839_v14, %v3728_v32  ;;  %v3730_v13 = vshrl.u32 %v7948_v28, %v3729_v4 }
 0x3eb   : > { %v3577_v50 = vsel %vm4356_vm8, 0, %v4355_v46  ;;  %v3739_v19 = vor.u32 %v3738_v42, %v3737_v18  ;;  %vm3749_vm10 = vcmp.lt.s32.totalorder %v7013_v10, 4  ;;  %v3754_v7 = vsel %vm3746_vm5, %v3733_v23, %v3736_v45 }
 0x3ec   : > { %v3382_v38 = vxor.u32 2147483648, %v3381_v56  ;;  %v3578_v26 = vsub.s32 32, %v3577_v50  ;;  %v3582_v63 = vsub.s32 4294967266, %v3577_v50  ;;  %v3745_v35 = vor.u32 %v3744_v47, %v3743_v49 }
 0x3ed   : > { %v3755_v22 = vsel %vm3749_vm10, %v3742_v0, 920167782  ;;  %v3579_v9 = vshll.u32 %v7007_v60, %v3577_v50  ;;  %v3751_v61 = vsel %vm3749_vm10, %v3739_v19, 2102212464  ;;  %v3758_v46 = vsel %vm3746_vm5, %v3736_v45, %v3739_v19 }
 0x3ee   : > { %v3383_v25 = vsel %vm3300_vm15, %v3382_v38, %v3381_v56  ;;  %v3580_v33 = vshrl.u32 %v3562_v12, %v3578_v26  ;;  %v3583_v4 = vadd.s32 127, %v3582_v63  ;;  %v3756_v58 = vsel %vm3748_vm9, %v3739_v19, %v3755_v22 }
 0x3ef   : > { %v3386_v32 = vsel %vm6989_vm14, %v6713_v29, %v3383_v25  ;;  %v3757_v20 = vsel %vm3747_vm6, %v3754_v7, %v3756_v58  ;;  %v3750_v60 = vsel %vm3746_vm5, %v3730_v13, %v3733_v23  ;;  %v3759_v12 = vsel %vm3749_vm10, %v3745_v35, 1326507024 }
 0x3f0   : > { %4679 = vcosq.f32 %v3386_v32  ;;  %v3581_v42 = vor.u32 %v3580_v33, %v3579_v9  ;;  %v3584_v48 = vshll.u32 %v3583_v4, 23  ;;  %v3752_v47 = vsel %vm3748_vm9, %v3736_v45, %v3751_v61 }
 0x3f1   : > { %4681 = vsinq.f32 %v3386_v32  ;;  %v7061_v43 = vmul.u32.u64.low %v7020_v52, %v3757_v20  ;;  %v7062_v56 = vmul.u32.u64.high %v7020_v52, %v3757_v20, %v7061_v43  ;;  %v3760_v38 = vsel %vm3748_vm9, %v3742_v0, %v3759_v12 }
 0x3f2   : > { %v3585_v18 = vor.u32 4788187, %v3584_v48  ;;  %v4369_v50 = vadd.s32 4294967169, %v3926_v59  ;;  %v3392_v19 = vand.u32 3, %v3391_v39  ;;  %v3588_v49 = vcvt.s32.f32 %v3581_v42 }
 0x3f3   : > { %v3593_v23 = vsel %vm3508_vm7, %v3592_v41, %v6996_v31  ;;  %v3761_v26 = vsel %vm3747_vm6, %v3758_v46, %v3760_v38  ;;  %v3753_v39 = vsel %vm3747_vm6, %v3750_v60, %v3752_v47  ;;  %v3772_v31 = vadd.s32 1, %v7062_v56 }
 0x3f4   : > { %v3586_v63 = vand.u32 2147483647, %v3585_v18  ;;  %v7075_v13 = vmul.u32.u64.low %v7020_v52, %v3761_v26  ;;  %v7076_v25 = vmul.u32.u64.high %v7020_v52, %v3761_v26, %v7075_v13  ;;  %v3932_v35 = vadd.s32 1, %v4369_v50 }
 0x3f5   : > { %v3595_v59 = vsel %vm7080_vm13, 0, %v3593_v23  ;;  %vm3390_vm11 = vweird.f32 %v6713_v29  ;;  %v3922_v0 = vand.u32 2147483647, %v6984_v37  ;;  %vm3393_vm14 = vcmp.lt.s32.totalorder %v3392_v19, 2 }
 0x3f6   : > { %v3589_v41 = vmul.f32 %v3588_v49, %v3586_v63  ;;  %vm3933_vm12 = vcmp.gt.s32.totalorder %v3932_v35, 0  ;;  %v3769_v32 = vmul.u32 %v7020_v52, %v3753_v39  ;;  %vm3771_vm15 = vc.u32 %v7076_v25, %v7061_v43 }
 0x3f7   : > { %v3934_v7 = vsel %vm3933_vm12, %v3932_v35, 0  ;;  %vm3394_vm0 = vcmp.eq.s32.totalorder %v3392_v19, 0  ;;  %v3599_v9 = vadd.s32 3, %v3595_v59  ;;  %v3773_v33 = vsel %vm3771_vm15, %v3772_v31, %v7062_v56 }
 0x3f8   : > { %v3590_v22 = vxor.u32 2147483648, %v3589_v41  ;;  %v3936_v4 = vand.u32 31, %v3934_v7  ;;  %vm3397_vm1 = vcmp.eq.s32.totalorder %v3392_v19, 2  ;;  %v3774_v42 = vadd.s32 %v3773_v33, %v3769_v32 }
 0x3f9   : > { %4683 = vrcp.f32 %v569_v2  ;;  %v3929_v56 = vand.u32 8388607, %v3922_v0  ;;  %v3600_v47 = vand.u32 3, %v3599_v9  ;;  %v7108_v23 = vshrl.u32 %v3934_v7, 5 }
 0x3fa   : > { %v4680_v10 = vpop.eup %4679  ;;  %v3591_v46 = vsel %vm3508_vm7, %v3590_v22, %v3589_v41  ;;  %v3937_v20 = vsub.s32 32, %v3936_v4  ;;  %v3775_v12 = vadd.s32 536870912, %v3774_v42  ;;  %v3939_v13 = vshll.u32 %v7948_v28, %v3936_v4 }
 0x3fb   : > { %v4682_v61 = vpop.eup %4681  ;;  %v3398_v58 = vxor.u32 2147483648, %v4680_v10  ;;  %v3594_v52 = vsel %vm7080_vm13, %v6716_v17, %v3591_v46  ;;  %v3942_v35 = vshll.u32 %v7949_v15, %v3936_v4  ;;  %v3945_v19 = vshll.u32 %v7953_v1, %v3936_v4 }
 0x3fc   : > { %v3395_v48 = vxor.u32 2147483648, %v4682_v61  ;;  %4685 = vcosq.f32 %v3594_v52  ;;  %v3940_v38 = vshrl.u32 %v7949_v15, %v3937_v20  ;;  %v7106_v49 = vshrl.u32 %v3775_v12, 30 }
 0x3fd   : > { %v3399_v60 = vsel %vm3397_vm1, %v3398_v58, %v4682_v61  ;;  %4687 = vsinq.f32 %v3594_v52  ;;  %v3943_v26 = vshrl.u32 %v7953_v1, %v3937_v20  ;;  %v3946_v45 = vshrl.u32 %v4838_v11, %v3937_v20 }
 0x3fe   : > { %v3396_v18 = vsel %vm3394_vm0, %v4680_v10, %v3395_v48  ;;  %v3777_v39 = vshll.u32 %v7106_v49, 30  ;;  %v3948_v31 = vshll.u32 %v4838_v11, %v3936_v4  ;;  %v3949_v41 = vshrl.u32 %v4839_v14, %v3937_v20 }
 0x3ff   : > { %v3400_v50 = vsel %vm3393_vm14, %v3396_v18, %v3399_v60  ;;  %v3941_v59 = vor.u32 %v3940_v38, %v3939_v13  ;;  %v3944_v7 = vor.u32 %v3943_v26, %v3942_v35  ;;  %v3951_v29 = vshll.u32 %v4839_v14, %v3936_v4 }
 0x400   : > { %v3401_v63 = vsel %vm3390_vm11, nan, %v3400_v50  ;;  %v3952_v2 = vshrl.u32 %v4840_v30, %v3937_v20  ;;  %v7123_v22 = vsub.s32 %v3774_v42, %v3777_v39  ;;  %v3930_v32 = vor.u32 8388608, %v3929_v56 }
 0x401   : > { %4138 = vst [vmem:[%s5442_s18 + $0xc0] sm:$0xff] %v3401_v63  ;;  %v3947_v10 = vor.u32 %v3946_v45, %v3945_v19  ;;  %v3950_v9 = vor.u32 %v3949_v41, %v3948_v31  ;;  %vm3598_vm2 = vweird.f32 %v6716_v17  ;;  %vm3601_vm4 = vcmp.lt.s32.totalorder %v3600_v47, 2  ;;  %v4731_v17 = vld [vmem:[%s7871_s4 + $0x8] sm:$0xff] }
 0x402   : > { %vm3602_vm3 = vcmp.eq.s32.totalorder %v3600_v47, 0  ;;  %vm3605_vm5 = vcmp.eq.s32.totalorder %v3600_v47, 2  ;;  %v3953_v33 = vor.u32 %v3952_v2, %v3951_v29  ;;  %v3780_v61 = vsub.s32 0, %v7123_v22 }
 0x403   : > { %v3938_v58 = vshrl.u32 %v7948_v28, %v3937_v20  ;;  %vm3954_vm6 = vcmp.lt.s32.totalorder %v7108_v23, 1  ;;  %vm3957_vm7 = vcmp.lt.s32.totalorder %v7108_v23, 4  ;;  %v4684_v4 = vpop.eup %4683  ;;  %vm3956_vm8 = vcmp.lt.s32.totalorder %v7108_v23, 3 }
 0x404   : > { %v3962_v46 = vsel %vm3954_vm6, %v3941_v59, %v3944_v7  ;;  %v3963_v42 = vsel %vm3957_vm7, %v3950_v9, 920167782  ;;  %v3967_v48 = vsel %vm3957_vm7, %v3953_v33, 1326507024  ;;  %v4362_v60 = vmin.u32 %v3780_v61, %v7123_v22 }
 0x405   : > { %v3959_v12 = vsel %vm3957_vm7, %v3947_v10, 2102212464  ;;  %v3964_v56 = vsel %vm3956_vm8, %v3947_v10, %v3963_v42  ;;  %v3966_v20 = vsel %vm3954_vm6, %v3944_v7, %v3947_v10  ;;  %vm3955_vm9 = vcmp.lt.s32.totalorder %v7108_v23, 2 }
 0x406   : > { %v4686_v52 = vpop.eup %4685  ;;  %v3968_v50 = vsel %vm3956_vm8, %v3950_v9, %v3967_v48  ;;  %v3970_v26 = vshll.u32 %v3930_v32, 8  ;;  %v3782_v13 = vclz %v4362_v60  ;;  %v3958_v35 = vsel %vm3954_vm6, %v3938_v58, %v3941_v59 }
 0x407   : > { %v4688_v18 = vpop.eup %4687  ;;  %v3606_v38 = vxor.u32 2147483648, %v4686_v52  ;;  %v3965_v45 = vsel %vm3955_vm9, %v3962_v46, %v3964_v56  ;;  %v3960_v19 = vsel %vm3956_vm8, %v3944_v7, %v3959_v12  ;;  %v3969_v31 = vsel %vm3955_vm9, %v3966_v20, %v3968_v50 }
 0x408   : > { %v3603_v63 = vxor.u32 2147483648, %v4688_v18  ;;  %v573_v41 = vmul.f32 6.2831855, %v4684_v4  ;;  %v4363_v2 = vadd.s32 4294967294, %v3782_v13  ;;  %v7958_v61 = vsub.s32 7, %v6410_v6 }
 0x409   : > { %v3607_v39 = vsel %vm3605_vm5, %v3606_v38, %v4688_v18  ;;  %v7151_v32 = vmul.u32.u64.low %v3970_v26, %v3969_v31  ;;  %v7152_v10 = vmul.u32.u64.high %v3970_v26, %v3969_v31, %v7151_v32  ;;  %v3961_v46 = vsel %vm3955_vm9, %v3958_v35, %v3960_v19 }
 0x40a   : > { %v3604_v29 = vsel %vm3602_vm3, %v4686_v52, %v3603_v63  ;;  %v7155_v9 = vmul.u32.u64.low %v3970_v26, %v3965_v45  ;;  %v7156_v33 = vmul.u32.u64.high %v3970_v26, %v3965_v45, %v7155_v9  ;;  %v581_v58 = vrot.slane %v573_v41, %v7958_v61 }
 0x40b   : > { %v3608_v59 = vsel %vm3601_vm4, %v3604_v29, %v3607_v39  ;;  %vm4364_vm10 = vcmp.lt.s32.totalorder %v4363_v2, 0  ;;  %v3770_v48 = vadd.s32 %v7061_v43, %v7076_v25  ;;  %v3977_v56 = vmul.u32 %v3970_v26, %v3961_v46 }
 0x40c   : > { %v3609_v7 = vsel %vm3598_vm2, nan, %v3608_v59  ;;  %v3785_v4 = vsel %vm4364_vm10, 0, %v4363_v2  ;;  %v583_v42 = vmul.f32 %v581_v58, %v6137_v62  ;;  %v585_v47 = vmul.f32 %v581_v58, %v6492_v34  ;;  %v4732_v62 = vld [vmem:[%s7871_s4 + $0x18] sm:$0xff] }
 0x40d   : > { %4140 = vst [vmem:[%s5442_s18 + $0xd0] sm:$0xff] %v3609_v7  ;;  %v3786_v52 = vsub.s32 32, %v3785_v4  ;;  %v3790_v60 = vsub.s32 4294967266, %v3785_v4  ;;  %vm3979_vm13 = vc.u32 %v7152_v10, %v7155_v9  ;;  %v3980_v6 = vadd.s32 1, %v7156_v33 }
 0x40e   : > { %v609_v23 = vmul.f32 %v4731_v17, %v583_v42  ;;  %v611_v34 = vmul.f32 %v4732_v62, %v585_v47  ;;  %v3787_v12 = vshll.u32 %v7123_v22, %v3785_v4  ;;  %v3800_v13 = vsub.s32 4, %v7106_v49 }
 0x40f   : > { %v3788_v43 = vshrl.u32 %v3770_v48, %v3786_v52  ;;  %v3791_v25 = vadd.s32 127, %v3790_v60  ;;  %v3981_v20 = vsel %vm3979_vm13, %v3980_v6, %v7156_v33  ;;  %vm3716_vm12 = vcmp.lt.s32.totalorder %v6801_v44, 0 }
 0x410   : > { %v619_v18 = vadd.f32 %v611_v34, %v609_v23  ;;  %v3982_v63 = vadd.s32 %v3981_v20, %v3977_v56  ;;  %v3801_v29 = vsel %vm3716_vm12, %v3800_v13, %v7106_v49  ;;  %vm3715_vm11 = vcmp.le.f32.partialorder %v3714_v36, 0.7853982 }
 0x411   : > { %v3789_v38 = vor.u32 %v3788_v43, %v3787_v12  ;;  %v3792_v50 = vshll.u32 %v3791_v25, 23  ;;  %v3803_v61 = vsel %vm3715_vm11, 0, %v3801_v29  ;;  %vm3924_vm14 = vcmp.lt.s32.totalorder %v6984_v37, 0 }
 0x412   : > { %v620_v35 = vrot.slane %v619_v18, 4  ;;  %v3983_v39 = vadd.s32 536870912, %v3982_v63  ;;  %v3807_v47 = vadd.s32 3, %v3803_v61  ;;  %vm7201_vm15 = vcmp.le.f32.partialorder %v3922_v0, 0.7853982 }
 0x413   : > { %v3793_v45 = vor.u32 4788187, %v3792_v50  ;;  %v3796_v41 = vcvt.s32.f32 %v3789_v38  ;;  %v3978_v25 = vadd.s32 %v7155_v9, %v7152_v10  ;;  %vm3806_vm3 = vweird.f32 %v6801_v44 }
 0x414   : > { %v621_v19 = vadd.f32 %v620_v35, %v619_v18  ;;  %v3984_v22 = vshrl.u32 %v3983_v39, 30  ;;  %v3808_v17 = vand.u32 3, %v3807_v47 }
 0x415   : > { %v3794_v31 = vand.u32 2147483647, %v3793_v45 }
 0x416   : > { %v622_v26 = vrot.slane %v621_v19, 2  ;;  %v3985_v32 = vshll.u32 %v3984_v22, 30  ;;  %v4008_v52 = vsub.s32 4, %v3984_v22  ;;  %vm3809_vm1 = vcmp.lt.s32.totalorder %v3808_v17, 2 }
 0x417   : > { %v3797_v2 = vmul.f32 %v3796_v41, %v3794_v31  ;;  %vm3810_vm2 = vcmp.eq.s32.totalorder %v3808_v17, 0  ;;  %vm3813_vm4 = vcmp.eq.s32.totalorder %v3808_v17, 2 }
 0x418   : > { %v623_v59 = vadd.f32 %v622_v26, %v621_v19  ;;  %v3986_v58 = vsub.s32 %v3982_v63, %v3985_v32  ;;  %v4009_v34 = vsel %vm3924_vm14, %v4008_v52, %v3984_v22 }
 0x419   : > { %v3798_v33 = vxor.u32 2147483648, %v3797_v2  ;;  %v4011_v0 = vsel %vm7201_vm15, 0, %v4009_v34 }
 0x41a   : > { %v624_v7 = vrot.slane %v623_v59, 1  ;;  %v3988_v46 = vsub.s32 0, %v3986_v58  ;;  %v4015_v19 = vadd.s32 3, %v4011_v0 }
 0x41b   : > { %v3799_v4 = vsel %vm3716_vm12, %v3798_v33, %v3797_v2 }
 0x41c   : > { %v3802_v42 = vsel %vm3715_vm11, %v6801_v44, %v3799_v4  ;;  %v7187_v48 = vadd.f32 %v624_v7, %v623_v59  ;;  %v4370_v49 = vmin.u32 %v3988_v46, %v3986_v58  ;;  %v7230_v52 = vand.u32 3, %v4015_v19 }
 0x41d   : > { %4689 = vcosq.f32 %v3802_v42 }
 0x41e   : > { %4691 = vsinq.f32 %v3802_v42  ;;  %v2435_v60 = vmul.f32 %v5060_v53, %v7187_v48  ;;  %v3990_v36 = vclz %v4370_v49  ;;  %v2437_v6 = vmul.f32 %v5064_v55, %v7187_v48 }
 0x41f   : > { %vm4017_vm13 = vcmp.lt.s32.totalorder %v7230_v52, 2  ;;  %vm4018_vm12 = vcmp.eq.s32.totalorder %v7230_v52, 0  ;;  %vm4021_vm11 = vcmp.eq.s32.totalorder %v7230_v52, 2 }
 0x420   : > { %v4371_v23 = vadd.s32 4294967294, %v3990_v36  ;;  %v7195_v62 = vadd.f32 %v2435_v60, %v5084_v16  ;;  %v7206_v53 = vadd.f32 %v2437_v6, %v5094_v21  ;;  %v2439_v21 = vmul.f32 %v5056_v51, %v7187_v48 }
 0x422   : > { %vm4372_vm0 = vcmp.lt.s32.totalorder %v4371_v23, 0  ;;  %v2570_v55 = vand.u32 2147483647, %v7195_v62  ;;  %v2573_v16 = vand.u32 2139095040, %v7195_v62  ;;  %v2778_v45 = vand.u32 2147483647, %v7206_v53 }
 0x423   : > { %v3993_v43 = vsel %vm4372_vm0, 0, %v4371_v23  ;;  %v2781_v10 = vand.u32 2139095040, %v7206_v53  ;;  %v7221_v2 = vadd.f32 %v2439_v21, %v5102_v24 }
 0x424   : > { %v3994_v56 = vsub.s32 32, %v3993_v43  ;;  %v3998_v20 = vsub.s32 4294967266, %v3993_v43  ;;  %v3995_v18 = vshll.u32 %v3986_v58, %v3993_v43  ;;  %v2574_v38 = vshrl.u32 %v2573_v16, 23 }
 0x425   : > { %v2577_v50 = vand.u32 8388607, %v2570_v55  ;;  %v2782_v51 = vshrl.u32 %v2781_v10, 23  ;;  %v7226_v7 = vand.u32 8388607, %v2778_v45  ;;  %v2989_v44 = vand.u32 2139095040, %v7221_v2 }
 0x426   : > { %v3996_v13 = vshrl.u32 %v3978_v25, %v3994_v56  ;;  %v3999_v35 = vadd.s32 127, %v3998_v20  ;;  %v4317_v31 = vadd.s32 4294967169, %v2574_v38 }
 0x427   : > { %v4690_v63 = vpop.eup %4689  ;;  %v2578_v32 = vor.u32 8388608, %v2577_v50  ;;  %v4325_v58 = vadd.s32 4294967169, %v2782_v51  ;;  %v2786_v34 = vor.u32 8388608, %v7226_v7 }
 0x428   : > { %v4692_v9 = vpop.eup %4691  ;;  %v3814_v39 = vxor.u32 2147483648, %v4690_v63  ;;  %v3997_v22 = vor.u32 %v3996_v13, %v3995_v18  ;;  %v4000_v29 = vshll.u32 %v3999_v35, 23  ;;  %v2580_v59 = vadd.s32 1, %v4317_v31 }
 0x429   : > { %v3811_v41 = vxor.u32 2147483648, %v4692_v9  ;;  %v2788_v49 = vadd.s32 1, %v4325_v58  ;;  %v7233_v6 = vshll.u32 %v2578_v32, 8 }
 0x42a   : > { %v3815_v26 = vsel %vm3813_vm4, %v3814_v39, %v4692_v9  ;;  %v4001_v61 = vor.u32 4788187, %v4000_v29  ;;  %v4004_v46 = vcvt.s32.f32 %v3997_v22  ;;  %vm2581_vm5 = vcmp.gt.s32.totalorder %v2580_v59, 0 }
 0x42b   : > { %v3812_v33 = vsel %vm3810_vm2, %v4690_v63, %v3811_v41  ;;  %v2582_v47 = vsel %vm2581_vm5, %v2580_v59, 0  ;;  %vm2789_vm6 = vcmp.gt.s32.totalorder %v2788_v49, 0 }
 0x42c   : > { %v3816_v4 = vsel %vm3809_vm1, %v3812_v33, %v3815_v26  ;;  %v4002_v24 = vand.u32 2147483647, %v4001_v61  ;;  %v2583_v60 = vshrl.u32 %v2582_v47, 5  ;;  %v2584_v36 = vand.u32 31, %v2582_v47 }
 0x42d   : > { %v3817_v42 = vsel %vm3806_vm3, nan, %v3816_v4  ;;  %v2790_v58 = vsel %vm2789_vm6, %v2788_v49, 0  ;;  %v7276_v49 = vmul.f32 %v5066_v57, %v7187_v48  ;;  %vm2572_vm3 = vcmp.lt.s32.totalorder %v7195_v62, 0 }
 0x42e   : > { %4142 = vst [vmem:[%s5442_s18 + $0xe0] sm:$0xff] %v3817_v42  ;;  %v4005_v23 = vmul.f32 %v4004_v46, %v4002_v24  ;;  %v2585_v17 = vsub.s32 32, %v2584_v36  ;;  %v2587_v43 = vshll.u32 %v7948_v28, %v2584_v36  ;;  %v2590_v16 = vshll.u32 %v7949_v15, %v2584_v36 }
 0x42f   : > { %v2593_v25 = vshll.u32 %v7953_v1, %v2584_v36  ;;  %v2596_v20 = vshll.u32 %v4838_v11, %v2584_v36  ;;  %v2599_v0 = vshll.u32 %v4839_v14, %v2584_v36  ;;  %vm2602_vm7 = vcmp.lt.s32.totalorder %v2583_v60, 1 }
 0x430   : > { %v4006_v56 = vxor.u32 2147483648, %v4005_v23  ;;  %v2586_v18 = vshrl.u32 %v7948_v28, %v2585_v17  ;;  %v2588_v21 = vshrl.u32 %v7949_v15, %v2585_v17  ;;  %v2591_v38 = vshrl.u32 %v7953_v1, %v2585_v17 }
 0x431   : > { %v2594_v50 = vshrl.u32 %v4838_v11, %v2585_v17  ;;  %v2597_v13 = vshrl.u32 %v4839_v14, %v2585_v17  ;;  %v2600_v35 = vshrl.u32 %v4840_v30, %v2585_v17  ;;  %vm2603_vm8 = vcmp.lt.s32.totalorder %v2583_v60, 2 }
 0x432   : > { %v4007_v63 = vsel %vm3924_vm14, %v4006_v56, %v4005_v23  ;;  %v2589_v9 = vor.u32 %v2588_v21, %v2587_v43  ;;  %v2592_v39 = vor.u32 %v2591_v38, %v2590_v16  ;;  %vm2604_vm9 = vcmp.lt.s32.totalorder %v2583_v60, 3 }
 0x433   : > { %v4010_v10 = vsel %vm7201_vm15, %v6984_v37, %v4007_v63  ;;  %v2595_v19 = vor.u32 %v2594_v50, %v2593_v25  ;;  %v2598_v31 = vor.u32 %v2597_v13, %v2596_v20  ;;  %v2601_v41 = vor.u32 %v2600_v35, %v2599_v0 }
 0x434   : > { %4693 = vcosq.f32 %v4010_v10  ;;  %vm2605_vm10 = vcmp.lt.s32.totalorder %v2583_v60, 4  ;;  %v2606_v22 = vsel %vm2602_vm7, %v2586_v18, %v2589_v9  ;;  %v2610_v29 = vsel %vm2602_vm7, %v2589_v9, %v2592_v39 }
 0x435   : > { %4695 = vsinq.f32 %v4010_v10  ;;  %v2607_v51 = vsel %vm2605_vm10, %v2595_v19, 2102212464  ;;  %v2611_v26 = vsel %vm2605_vm10, %v2598_v31, 920167782  ;;  %v2614_v32 = vsel %vm2602_vm7, %v2592_v39, %v2595_v19 }
 0x436   : > { %v2615_v59 = vsel %vm2605_vm10, %v2601_v41, 1326507024  ;;  %v2608_v12 = vsel %vm2604_vm9, %v2592_v39, %v2607_v51  ;;  %v2612_v33 = vsel %vm2604_vm9, %v2595_v19, %v2611_v26  ;;  %v7260_v42 = vshrl.u32 %v2790_v58, 5 }
 0x437   : > { %v2616_v61 = vsel %vm2604_vm9, %v2598_v31, %v2615_v59  ;;  %v2609_v7 = vsel %vm2603_vm8, %v2606_v22, %v2608_v12  ;;  %v2613_v4 = vsel %vm2603_vm8, %v2610_v29, %v2612_v33  ;;  %v2792_v60 = vand.u32 31, %v2790_v58 }
 0x438   : > { %v2617_v46 = vsel %vm2603_vm8, %v2614_v32, %v2616_v61  ;;  %v7267_v36 = vmul.u32.u64.low %v7233_v6, %v2613_v4  ;;  %v7268_v23 = vmul.u32.u64.high %v7233_v6, %v2613_v4, %v7267_v36  ;;  %vm4014_vm14 = vweird.f32 %v6984_v37 }
 0x439   : > { %v7263_v24 = vmul.u32.u64.low %v7233_v6, %v2617_v46  ;;  %v7264_v47 = vmul.u32.u64.high %v7233_v6, %v2617_v46, %v7263_v24  ;;  %v2625_v17 = vmul.u32 %v7233_v6, %v2609_v7  ;;  %vm2810_vm15 = vcmp.lt.s32.totalorder %v7260_v42, 1 }
 0x43a   : > { %vm2812_vm0 = vcmp.lt.s32.totalorder %v7260_v42, 3  ;;  %v7282_v43 = vshll.u32 %v2786_v34, 8  ;;  %v2793_v16 = vsub.s32 32, %v2792_v60  ;;  %v2795_v25 = vshll.u32 %v7948_v28, %v2792_v60 }
 0x43b   : > { %vm2813_vm1 = vcmp.lt.s32.totalorder %v7260_v42, 4  ;;  %v2990_v56 = vshrl.u32 %v2989_v44, 23  ;;  %vm2627_vm2 = vc.u32 %v7264_v47, %v7267_v36  ;;  %v2628_v57 = vadd.s32 1, %v7268_v23 }
 0x43c   : > { %v2798_v20 = vshll.u32 %v7949_v15, %v2792_v60  ;;  %v2801_v6 = vshll.u32 %v7953_v1, %v2792_v60  ;;  %v2796_v18 = vshrl.u32 %v7949_v15, %v2793_v16  ;;  %v2799_v34 = vshrl.u32 %v7953_v1, %v2793_v16 }
 0x43d   : > { %v2802_v21 = vshrl.u32 %v4838_v11, %v2793_v16  ;;  %v2804_v38 = vshll.u32 %v4838_v11, %v2792_v60  ;;  %v2629_v63 = vsel %vm2627_vm2, %v2628_v57, %v7268_v23  ;;  %v2805_v13 = vshrl.u32 %v4839_v14, %v2793_v16 }
 0x43e   : > { %v4694_v0 = vpop.eup %4693  ;;  %v2807_v35 = vshll.u32 %v4839_v14, %v2792_v60  ;;  %v2630_v9 = vadd.s32 %v2629_v63, %v2625_v17  ;;  %v2797_v39 = vor.u32 %v2796_v18, %v2795_v25  ;;  %v2800_v19 = vor.u32 %v2799_v34, %v2798_v20 }
 0x43f   : > { %v4696_v50 = vpop.eup %4695  ;;  %v4022_v44 = vxor.u32 2147483648, %v4694_v0  ;;  %v2803_v41 = vor.u32 %v2802_v21, %v2801_v6  ;;  %v2806_v22 = vor.u32 %v2805_v13, %v2804_v38  ;;  %v2808_v29 = vshrl.u32 %v4840_v30, %v2793_v16 }
 0x440   : > { %v4019_v10 = vxor.u32 2147483648, %v4696_v50  ;;  %v2631_v26 = vadd.s32 536870912, %v2630_v9  ;;  %v2794_v32 = vshrl.u32 %v7948_v28, %v2793_v16  ;;  %v2818_v59 = vsel %vm2810_vm15, %v2797_v39, %v2800_v19 }
 0x441   : > { %v4023_v31 = vsel %vm4021_vm11, %v4022_v44, %v4696_v50  ;;  %v2809_v33 = vor.u32 %v2808_v29, %v2807_v35  ;;  %v2815_v61 = vsel %vm2813_vm1, %v2803_v41, 2102212464  ;;  %v2819_v58 = vsel %vm2813_vm1, %v2806_v22, 920167782 }
 0x442   : > { %v4020_v51 = vsel %vm4018_vm12, %v4694_v0, %v4019_v10  ;;  %v2632_v4 = vshrl.u32 %v2631_v26, 30  ;;  %vm2811_vm4 = vcmp.lt.s32.totalorder %v7260_v42, 2  ;;  %v2820_v46 = vsel %vm2812_vm0, %v2803_v41, %v2819_v58 }
 0x443   : > { %v4024_v12 = vsel %vm4017_vm13, %v4020_v51, %v4023_v31  ;;  %v2814_v52 = vsel %vm2810_vm15, %v2794_v32, %v2797_v39  ;;  %v2821_v24 = vsel %vm2811_vm4, %v2818_v59, %v2820_v46  ;;  %v2822_v23 = vsel %vm2810_vm15, %v2800_v19, %v2803_v41 }
 0x444   : > { %v4025_v7 = vsel %vm4014_vm14, nan, %v4024_v12  ;;  %v2823_v37 = vsel %vm2813_vm1, %v2809_v33, 1326507024  ;;  %v2633_v60 = vshll.u32 %v2632_v4, 30  ;;  %v2656_v17 = vsub.s32 4, %v2632_v4 }
 0x445   : > { %4144 = vst [vmem:[%s5442_s18 + $0xf0] sm:$0xff] %v4025_v7  ;;  %v2816_v16 = vsel %vm2812_vm0, %v2800_v19, %v2815_v61  ;;  %v2824_v25 = vsel %vm2812_vm0, %v2806_v22, %v2823_v37  ;;  %v7333_v20 = vmul.u32.u64.low %v7282_v43, %v2821_v24  ;;  %v7334_v6 = vmul.u32.u64.high %v7282_v43, %v2821_v24, %v7333_v20 }
 0x446   : > { %v2825_v57 = vsel %vm2811_vm4, %v2822_v23, %v2824_v25  ;;  %v4333_v0 = vadd.s32 4294967169, %v2990_v56  ;;  %v2634_v18 = vsub.s32 %v2630_v9, %v2633_v60  ;;  %v2986_v38 = vand.u32 2147483647, %v7221_v2 }
 0x447   : > { %v7338_v34 = vmul.u32.u64.low %v7282_v43, %v2825_v57  ;;  %v7339_v21 = vmul.u32.u64.high %v7282_v43, %v2825_v57, %v7338_v34  ;;  %v7344_v44 = vadd.f32 %v7276_v49, %v5118_v40  ;;  %v2817_v13 = vsel %vm2811_vm4, %v2814_v52, %v2816_v16 }
 0x448   : > { %v2996_v50 = vadd.s32 1, %v4333_v0  ;;  %v2636_v63 = vsub.s32 0, %v2634_v18  ;;  %v2657_v56 = vsel %vm2572_vm3, %v2656_v17, %v2632_v4  ;;  %v2836_v35 = vadd.s32 1, %v7334_v6 }
 0x449   : > { %v2443_v10 = vmul.f32 %v5080_v5, %v7187_v48  ;;  %vm2835_vm6 = vc.u32 %v7339_v21, %v7333_v20  ;;  %v2993_v40 = vand.u32 8388607, %v2986_v38  ;;  %vm7360_vm7 = vcmp.le.f32.partialorder %v2570_v55, 0.7853982 }
 0x44a   : > { %vm2997_vm5 = vcmp.gt.s32.totalorder %v2996_v50, 0  ;;  %v4318_v9 = vmin.u32 %v2636_v63, %v2634_v18  ;;  %v2833_v49 = vmul.u32 %v7282_v43, %v2817_v13  ;;  %v2837_v39 = vsel %vm2835_vm6, %v2836_v35, %v7334_v6 }
 0x44b   : > { %v2998_v19 = vsel %vm2997_vm5, %v2996_v50, 0  ;;  %v2659_v5 = vsel %vm7360_vm7, 0, %v2657_v56  ;;  %v3197_v41 = vand.u32 2139095040, %v7344_v44  ;;  %v7370_v51 = vadd.f32 %v2443_v10, %v5342_v27 }
 0x44c   : > { %v2638_v31 = vclz %v4318_v9  ;;  %v2838_v22 = vadd.s32 %v2837_v39, %v2833_v49  ;;  %v3000_v29 = vand.u32 31, %v2998_v19  ;;  %v2626_v55 = vadd.s32 %v7267_v36, %v7264_v47 }
 0x44d   : > { %v2994_v32 = vor.u32 8388608, %v2993_v40  ;;  %v2663_v43 = vadd.s32 3, %v2659_v5  ;;  %v3194_v33 = vand.u32 2147483647, %v7344_v44  ;;  %v7375_v61 = vshrl.u32 %v2998_v19, 5 }
 0x44e   : > { %v4319_v26 = vadd.s32 4294967294, %v2638_v31  ;;  %v2839_v59 = vadd.s32 536870912, %v2838_v22  ;;  %v3001_v12 = vsub.s32 32, %v3000_v29  ;;  %v3003_v58 = vshll.u32 %v7948_v28, %v3000_v29 }
 0x44f   : > { %v3198_v7 = vshrl.u32 %v3197_v41, 23  ;;  %v3006_v52 = vshll.u32 %v7949_v15, %v3000_v29  ;;  %vm2780_vm9 = vcmp.lt.s32.totalorder %v7206_v53, 0  ;;  %v3009_v23 = vshll.u32 %v7953_v1, %v3000_v29 }
 0x450   : > { %vm4320_vm8 = vcmp.lt.s32.totalorder %v4319_v26, 0  ;;  %v2840_v46 = vshrl.u32 %v2839_v59, 30  ;;  %v3004_v27 = vshrl.u32 %v7949_v15, %v3001_v12  ;;  %v3007_v24 = vshrl.u32 %v7953_v1, %v3001_v12 }
 0x451   : > { %v2641_v4 = vsel %vm4320_vm8, 0, %v4319_v26  ;;  %v3010_v60 = vshrl.u32 %v4838_v11, %v3001_v12  ;;  %v3012_v17 = vshll.u32 %v4838_v11, %v3000_v29  ;;  %v3015_v16 = vshll.u32 %v4839_v14, %v3000_v29 }
 0x452   : > { %v2642_v47 = vsub.s32 32, %v2641_v4  ;;  %v2646_v36 = vsub.s32 4294967266, %v2641_v4  ;;  %v2841_v37 = vshll.u32 %v2840_v46, 30  ;;  %v2643_v25 = vshll.u32 %v2634_v18, %v2641_v4 }
 0x453   : > { %v3013_v0 = vshrl.u32 %v4839_v14, %v3001_v12  ;;  %v3005_v50 = vor.u32 %v3004_v27, %v3003_v58  ;;  %v3008_v63 = vor.u32 %v3007_v24, %v3006_v52  ;;  %v3016_v13 = vshrl.u32 %v4840_v30, %v3001_v12 }
 0x454   : > { %v2644_v57 = vshrl.u32 %v2626_v55, %v2642_v47  ;;  %v2647_v6 = vadd.s32 127, %v2646_v36  ;;  %v7387_v34 = vsub.s32 %v2838_v22, %v2841_v37  ;;  %vm7392_vm10 = vcmp.le.f32.partialorder %v2778_v45, 0.7853982 }
 0x455   : > { %v3011_v9 = vor.u32 %v3010_v60, %v3009_v23  ;;  %v3014_v18 = vor.u32 %v3013_v0, %v3012_v17  ;;  %v7396_v40 = vand.u32 3, %v2663_v43  ;;  %v2864_v39 = vsub.s32 4, %v2840_v46 }
 0x456   : > { %v2645_v56 = vor.u32 %v2644_v57, %v2643_v25  ;;  %v2648_v35 = vshll.u32 %v2647_v6, 23  ;;  %v2844_v49 = vsub.s32 0, %v7387_v34  ;;  %v3034_v19 = vshll.u32 %v2994_v32, 8 }
 0x457   : > { %v3002_v5 = vshrl.u32 %v7948_v28, %v3001_v12  ;;  %v3017_v41 = vor.u32 %v3016_v13, %v3015_v16  ;;  %v4341_v22 = vadd.s32 4294967169, %v3198_v7  ;;  %vm3018_vm13 = vcmp.lt.s32.totalorder %v7375_v61, 1 }
 0x458   : > { %v2649_v31 = vor.u32 4788187, %v2648_v35  ;;  %v2652_v29 = vcvt.s32.f32 %v2645_v56  ;;  %v4326_v55 = vmin.u32 %v2844_v49, %v7387_v34  ;;  %vm3021_vm12 = vcmp.lt.s32.totalorder %v7375_v61, 4 }
 0x459   : > { %v3023_v26 = vsel %vm3021_vm12, %v3011_v9, 2102212464  ;;  %v3026_v43 = vsel %vm3018_vm13, %v3005_v50, %v3008_v63  ;;  %v3027_v32 = vsel %vm3021_vm12, %v3014_v18, 920167782  ;;  %v2865_v12 = vsel %vm2780_vm9, %v2864_v39, %v2840_v46 }
 0x45a   : > { %v2650_v45 = vand.u32 2147483647, %v2649_v31  ;;  %v2846_v59 = vclz %v4326_v55  ;;  %vm3019_vm11 = vcmp.lt.s32.totalorder %v7375_v61, 2  ;;  %vm3020_vm14 = vcmp.lt.s32.totalorder %v7375_v61, 3 }
 0x45b   : > { %v3022_v7 = vsel %vm3018_vm13, %v3002_v5, %v3005_v50  ;;  %v3028_v4 = vsel %vm3020_vm14, %v3011_v9, %v3027_v32  ;;  %v3030_v27 = vsel %vm3018_vm13, %v3008_v63, %v3011_v9  ;;  %v3024_v47 = vsel %vm3020_vm14, %v3008_v63, %v3023_v26 }
 0x45c   : > { %v2653_v58 = vmul.f32 %v2652_v29, %v2650_v45  ;;  %v4327_v52 = vadd.s32 4294967294, %v2846_v59  ;;  %v3029_v36 = vsel %vm3019_vm11, %v3026_v43, %v3028_v4  ;;  %v3031_v24 = vsel %vm3021_vm12, %v3017_v41, 1326507024 }
 0x45d   : > { %v3032_v37 = vsel %vm3020_vm14, %v3014_v18, %v3031_v24  ;;  %v7415_v60 = vmul.u32.u64.low %v3034_v19, %v3029_v36  ;;  %v7416_v46 = vmul.u32.u64.high %v3034_v19, %v3029_v36, %v7415_v60  ;;  %v2834_v17 = vadd.s32 %v7333_v20, %v7339_v21 }
 0x45e   : > { %v2654_v23 = vxor.u32 2147483648, %v2653_v58  ;;  %vm4328_vm15 = vcmp.lt.s32.totalorder %v4327_v52, 0  ;;  %v2867_v16 = vsel %vm7392_vm10, 0, %v2865_v12  ;;  %v3033_v25 = vsel %vm3019_vm11, %v3030_v27, %v3032_v37 }
 0x45f   : > { %v2849_v6 = vsel %vm4328_vm15, 0, %v4327_v52  ;;  %v7427_v0 = vmul.u32.u64.low %v3034_v19, %v3033_v25  ;;  %v7428_v50 = vmul.u32.u64.high %v3034_v19, %v3033_v25, %v7427_v0  ;;  %v3025_v21 = vsel %vm3019_vm11, %v3022_v7, %v3024_v47 }
 0x460   : > { %v2655_v57 = vsel %vm2572_vm3, %v2654_v23, %v2653_v58  ;;  %v2850_v13 = vsub.s32 32, %v2849_v6  ;;  %v2854_v20 = vsub.s32 4294967266, %v2849_v6  ;;  %v3044_v56 = vadd.s32 1, %v7416_v46 }
 0x461   : > { %v2658_v63 = vsel %vm7360_vm7, %v7195_v62, %v2655_v57  ;;  %v3201_v35 = vand.u32 8388607, %v3194_v33  ;;  %v3204_v9 = vadd.s32 1, %v4341_v22  ;;  %v2851_v18 = vshll.u32 %v7387_v34, %v2849_v6  ;;  %v7965_v22 = vld [vmem:[#allocation8_spill] sm:$0xff] }
 0x462   : > { %4697 = vcosq.f32 %v2658_v63  ;;  %v2852_v49 = vshrl.u32 %v2834_v17, %v2850_v13  ;;  %v2855_v39 = vadd.s32 127, %v2854_v20  ;;  %v2871_v31 = vadd.s32 3, %v2867_v16 }
 0x463   : > { %4699 = vsinq.f32 %v2658_v63  ;;  %v3041_v42 = vmul.u32 %v3034_v19, %v3025_v21  ;;  %vm3043_vm0 = vc.u32 %v7428_v50, %v7415_v60  ;;  %vm3205_vm1 = vcmp.gt.s32.totalorder %v3204_v9, 0 }
 0x464   : > { %v2853_v61 = vor.u32 %v2852_v49, %v2851_v18  ;;  %v2856_v5 = vshll.u32 %v2855_v39, 23  ;;  %v3045_v41 = vsel %vm3043_vm0, %v3044_v56, %v7416_v46  ;;  %v3206_v29 = vsel %vm3205_vm1, %v3204_v9, 0 }
 0x465   : > { %v3046_v55 = vadd.s32 %v3045_v41, %v3041_v42  ;;  %v3202_v45 = vor.u32 8388608, %v3201_v35  ;;  %v3208_v26 = vand.u32 31, %v3206_v29  ;;  %v7444_v43 = vmul.f32 %v7965_v22, %v7187_v48 }
 0x466   : > { %v2857_v34 = vor.u32 4788187, %v2856_v5  ;;  %vm2665_vm2 = vcmp.lt.s32.totalorder %v7396_v40, 2  ;;  %vm2666_vm4 = vcmp.eq.s32.totalorder %v7396_v40, 0  ;;  %vm2669_vm3 = vcmp.eq.s32.totalorder %v7396_v40, 2 }
 0x467   : > { %v3047_v19 = vadd.s32 536870912, %v3046_v55  ;;  %v3209_v32 = vsub.s32 32, %v3208_v26  ;;  %vm2662_vm5 = vweird.f32 %v7195_v62  ;;  %v2860_v12 = vcvt.s32.f32 %v2853_v61 }
 0x468   : > { %v2858_v59 = vand.u32 2147483647, %v2857_v34  ;;  %v7450_v58 = vand.u32 3, %v2871_v31  ;;  %v3402_v7 = vand.u32 2147483647, %v7370_v51  ;;  %v7453_v27 = vshrl.u32 %v3206_v29, 5 }
 0x469   : > { %v3048_v4 = vshrl.u32 %v3047_v19, 30  ;;  %v7455_v52 = vshll.u32 %v3202_v45, 8  ;;  %v3405_v47 = vand.u32 2139095040, %v7370_v51  ;;  %v3211_v24 = vshll.u32 %v7948_v28, %v3208_v26 }
 0x46a   : > { %v2861_v36 = vmul.f32 %v2860_v12, %v2858_v59  ;;  %v3212_v23 = vshrl.u32 %v7949_v15, %v3209_v32  ;;  %v3215_v37 = vshrl.u32 %v7953_v1, %v3209_v32  ;;  %v3214_v16 = vshll.u32 %v7949_v15, %v3208_v26 }
 0x46b   : > { %v3049_v17 = vshll.u32 %v3048_v4, 30  ;;  %v3217_v25 = vshll.u32 %v7953_v1, %v3208_v26  ;;  %v3218_v57 = vshrl.u32 %v4838_v11, %v3209_v32  ;;  %v3221_v13 = vshrl.u32 %v4839_v14, %v3209_v32 }
 0x46c   : > { %v4698_v46 = vpop.eup %4697  ;;  %v2862_v63 = vxor.u32 2147483648, %v2861_v36  ;;  %v3224_v20 = vshrl.u32 %v4840_v30, %v3209_v32  ;;  %vm2988_vm6 = vcmp.lt.s32.totalorder %v7221_v2, 0  ;;  %v3220_v35 = vshll.u32 %v4838_v11, %v3208_v26 }
 0x46d   : > { %v4700_v6 = vpop.eup %4699  ;;  %v2670_v0 = vxor.u32 2147483648, %v4698_v46  ;;  %v7467_v56 = vsub.s32 %v3046_v55, %v3049_v17  ;;  %v3223_v9 = vshll.u32 %v4839_v14, %v3208_v26  ;;  %v3213_v39 = vor.u32 %v3212_v23, %v3211_v24 }
 0x46e   : > { %v2667_v21 = vxor.u32 2147483648, %v4700_v6  ;;  %v2863_v49 = vsel %vm2780_vm9, %v2862_v63, %v2861_v36  ;;  %v3216_v31 = vor.u32 %v3215_v37, %v3214_v16  ;;  %v3219_v41 = vor.u32 %v3218_v57, %v3217_v25 }
 0x46f   : > { %v2671_v18 = vsel %vm2669_vm3, %v2670_v0, %v4700_v6  ;;  %v2866_v61 = vsel %vm7392_vm10, %v7206_v53, %v2863_v49  ;;  %v3052_v5 = vsub.s32 0, %v7467_v56  ;;  %v3222_v55 = vor.u32 %v3221_v13, %v3220_v35 }
 0x470   : > { %v2668_v42 = vsel %vm2666_vm4, %v4698_v46, %v2667_v21  ;;  %4701 = vcosq.f32 %v2866_v61  ;;  %v3225_v45 = vor.u32 %v3224_v20, %v3223_v9  ;;  %vm7487_vm7 = vcmp.le.f32.partialorder %v2986_v38, 0.7853982 }
 0x471   : > { %v2672_v29 = vsel %vm2665_vm2, %v2668_v42, %v2671_v18  ;;  %4703 = vsinq.f32 %v2866_v61  ;;  %v4334_v10 = vmin.u32 %v3052_v5, %v7467_v56  ;;  %v3210_v34 = vshrl.u32 %v7948_v28, %v3209_v32 }
 0x472   : > { %v2673_v26 = vsel %vm2662_vm5, nan, %v2672_v29  ;;  %v3072_v19 = vsub.s32 4, %v3048_v4  ;;  %vm3226_vm8 = vcmp.lt.s32.totalorder %v7453_v27, 1  ;;  %vm3227_vm9 = vcmp.lt.s32.totalorder %v7453_v27, 2 }
 0x473   : > { %vm3228_vm10 = vcmp.lt.s32.totalorder %v7453_v27, 3  ;;  %4131 = vst [vmem:[%s5442_s18 + $0x88] sm:$0xff] %v2673_v26  ;;  %v3054_v62 = vclz %v4334_v10  ;;  %vm3229_vm13 = vcmp.lt.s32.totalorder %v7453_v27, 4  ;;  %v3234_v40 = vsel %vm3226_vm8, %v3213_v39, %v3216_v31 }
 0x474   : > { %v3238_v38 = vsel %vm3226_vm8, %v3216_v31, %v3219_v41  ;;  %v3230_v59 = vsel %vm3226_vm8, %v3210_v34, %v3213_v39  ;;  %v3231_v12 = vsel %vm3229_vm13, %v3219_v41, 2102212464  ;;  %v3235_v36 = vsel %vm3229_vm13, %v3222_v55, 920167782 }
 0x475   : > { %v3239_v24 = vsel %vm3229_vm13, %v3225_v45, 1326507024  ;;  %v4335_v23 = vadd.s32 4294967294, %v3054_v62  ;;  %v3232_v37 = vsel %vm3228_vm10, %v3216_v31, %v3231_v12  ;;  %v3236_v32 = vsel %vm3228_vm10, %v3219_v41, %v3235_v36 }
 0x476   : > { %v3240_v46 = vsel %vm3228_vm10, %v3222_v55, %v3239_v24  ;;  %vm2873_vm12 = vcmp.lt.s32.totalorder %v7450_v58, 2  ;;  %v3073_v17 = vsel %vm2988_vm6, %v3072_v19, %v3048_v4  ;;  %v3237_v16 = vsel %vm3227_vm9, %v3234_v40, %v3236_v32  ;;  %v7969_v24 = vld [vmem:[#allocation10_spill] sm:$0xff] }
 0x477   : > { %v3241_v25 = vsel %vm3227_vm9, %v3238_v38, %v3240_v46  ;;  %v3406_v57 = vshrl.u32 %v3405_v47, 23  ;;  %vm4336_vm11 = vcmp.lt.s32.totalorder %v4335_v23, 0  ;;  %v3233_v6 = vsel %vm3227_vm9, %v3230_v59, %v3232_v37  ;;  %v7968_v38 = vld [vmem:[#allocation9_spill] sm:$0xff] }
 0x478   : > { %v7508_v0 = vmul.u32.u64.low %v7455_v52, %v3241_v25  ;;  %v7509_v63 = vmul.u32.u64.high %v7455_v52, %v3241_v25, %v7508_v0  ;;  %v3057_v13 = vsel %vm4336_vm11, 0, %v4335_v23  ;;  %vm2874_vm14 = vcmp.eq.s32.totalorder %v7450_v58, 0 }
 0x479   : > { %v7512_v20 = vmul.u32.u64.low %v7455_v52, %v3237_v16  ;;  %v7513_v21 = vmul.u32.u64.high %v7455_v52, %v3237_v16, %v7512_v20  ;;  %v4349_v4 = vadd.s32 4294967169, %v3406_v57  ;;  %v3042_v47 = vadd.s32 %v7415_v60, %v7428_v50 }
 0x47a   : > { %v3058_v35 = vsub.s32 32, %v3057_v13  ;;  %v3062_v9 = vsub.s32 4294967266, %v3057_v13  ;;  %v4702_v27 = vpop.eup %4701  ;;  %vm2877_vm15 = vcmp.eq.s32.totalorder %v7450_v58, 2  ;;  %v3075_v18 = vsel %vm7487_vm7, 0, %v3073_v17 }
 0x47b   : > { %v3249_v49 = vmul.u32 %v7455_v52, %v3233_v6  ;;  %v3412_v39 = vadd.s32 1, %v4349_v4  ;;  %v4704_v31 = vpop.eup %4703  ;;  %v2878_v42 = vxor.u32 2147483648, %v4702_v27  ;;  %v3059_v61 = vshll.u32 %v7467_v56, %v3057_v13 }
 0x47c   : > { %v3060_v5 = vshrl.u32 %v3042_v47, %v3058_v35  ;;  %v3063_v41 = vadd.s32 127, %v3062_v9  ;;  %v2875_v29 = vxor.u32 2147483648, %v4704_v31  ;;  %vm3251_vm0 = vc.u32 %v7509_v63, %v7512_v20 }
 0x47d   : > { %v3252_v60 = vadd.s32 1, %v7513_v21  ;;  %vm3413_vm1 = vcmp.gt.s32.totalorder %v3412_v39, 0  ;;  %v2879_v50 = vsel %vm2877_vm15, %v2878_v42, %v4704_v31  ;;  %v3079_v10 = vadd.s32 3, %v3075_v18 }
 0x47e   : > { %v3061_v55 = vor.u32 %v3060_v5, %v3059_v61  ;;  %v3064_v45 = vshll.u32 %v3063_v41, 23  ;;  %v3414_v26 = vsel %vm3413_vm1, %v3412_v39, 0  ;;  %v2876_v52 = vsel %vm2874_vm14, %v4702_v27, %v2875_v29 }
 0x47f   : > { %v3253_v56 = vsel %vm3251_vm0, %v3252_v60, %v7513_v21  ;;  %v3416_v34 = vand.u32 31, %v3414_v26  ;;  %vm2870_vm2 = vweird.f32 %v7206_v53  ;;  %v2880_v19 = vsel %vm2873_vm12, %v2876_v52, %v2879_v50 }
 0x480   : > { %v3065_v62 = vor.u32 4788187, %v3064_v45  ;;  %v3254_v40 = vadd.s32 %v3253_v56, %v3249_v49  ;;  %v2447_v59 = vmul.f32 %v7968_v38, %v7187_v48  ;;  %v2881_v12 = vsel %vm2870_vm2, nan, %v2880_v19 }
 0x481   : > { %v3417_v36 = vsub.s32 32, %v3416_v34  ;;  %v7537_v23 = vadd.f32 %v7444_v43, %v7969_v24  ;;  %v3068_v32 = vcvt.s32.f32 %v3061_v55  ;;  %4133 = vst [vmem:[%s5442_s18 + $0x98] sm:$0xff] %v2881_v12  ;;  %v7540_v17 = vand.u32 3, %v3079_v10 }
 0x482   : > { %v3066_v37 = vand.u32 2147483647, %v3065_v62  ;;  %v3255_v46 = vadd.s32 536870912, %v3254_v40  ;;  %v3409_v53 = vand.u32 8388607, %v3402_v7  ;;  %v3419_v0 = vshll.u32 %v7948_v28, %v3416_v34 }
 0x483   : > { %v3420_v58 = vshrl.u32 %v7949_v15, %v3417_v36  ;;  %v3423_v16 = vshrl.u32 %v7953_v1, %v3417_v36  ;;  %v3426_v6 = vshrl.u32 %v4838_v11, %v3417_v36  ;;  %v3429_v43 = vshrl.u32 %v4839_v14, %v3417_v36 }
 0x484   : > { %v3069_v25 = vmul.f32 %v3068_v32, %v3066_v37  ;;  %v7546_v57 = vshrl.u32 %v3255_v46, 30  ;;  %v3422_v13 = vshll.u32 %v7949_v15, %v3416_v34  ;;  %v3428_v21 = vshll.u32 %v4838_v11, %v3416_v34 }
 0x485   : > { %v3432_v4 = vshrl.u32 %v4840_v30, %v3417_v36  ;;  %v3415_v9 = vshrl.u32 %v3414_v26, 5  ;;  %v3425_v27 = vshll.u32 %v7953_v1, %v3416_v34  ;;  %v3421_v18 = vor.u32 %v3420_v58, %v3419_v0 }
 0x486   : > { %v3070_v47 = vxor.u32 2147483648, %v3069_v25  ;;  %v3257_v35 = vshll.u32 %v7546_v57, 30  ;;  %v3424_v49 = vor.u32 %v3423_v16, %v3422_v13  ;;  %v3430_v39 = vor.u32 %v3429_v43, %v3428_v21 }
 0x487   : > { %v3431_v31 = vshll.u32 %v4839_v14, %v3416_v34  ;;  %v3410_v5 = vor.u32 8388608, %v3409_v53  ;;  %v3427_v41 = vor.u32 %v3426_v6, %v3425_v27  ;;  %v3418_v60 = vshrl.u32 %v7948_v28, %v3417_v36 }
 0x488   : > { %v3071_v42 = vsel %vm2988_vm6, %v3070_v47, %v3069_v25  ;;  %v7559_v61 = vsub.s32 %v3254_v40, %v3257_v35  ;;  %v3613_v55 = vand.u32 2139095040, %v7537_v23  ;;  %vm3434_vm4 = vcmp.lt.s32.totalorder %v3415_v9, 1 }
 0x489   : > { %v3074_v29 = vsel %vm7487_vm7, %v7221_v2, %v3071_v42  ;;  %v3433_v50 = vor.u32 %v3432_v4, %v3431_v31  ;;  %vm3437_vm3 = vcmp.lt.s32.totalorder %v3415_v9, 4  ;;  %vm3436_vm5 = vcmp.lt.s32.totalorder %v3415_v9, 3 }
 0x48a   : > { %4705 = vcosq.f32 %v3074_v29  ;;  %v3260_v45 = vsub.s32 0, %v7559_v61  ;;  %v3442_v26 = vsel %vm3434_vm4, %v3421_v18, %v3424_v49  ;;  %v3443_v52 = vsel %vm3437_vm3, %v3430_v39, 920167782 }
 0x48b   : > { %4707 = vsinq.f32 %v3074_v29  ;;  %vm3435_vm6 = vcmp.lt.s32.totalorder %v3415_v9, 2  ;;  %v3439_v22 = vsel %vm3437_vm3, %v3427_v41, 2102212464  ;;  %v3444_v56 = vsel %vm3436_vm5, %v3427_v41, %v3443_v52 }
 0x48c   : > { %v4342_v10 = vmin.u32 %v3260_v45, %v7559_v61  ;;  %v3445_v34 = vsel %vm3435_vm6, %v3442_v26, %v3444_v56  ;;  %v3446_v19 = vsel %vm3434_vm4, %v3424_v49, %v3427_v41  ;;  %v3447_v62 = vsel %vm3437_vm3, %v3433_v50, 1326507024 }
 0x48d   : > { %v3450_v40 = vshll.u32 %v3410_v5, 8  ;;  %v7573_v38 = vadd.f32 %v2447_v59, %v5960_v8  ;;  %vm3196_vm7 = vcmp.lt.s32.totalorder %v7344_v44, 0  ;;  %v3438_v36 = vsel %vm3434_vm4, %v3418_v60, %v3421_v18 }
 0x48e   : > { %v3262_v12 = vclz %v4342_v10  ;;  %v3440_v24 = vsel %vm3436_vm5, %v3424_v49, %v3439_v22  ;;  %v3448_v37 = vsel %vm3436_vm5, %v3430_v39, %v3447_v62  ;;  %v3280_v58 = vsub.s32 4, %v7546_v57 }
 0x48f   : > { %v7579_v32 = vmul.u32.u64.low %v3450_v40, %v3445_v34  ;;  %v7580_v46 = vmul.u32.u64.high %v3450_v40, %v3445_v34, %v7579_v32  ;;  %v3449_v16 = vsel %vm3435_vm6, %v3446_v19, %v3448_v37  ;;  %v3614_v8 = vshrl.u32 %v3613_v55, 23 }
 0x490   : > { %v4343_v53 = vadd.s32 4294967294, %v3262_v12  ;;  %vm3078_vm8 = vweird.f32 %v7221_v2  ;;  %vm3081_vm9 = vcmp.lt.s32.totalorder %v7540_v17, 2  ;;  %vm3082_vm10 = vcmp.eq.s32.totalorder %v7540_v17, 0 }
 0x491   : > { %v7588_v59 = vmul.u32.u64.low %v3450_v40, %v3449_v16  ;;  %v7589_v25 = vmul.u32.u64.high %v3450_v40, %v3449_v16, %v7588_v59  ;;  %vm3085_vm13 = vcmp.eq.s32.totalorder %v7540_v17, 2  ;;  %v3441_v6 = vsel %vm3435_vm6, %v3438_v36, %v3440_v24 }
 0x492   : > { %vm4344_vm12 = vcmp.lt.s32.totalorder %v4343_v53, 0  ;;  %v4357_v43 = vadd.s32 4294967169, %v3614_v8  ;;  %v3250_v0 = vadd.s32 %v7512_v20, %v7509_v63  ;;  %v3460_v21 = vadd.s32 1, %v7580_v46 }
 0x493   : > { %v3265_v13 = vsel %vm4344_vm12, 0, %v4343_v53  ;;  %v3610_v4 = vand.u32 2147483647, %v7537_v23  ;;  %v3281_v18 = vsel %vm3196_vm7, %v3280_v58, %v7546_v57  ;;  %v3457_v42 = vmul.u32 %v3450_v40, %v3441_v6 }
 0x494   : > { %v4706_v47 = vpop.eup %4705  ;;  %v3266_v35 = vsub.s32 32, %v3265_v13  ;;  %v3270_v27 = vsub.s32 4294967266, %v3265_v13  ;;  %v3620_v49 = vadd.s32 1, %v4357_v43  ;;  %v3267_v31 = vshll.u32 %v7559_v61, %v3265_v13 }
 0x495   : > { %v4708_v39 = vpop.eup %4707  ;;  %v3086_v9 = vxor.u32 2147483648, %v4706_v47  ;;  %vm3459_vm11 = vc.u32 %v7589_v25, %v7579_v32  ;;  %v3617_v57 = vand.u32 8388607, %v3610_v4  ;;  %v3821_v22 = vand.u32 2139095040, %v7573_v38 }
 0x496   : > { %v3083_v63 = vxor.u32 2147483648, %v4708_v39  ;;  %v3268_v20 = vshrl.u32 %v3250_v0, %v3266_v35  ;;  %v3271_v5 = vadd.s32 127, %v3270_v27  ;;  %v3461_v41 = vsel %vm3459_vm11, %v3460_v21, %v7580_v46 }
 0x497   : > { %v3087_v29 = vsel %vm3085_vm13, %v3086_v9, %v4708_v39  ;;  %v3462_v60 = vadd.s32 %v3461_v41, %v3457_v42  ;;  %vm3621_vm14 = vcmp.gt.s32.totalorder %v3620_v49, 0  ;;  %v7617_v19 = vmul.f32 %v5062_v54, %v7187_v48 }
 0x498   : > { %v3084_v61 = vsel %vm3082_vm10, %v4706_v47, %v3083_v63  ;;  %v3269_v50 = vor.u32 %v3268_v20, %v3267_v31  ;;  %v3272_v55 = vshll.u32 %v3271_v5, 23  ;;  %v3622_v45 = vsel %vm3621_vm14, %v3620_v49, 0 }
 0x499   : > { %v3088_v26 = vsel %vm3081_vm9, %v3084_v61, %v3087_v29  ;;  %v3463_v52 = vadd.s32 536870912, %v3462_v60  ;;  %v3624_v10 = vand.u32 31, %v3622_v45  ;;  %vm7621_vm15 = vcmp.le.f32.partialorder %v3194_v33, 0.7853982 }
 0x49a   : > { %v3089_v56 = vsel %vm3078_vm8, nan, %v3088_v26  ;;  %v3273_v34 = vor.u32 4788187, %v3272_v55  ;;  %v3276_v36 = vcvt.s32.f32 %v3269_v50  ;;  %v3283_v2 = vsel %vm7621_vm15, 0, %v3281_v18 }
 0x49b   : > { %v7625_v17 = vshrl.u32 %v3463_v52, 30  ;;  %v3625_v40 = vsub.s32 32, %v3624_v10  ;;  %4135 = vst [vmem:[%s5442_s18 + $0xa8] sm:$0xff] %v3089_v56  ;;  %v3618_v24 = vor.u32 8388608, %v3617_v57  ;;  %v3627_v54 = vshll.u32 %v7948_v28, %v3624_v10 }
 0x49c   : > { %v3274_v12 = vand.u32 2147483647, %v3273_v34  ;;  %v3822_v33 = vshrl.u32 %v3821_v22, 23  ;;  %v3630_v59 = vshll.u32 %v7949_v15, %v3624_v10  ;;  %v3633_v6 = vshll.u32 %v7953_v1, %v3624_v10 }
 0x49d   : > { %v3465_v37 = vshll.u32 %v7625_v17, 30  ;;  %v3628_v48 = vshrl.u32 %v7949_v15, %v3625_v40  ;;  %v3631_v53 = vshrl.u32 %v7953_v1, %v3625_v40  ;;  %v3634_v58 = vshrl.u32 %v4838_v11, %v3625_v40 }
 0x49e   : > { %v3277_v46 = vmul.f32 %v3276_v36, %v3274_v12  ;;  %v3637_v16 = vshrl.u32 %v4839_v14, %v3625_v40  ;;  %v3640_v43 = vshrl.u32 %v4840_v30, %v3625_v40  ;;  %v3623_v13 = vshrl.u32 %v3622_v45, 5 }
 0x49f   : > { %v7636_v8 = vsub.s32 %v3462_v60, %v3465_v37  ;;  %v3636_v21 = vshll.u32 %v4838_v11, %v3624_v10  ;;  %v3639_v47 = vshll.u32 %v4839_v14, %v3624_v10  ;;  %v3629_v27 = vor.u32 %v3628_v48, %v3627_v54 }
 0x4a0   : > { %v3278_v0 = vxor.u32 2147483648, %v3277_v46  ;;  %v3632_v18 = vor.u32 %v3631_v53, %v3630_v59  ;;  %v3635_v49 = vor.u32 %v3634_v58, %v3633_v6  ;;  %v3287_v9 = vadd.s32 3, %v3283_v2 }
 0x4a1   : > { %v3468_v35 = vsub.s32 0, %v7636_v8  ;;  %v3638_v31 = vor.u32 %v3637_v16, %v3636_v21  ;;  %v3658_v42 = vshll.u32 %v3618_v24, 8  ;;  %v3641_v5 = vor.u32 %v3640_v43, %v3639_v47 }
 0x4a2   : > { %v3279_v39 = vsel %vm3196_vm7, %v3278_v0, %v3277_v46  ;;  %v4365_v41 = vadd.s32 4294967169, %v3822_v33  ;;  %v3488_v29 = vsub.s32 4, %v7625_v17  ;;  %vm3642_vm0 = vcmp.lt.s32.totalorder %v3623_v13, 1 }
 0x4a3   : > { %v3282_v63 = vsel %vm7621_vm15, %v7344_v44, %v3279_v39  ;;  %v4350_v20 = vmin.u32 %v3468_v35, %v7636_v8  ;;  %vm3645_vm1 = vcmp.lt.s32.totalorder %v3623_v13, 4  ;;  %vm3404_vm2 = vcmp.lt.s32.totalorder %v7370_v51, 0 }
 0x4a4   : > { %4709 = vcosq.f32 %v3282_v63  ;;  %v3647_v57 = vsel %vm3645_vm1, %v3635_v49, 2102212464  ;;  %v3650_v61 = vsel %vm3642_vm0, %v3629_v27, %v3632_v18  ;;  %v3626_v50 = vshrl.u32 %v7948_v28, %v3625_v40 }
 0x4a5   : > { %4711 = vsinq.f32 %v3282_v63  ;;  %v3470_v60 = vclz %v4350_v20  ;;  %vm3644_vm4 = vcmp.lt.s32.totalorder %v3623_v13, 3  ;;  %v3651_v55 = vsel %vm3645_vm1, %v3638_v31, 920167782 }
 0x4a6   : > { %v3654_v45 = vsel %vm3642_vm0, %v3632_v18, %v3635_v49  ;;  %vm3643_vm3 = vcmp.lt.s32.totalorder %v3623_v13, 2  ;;  %v3652_v52 = vsel %vm3644_vm4, %v3635_v49, %v3651_v55  ;;  %v3655_v10 = vsel %vm3645_vm1, %v3641_v5, 1326507024 }
 0x4a7   : > { %v4351_v26 = vadd.s32 4294967294, %v3470_v60  ;;  %v3646_v22 = vsel %vm3642_vm0, %v3626_v50, %v3629_v27  ;;  %v3648_v56 = vsel %vm3644_vm4, %v3632_v18, %v3647_v57  ;;  %v3653_v34 = vsel %vm3643_vm3, %v3650_v61, %v3652_v52 }
 0x4a8   : > { %v3656_v62 = vsel %vm3644_vm4, %v3638_v31, %v3655_v10  ;;  %vm7656_vm5 = vcmp.le.f32.partialorder %v3402_v7, 0.7853982  ;;  %v7661_v36 = vmul.u32.u64.low %v3658_v42, %v3653_v34  ;;  %v7662_v2 = vmul.u32.u64.high %v3658_v42, %v3653_v34, %v7661_v36 }
 0x4a9   : > { %vm4352_vm6 = vcmp.lt.s32.totalorder %v4351_v26, 0  ;;  %v3657_v40 = vsel %vm3643_vm3, %v3654_v45, %v3656_v62  ;;  %v3828_v48 = vadd.s32 1, %v4365_v41  ;;  %vm3286_vm7 = vweird.f32 %v7344_v44 }
 0x4aa   : > { %v3473_v24 = vsel %vm4352_vm6, 0, %v4351_v26  ;;  %v7665_v37 = vmul.u32.u64.low %v3658_v42, %v3657_v40  ;;  %v7666_v54 = vmul.u32.u64.high %v3658_v42, %v3657_v40, %v7665_v37  ;;  %v3458_v7 = vadd.s32 %v7579_v32, %v7589_v25 }
 0x4ab   : > { %v3474_v33 = vsub.s32 32, %v3473_v24  ;;  %v3478_v46 = vsub.s32 4294967266, %v3473_v24  ;;  %v3649_v53 = vsel %vm3643_vm3, %v3646_v22, %v3648_v56  ;;  %v3288_v58 = vand.u32 3, %v3287_v9 }
 0x4ac   : > { %v3475_v16 = vshll.u32 %v7636_v8, %v3473_v24  ;;  %v3818_v59 = vand.u32 2147483647, %v7573_v38  ;;  %vm3829_vm8 = vcmp.gt.s32.totalorder %v3828_v48, 0  ;;  %v3668_v0 = vadd.s32 1, %v7662_v2 }
 0x4ad   : > { %v3476_v6 = vshrl.u32 %v3458_v7, %v3474_v33  ;;  %v3479_v43 = vadd.s32 127, %v3478_v46  ;;  %v3830_v21 = vsel %vm3829_vm8, %v3828_v48, 0  ;;  %v3489_v32 = vsel %vm3404_vm2, %v3488_v29, %v7625_v17 }
 0x4ae   : > { %v4710_v47 = vpop.eup %4709  ;;  %v3665_v25 = vmul.u32 %v3658_v42, %v3649_v53  ;;  %vm3667_vm9 = vc.u32 %v7666_v54, %v7661_v36  ;;  %v3832_v13 = vand.u32 31, %v3830_v21  ;;  %vm3293_vm10 = vcmp.eq.s32.totalorder %v3288_v58, 2 }
 0x4af   : > { %v4712_v35 = vpop.eup %4711  ;;  %v3294_v8 = vxor.u32 2147483648, %v4710_v47  ;;  %v3477_v27 = vor.u32 %v3476_v6, %v3475_v16  ;;  %v3480_v18 = vshll.u32 %v3479_v43, 23  ;;  %v3669_v49 = vsel %vm3667_vm9, %v3668_v0, %v7662_v2 }
 0x4b0   : > { %v3291_v39 = vxor.u32 2147483648, %v4712_v35  ;;  %v3670_v9 = vadd.s32 %v3669_v49, %v3665_v25  ;;  %v3833_v31 = vsub.s32 32, %v3832_v13  ;;  %vm3289_vm13 = vcmp.lt.s32.totalorder %v3288_v58, 2 }
 0x4b1   : > { %vm3290_vm12 = vcmp.eq.s32.totalorder %v3288_v58, 0  ;;  %v3295_v63 = vsel %vm3293_vm10, %v3294_v8, %v4712_v35  ;;  %v3481_v20 = vor.u32 4788187, %v3480_v18  ;;  %v3491_v42 = vsel %vm7656_vm5, 0, %v3489_v32 }
 0x4b2   : > { %v3292_v17 = vsel %vm3290_vm12, %v4710_v47, %v3291_v39  ;;  %v3671_v5 = vadd.s32 536870912, %v3670_v9  ;;  %v3825_v41 = vand.u32 8388607, %v3818_v59  ;;  %v3484_v57 = vcvt.s32.f32 %v3477_v27 }
 0x4b3   : > { %v3296_v29 = vsel %vm3289_vm13, %v3292_v17, %v3295_v63  ;;  %v3482_v60 = vand.u32 2147483647, %v3481_v20  ;;  %v3836_v61 = vshrl.u32 %v7949_v15, %v3833_v31  ;;  %v3839_v45 = vshrl.u32 %v7953_v1, %v3833_v31 }
 0x4b4   : > { %v3297_v50 = vsel %vm3286_vm7, nan, %v3296_v29  ;;  %v7688_v55 = vshrl.u32 %v3671_v5, 30  ;;  %v3842_v26 = vshrl.u32 %v4838_v11, %v3833_v31  ;;  %v3831_v10 = vshrl.u32 %v3830_v21, 5 }
 0x4b5   : > { %v3485_v52 = vmul.f32 %v3484_v57, %v3482_v60  ;;  %v3844_v22 = vshll.u32 %v4838_v11, %v3832_v13  ;;  %v3845_v56 = vshrl.u32 %v4839_v14, %v3833_v31  ;;  %4137 = vst [vmem:[%s5442_s18 + $0xb8] sm:$0xff] %v3297_v50  ;;  %v3835_v62 = vshll.u32 %v7948_v28, %v3832_v13 }
 0x4b6   : > { %v3673_v34 = vshll.u32 %v7688_v55, 30  ;;  %v3838_v44 = vshll.u32 %v7949_v15, %v3832_v13  ;;  %v3841_v40 = vshll.u32 %v7953_v1, %v3832_v13  ;;  %v3847_v37 = vshll.u32 %v4839_v14, %v3832_v13 }
 0x4b7   : > { %v3486_v2 = vxor.u32 2147483648, %v3485_v52  ;;  %v3846_v24 = vor.u32 %v3845_v56, %v3844_v22  ;;  %v3848_v48 = vshrl.u32 %v4840_v30, %v3833_v31  ;;  %v3837_v33 = vor.u32 %v3836_v61, %v3835_v62 }
 0x4b8   : > { %v7701_v7 = vsub.s32 %v3670_v9, %v3673_v34  ;;  %v3840_v46 = vor.u32 %v3839_v45, %v3838_v44  ;;  %v3843_v53 = vor.u32 %v3842_v26, %v3841_v40  ;;  %v7705_v58 = vadd.f32 %v7617_v19, %v6224_v3 }
 0x4b9   : > { %v3487_v16 = vsel %vm3404_vm2, %v3486_v2, %v3485_v52  ;;  %v3495_v6 = vadd.s32 3, %v3491_v42  ;;  %v3849_v43 = vor.u32 %v3848_v48, %v3847_v37  ;;  %v3826_v47 = vor.u32 8388608, %v3825_v41 }
 0x4ba   : > { %v3490_v0 = vsel %vm7656_vm5, %v7370_v51, %v3487_v16  ;;  %v3676_v21 = vsub.s32 0, %v7701_v7  ;;  %vm3853_vm11 = vcmp.lt.s32.totalorder %v3831_v10, 4  ;;  %vm3850_vm14 = vcmp.lt.s32.totalorder %v3831_v10, 1 }
 0x4bb   : > { %4713 = vcosq.f32 %v3490_v0  ;;  %vm3852_vm15 = vcmp.lt.s32.totalorder %v3831_v10, 3  ;;  %v3859_v32 = vsel %vm3853_vm11, %v3846_v24, 920167782  ;;  %v3855_v19 = vsel %vm3853_vm11, %v3843_v53, 2102212464 }
 0x4bc   : > { %4715 = vsinq.f32 %v3490_v0  ;;  %v4358_v3 = vmin.u32 %v3676_v21, %v7701_v7  ;;  %v3858_v25 = vsel %vm3850_vm14, %v3837_v33, %v3840_v46  ;;  %v3834_v13 = vshrl.u32 %v7948_v28, %v3833_v31 }
 0x4bd   : > { %v3860_v35 = vsel %vm3852_vm15, %v3843_v53, %v3859_v32  ;;  %v3862_v8 = vsel %vm3850_vm14, %v3840_v46, %v3843_v53  ;;  %v3863_v12 = vsel %vm3853_vm11, %v3849_v43, 1326507024  ;;  %v3496_v27 = vand.u32 3, %v3495_v6 }
 0x4be   : > { %v3678_v18 = vclz %v4358_v3  ;;  %vm3851_vm0 = vcmp.lt.s32.totalorder %v3831_v10, 2  ;;  %v3866_v49 = vshll.u32 %v3826_v47, 8  ;;  %v3854_v39 = vsel %vm3850_vm14, %v3834_v13, %v3837_v33 }
 0x4bf   : > { %v3856_v9 = vsel %vm3852_vm15, %v3840_v46, %v3855_v19  ;;  %v3861_v63 = vsel %vm3851_vm0, %v3858_v25, %v3860_v35  ;;  %v3864_v20 = vsel %vm3852_vm15, %v3846_v24, %v3863_v12  ;;  %v4029_v60 = vand.u32 2139095040, %v7705_v58 }
 0x4c0   : > { %v4359_v17 = vadd.s32 4294967294, %v3678_v18  ;;  %v3865_v42 = vsel %vm3851_vm0, %v3862_v8, %v3864_v20  ;;  %v7718_v5 = vmul.u32.u64.low %v3866_v49, %v3861_v63  ;;  %v7719_v41 = vmul.u32.u64.high %v3866_v49, %v3861_v63, %v7718_v5 }
 0x4c1   : > { %v7722_v31 = vmul.u32.u64.low %v3866_v49, %v3865_v42  ;;  %v7723_v29 = vmul.u32.u64.high %v3866_v49, %v3865_v42, %v7722_v31  ;;  %vm3494_vm1 = vweird.f32 %v7370_v51  ;;  %vm3612_vm2 = vcmp.lt.s32.totalorder %v7537_v23, 0 }
 0x4c2   : > { %vm4360_vm4 = vcmp.lt.s32.totalorder %v4359_v17, 0  ;;  %v3857_v57 = vsel %vm3851_vm0, %v3854_v39, %v3856_v9  ;;  %vm3497_vm3 = vcmp.lt.s32.totalorder %v3496_v27, 2  ;;  %v3666_v61 = vadd.s32 %v7661_v36, %v7666_v54 }
 0x4c3   : > { %v3681_v50 = vsel %vm4360_vm4, 0, %v4359_v17  ;;  %v4030_v45 = vshrl.u32 %v4029_v60, 23  ;;  %v3696_v10 = vsub.s32 4, %v7688_v55  ;;  %v3876_v22 = vadd.s32 1, %v7719_v41 }
 0x4c4   : > { %v3682_v26 = vsub.s32 32, %v3681_v50  ;;  %v3686_v52 = vsub.s32 4294967266, %v3681_v50  ;;  %v3683_v34 = vshll.u32 %v7701_v7, %v3681_v50  ;;  %v3873_v62 = vmul.u32 %v3866_v49, %v3857_v57 }
 0x4c5   : > { %v4714_v56 = vpop.eup %4713  ;;  %vm3875_vm5 = vc.u32 %v7723_v29, %v7718_v5  ;;  %v4373_v44 = vadd.s32 4294967169, %v4030_v45  ;;  %vm3501_vm6 = vcmp.eq.s32.totalorder %v3496_v27, 2  ;;  %vm3498_vm7 = vcmp.eq.s32.totalorder %v3496_v27, 0 }
 0x4c6   : > { %v4716_v40 = vpop.eup %4715  ;;  %v3502_v2 = vxor.u32 2147483648, %v4714_v56  ;;  %v3684_v24 = vshrl.u32 %v3666_v61, %v3682_v26  ;;  %v3687_v36 = vadd.s32 127, %v3686_v52  ;;  %v3877_v54 = vsel %vm3875_vm5, %v3876_v22, %v7719_v41 }
 0x4c7   : > { %v3499_v37 = vxor.u32 2147483648, %v4716_v40  ;;  %v3878_v48 = vadd.s32 %v3877_v54, %v3873_v62  ;;  %v4036_v33 = vadd.s32 1, %v4373_v44  ;;  %v3697_v6 = vsel %vm3612_vm2, %v3696_v10, %v7688_v55 }
 0x4c8   : > { %v3503_v46 = vsel %vm3501_vm6, %v3502_v2, %v4716_v40  ;;  %v3685_v53 = vor.u32 %v3684_v24, %v3683_v34  ;;  %v3688_v16 = vshll.u32 %v3687_v36, 23  ;;  %vm7742_vm9 = vcmp.le.f32.partialorder %v3610_v4, 0.7853982 }
 0x4c9   : > { %v3500_v7 = vsel %vm3498_vm7, %v4714_v56, %v3499_v37  ;;  %v3879_v43 = vadd.s32 536870912, %v3878_v48  ;;  %vm4037_vm8 = vcmp.gt.s32.totalorder %v4036_v33, 0  ;;  %v4026_v25 = vand.u32 2147483647, %v7705_v58 }
 0x4ca   : > { %v3504_v0 = vsel %vm3497_vm3, %v3500_v7, %v3503_v46  ;;  %v3689_v47 = vor.u32 4788187, %v3688_v16  ;;  %v4038_v32 = vsel %vm4037_vm8, %v4036_v33, 0  ;;  %v3692_v35 = vcvt.s32.f32 %v3685_v53 }
 0x4cb   : > { %v3505_v3 = vsel %vm3494_vm1, nan, %v3504_v0  ;;  %v7748_v19 = vshrl.u32 %v3879_v43, 30  ;;  %v4040_v55 = vand.u32 31, %v4038_v32  ;;  %v3699_v8 = vsel %vm7742_vm9, 0, %v3697_v6 }
 0x4cc   : > { %v3690_v13 = vand.u32 2147483647, %v3689_v47  ;;  %4139 = vst [vmem:[%s5442_s18 + $0xc8] sm:$0xff] %v3505_v3  ;;  %v3703_v18 = vadd.s32 3, %v3699_v8  ;;  %v4033_v51 = vand.u32 8388607, %v4026_v25 }
 0x4cd   : > { %v3881_v4 = vshll.u32 %v7748_v19, 30  ;;  %v4041_v12 = vsub.s32 32, %v4040_v55  ;;  %v4043_v63 = vshll.u32 %v7948_v28, %v4040_v55  ;;  %v4046_v41 = vshll.u32 %v7949_v15, %v4040_v55 }
 0x4ce   : > { %v3693_v27 = vmul.f32 %v3692_v35, %v3690_v13  ;;  %v4049_v31 = vshll.u32 %v7953_v1, %v4040_v55  ;;  %v4039_v61 = vshrl.u32 %v4038_v32, 5  ;;  %v4052_v45 = vshll.u32 %v4838_v11, %v4040_v55 }
 0x4cf   : > { %v7755_v49 = vsub.s32 %v3878_v48, %v3881_v4  ;;  %v4044_v39 = vshrl.u32 %v7949_v15, %v4041_v12  ;;  %v4047_v20 = vshrl.u32 %v7953_v1, %v4041_v12  ;;  %v4050_v17 = vshrl.u32 %v4838_v11, %v4041_v12 }
 0x4d0   : > { %v3694_v9 = vxor.u32 2147483648, %v3693_v27  ;;  %v4053_v60 = vshrl.u32 %v4839_v14, %v4041_v12  ;;  %v4055_v1 = vshll.u32 %v4839_v14, %v4040_v55  ;;  %v4056_v56 = vshrl.u32 %v4840_v30, %v4041_v12 }
 0x4d1   : > { %v3884_v42 = vsub.s32 0, %v7755_v49  ;;  %v4045_v50 = vor.u32 %v4044_v39, %v4043_v63  ;;  %v4048_v10 = vor.u32 %v4047_v20, %v4046_v41  ;;  %v4051_v22 = vor.u32 %v4050_v17, %v4049_v31 }
 0x4d2   : > { %v3695_v57 = vsel %vm3612_vm2, %v3694_v9, %v3693_v27  ;;  %v4054_v15 = vor.u32 %v4053_v60, %v4052_v45  ;;  %v3704_v34 = vand.u32 3, %v3703_v18  ;;  %v4034_v44 = vor.u32 8388608, %v4033_v51 }
 0x4d3   : > { %v3698_v26 = vsel %vm7742_vm9, %v7537_v23, %v3695_v57  ;;  %v4366_v52 = vmin.u32 %v3884_v42, %v7755_v49  ;;  %v3874_v11 = vadd.s32 %v7718_v5, %v7723_v29  ;;  %v4042_v40 = vshrl.u32 %v7948_v28, %v4041_v12 }
 0x4d4   : > { %4717 = vcosq.f32 %v3698_v26  ;;  %v4057_v2 = vor.u32 %v4056_v56, %v4055_v1  ;;  %vm4058_vm10 = vcmp.lt.s32.totalorder %v4039_v61, 1  ;;  %vm4060_vm13 = vcmp.lt.s32.totalorder %v4039_v61, 3 }
 0x4d5   : > { %4719 = vsinq.f32 %v3698_v26  ;;  %v3886_v62 = vclz %v4366_v52  ;;  %vm4061_vm12 = vcmp.lt.s32.totalorder %v4039_v61, 4  ;;  %v4066_v36 = vsel %vm4058_vm10, %v4045_v50, %v4048_v10 }
 0x4d6   : > { %v4063_v54 = vsel %vm4061_vm12, %v4051_v22, 2102212464  ;;  %v4067_v14 = vsel %vm4061_vm12, %v4054_v15, 920167782  ;;  %v4070_v30 = vsel %vm4058_vm10, %v4048_v10, %v4051_v22  ;;  %v4071_v37 = vsel %vm4061_vm12, %v4057_v2, 1326507024 }
 0x4d7   : > { %v4367_v24 = vadd.s32 4294967294, %v3886_v62  ;;  %vm4059_vm14 = vcmp.lt.s32.totalorder %v4039_v61, 2  ;;  %v4068_v48 = vsel %vm4060_vm13, %v4051_v22, %v4067_v14  ;;  %v4072_v5 = vsel %vm4060_vm13, %v4054_v15, %v4071_v37 }
 0x4d8   : > { %v4069_v28 = vsel %vm4059_vm14, %v4066_v36, %v4068_v48  ;;  %v4073_v33 = vsel %vm4059_vm14, %v4070_v30, %v4072_v5  ;;  %v4074_v46 = vshll.u32 %v4034_v44, 8  ;;  %v4062_v7 = vsel %vm4058_vm10, %v4042_v40, %v4045_v50 }
 0x4d9   : > { %vm4368_vm11 = vcmp.lt.s32.totalorder %v4367_v24, 0  ;;  %v4064_v6 = vsel %vm4060_vm13, %v4048_v10, %v4063_v54  ;;  %vm3709_vm15 = vcmp.eq.s32.totalorder %v3704_v34, 2  ;;  %vm3706_vm1 = vcmp.eq.s32.totalorder %v3704_v34, 0 }
 0x4da   : > { %v3889_v29 = vsel %vm4368_vm11, 0, %v4367_v24  ;;  %v7787_v43 = vmul.u32.u64.low %v4074_v46, %v4073_v33  ;;  %v7788_v0 = vmul.u32.u64.high %v4074_v46, %v4073_v33, %v7787_v43  ;;  %v4065_v35 = vsel %vm4059_vm14, %v4062_v7, %v4064_v6 }
 0x4db   : > { %v3890_v53 = vsub.s32 32, %v3889_v29  ;;  %v3894_v16 = vsub.s32 4294967266, %v3889_v29  ;;  %v7790_v21 = vmul.u32.u64.low %v4074_v46, %v4069_v28  ;;  %v7791_v47 = vmul.u32.u64.high %v4074_v46, %v4069_v28, %v7790_v21 }
 0x4dc   : > { %v3891_v32 = vshll.u32 %v7755_v49, %v3889_v29  ;;  %v4081_v49 = vmul.u32 %v4074_v46, %v4065_v35  ;;  %vm3702_vm2 = vweird.f32 %v7537_v23  ;;  %vm3705_vm4 = vcmp.lt.s32.totalorder %v3704_v34, 2 }
 0x4dd   : > { %v3892_v3 = vshrl.u32 %v3874_v11, %v3890_v53  ;;  %v3895_v55 = vadd.s32 127, %v3894_v16  ;;  %vm4083_vm0 = vc.u32 %v7788_v0, %v7790_v21  ;;  %v4084_v51 = vadd.s32 1, %v7791_v47 }
 0x4de   : > { %v4718_v13 = vpop.eup %4717  ;;  %v3904_v57 = vsub.s32 4, %v7748_v19  ;;  %vm3820_vm3 = vcmp.lt.s32.totalorder %v7573_v38, 0  ;;  %vm3819_vm5 = vcmp.le.f32.partialorder %v3818_v59, 0.7853982  ;;  %v4082_v54 = vadd.s32 %v7790_v21, %v7788_v0 }
 0x4df   : > { %v4720_v8 = vpop.eup %4719  ;;  %v3710_v4 = vxor.u32 2147483648, %v4718_v13  ;;  %v3893_v12 = vor.u32 %v3892_v3, %v3891_v32  ;;  %v3896_v27 = vshll.u32 %v3895_v55, 23  ;;  %v4085_v20 = vsel %vm4083_vm0, %v4084_v51, %v7791_v47 }
 0x4e0   : > { %v3707_v18 = vxor.u32 2147483648, %v4720_v8  ;;  %v4086_v31 = vadd.s32 %v4085_v20, %v4081_v49  ;;  %v3905_v23 = vsel %vm3820_vm3, %v3904_v57, %v7748_v19  ;;  %vm3910_vm10 = vweird.f32 %v7573_v38 }
 0x4e1   : > { %v3711_v39 = vsel %vm3709_vm15, %v3710_v4, %v4720_v8  ;;  %v3897_v9 = vor.u32 4788187, %v3896_v27  ;;  %v3900_v41 = vcvt.s32.f32 %v3893_v12  ;;  %v3907_v15 = vsel %vm3819_vm5, 0, %v3905_v23 }
 0x4e2   : > { %v3708_v63 = vsel %vm3706_vm1, %v4718_v13, %v3707_v18  ;;  %v4087_v50 = vadd.s32 536870912, %v4086_v31  ;;  %v3911_v34 = vadd.s32 3, %v3907_v15  ;;  %vm4028_vm13 = vcmp.lt.s32.totalorder %v7705_v58, 0 }
 0x4e3   : > { %v3712_v17 = vsel %vm3705_vm4, %v3708_v63, %v3711_v39  ;;  %v3898_v42 = vand.u32 2147483647, %v3897_v9  ;;  %vm4027_vm12 = vcmp.le.f32.partialorder %v4026_v25, 0.7853982  ;;  %vm4118_vm0 = vweird.f32 %v7705_v58 }
 0x4e4   : > { %v3713_v60 = vsel %vm3702_vm2, nan, %v3712_v17  ;;  %v4088_v26 = vshrl.u32 %v4087_v50, 30  ;;  %v3912_v11 = vand.u32 3, %v3911_v34 }
 0x4e5   : > { %v3901_v61 = vmul.f32 %v3900_v41, %v3898_v42  ;;  %4141 = vst [vmem:[%s5442_s18 + $0xd8] sm:$0xff] %v3713_v60 }
 0x4e6   : > { %v4089_v10 = vshll.u32 %v4088_v26, 30  ;;  %vm3917_vm7 = vcmp.eq.s32.totalorder %v3912_v11, 2  ;;  %vm3913_vm8 = vcmp.lt.s32.totalorder %v3912_v11, 2  ;;  %vm3914_vm9 = vcmp.eq.s32.totalorder %v3912_v11, 0 }
 0x4e7   : > { %v3902_v45 = vxor.u32 2147483648, %v3901_v61  ;;  %v4112_v21 = vsub.s32 4, %v4088_v26 }
 0x4e8   : > { %v4090_v1 = vsub.s32 %v4086_v31, %v4089_v10 }
 0x4e9   : > { %v3903_v52 = vsel %vm3820_vm3, %v3902_v45, %v3901_v61 }
 0x4ea   : > { %v3906_v22 = vsel %vm3819_vm5, %v7573_v38, %v3903_v52  ;;  %v4092_v56 = vsub.s32 0, %v4090_v1  ;;  %v4113_v38 = vsel %vm4028_vm13, %v4112_v21, %v4088_v26 }
 0x4eb   : > { %4721 = vcosq.f32 %v3906_v22  ;;  %v4115_v55 = vsel %vm4027_vm12, 0, %v4113_v38 }
 0x4ec   : > { %4723 = vsinq.f32 %v3906_v22  ;;  %v4374_v62 = vmin.u32 %v4092_v56, %v4090_v1  ;;  %v4119_v13 = vadd.s32 3, %v4115_v55 }
 0x4ee   : > { %v4094_v44 = vclz %v4374_v62  ;;  %v4120_v35 = vand.u32 3, %v4119_v13 }
 0x4f0   : > { %v4375_v40 = vadd.s32 4294967294, %v4094_v44  ;;  %vm4125_vm11 = vcmp.eq.s32.totalorder %v4120_v35, 2  ;;  %vm4122_vm14 = vcmp.eq.s32.totalorder %v4120_v35, 0  ;;  %vm4121_vm15 = vcmp.lt.s32.totalorder %v4120_v35, 2 }
 0x4f2   : > { %vm4376_vm6 = vcmp.lt.s32.totalorder %v4375_v40, 0 }
 0x4f3   : > { %v4097_v59 = vsel %vm4376_vm6, 0, %v4375_v40 }
 0x4f4   : > { %v4098_v14 = vsub.s32 32, %v4097_v59  ;;  %v4102_v30 = vsub.s32 4294967266, %v4097_v59  ;;  %v4099_v5 = vshll.u32 %v4090_v1, %v4097_v59 }
 0x4f5   : > { %v4722_v2 = vpop.eup %4721 }
 0x4f6   : > { %v4724_v19 = vpop.eup %4723  ;;  %v3918_v24 = vxor.u32 2147483648, %v4722_v2  ;;  %v4100_v29 = vshrl.u32 %v4082_v54, %v4098_v14  ;;  %v4103_v28 = vadd.s32 127, %v4102_v30 }
 0x4f7   : > { %v3915_v36 = vxor.u32 2147483648, %v4724_v19 }
 0x4f8   : > { %v3919_v37 = vsel %vm3917_vm7, %v3918_v24, %v4724_v19  ;;  %v4101_v53 = vor.u32 %v4100_v29, %v4099_v5  ;;  %v4104_v16 = vshll.u32 %v4103_v28, 23 }
 0x4f9   : > { %v3916_v48 = vsel %vm3914_vm9, %v4722_v2, %v3915_v36 }
 0x4fa   : > { %v3920_v33 = vsel %vm3913_vm8, %v3916_v48, %v3919_v37  ;;  %v4105_v7 = vor.u32 4788187, %v4104_v16  ;;  %v4108_v43 = vcvt.s32.f32 %v4101_v53 }
 0x4fb   : > { %v3921_v46 = vsel %vm3910_vm10, nan, %v3920_v33 }
 0x4fc   : > { %4143 = vst [vmem:[%s5442_s18 + $0xe8] sm:$0xff] %v3921_v46  ;;  %v4106_v6 = vand.u32 2147483647, %v4105_v7 }
 0x4fe   : > { %v4109_v0 = vmul.f32 %v4108_v43, %v4106_v6 }
 0x500   : > { %v4110_v47 = vxor.u32 2147483648, %v4109_v0 }
 0x502   : > { %v4111_v32 = vsel %vm4028_vm13, %v4110_v47, %v4109_v0 }
 0x503   : > { %v4114_v3 = vsel %vm4027_vm12, %v7705_v58, %v4111_v32 }
 0x504   : > { %4725 = vcosq.f32 %v4114_v3 }
 0x505   : > { %4727 = vsinq.f32 %v4114_v3 }
 0x50e   : > { %v4726_v8 = vpop.eup %4725 }
 0x50f   : > { %v4728_v4 = vpop.eup %4727  ;;  %v4126_v12 = vxor.u32 2147483648, %v4726_v8 }
 0x510   : > { %v4123_v27 = vxor.u32 2147483648, %v4728_v4 }
 0x511   : > { %v4127_v25 = vsel %vm4125_vm11, %v4126_v12, %v4728_v4 }
 0x512   : > { %v4124_v18 = vsel %vm4122_vm14, %v4726_v8, %v4123_v27 }
 0x513   : > { %v4128_v51 = vsel %vm4121_vm15, %v4124_v18, %v4127_v25 }
 0x514   : > { %v4129_v39 = vsel %vm4118_vm0, nan, %v4128_v51 }
 0x515   : > { %4145 = vst [vmem:[%s5442_s18 + $0xf8] sm:$0xff] %v4129_v39 }
 0x516   : > { %4774 = shalt.err (!%p4771_p7)
}
 0x517   : > { %s4775_s21 = scalar_lea.hbm %s7818_s23, 4096  ;;  %s4779_s16 = scalar_lea.hbm %s7874_s7, 8192 }
 0x518   : > { %p4776_p8 = scmp.ne.s32.totalorder %s7818_s23, %s4775_s21  ;;  %p4780_p1 = scmp.lt.u32.totalorder %s7818_s23, %s7874_s7 }
 0x519   : > { %p4781_p0 = scmp.lt.u32.totalorder %s4779_s16, %s4775_s21  ;;  %p4783_p6 = scmp.lt.u32.totalorder %s4775_s21, %s7818_s23 }
 0x51a   : > { %p4777_p11 = pnand %p4776_p8, %p7976_p9 }
 0x51b   : > { %p4782_p5 = por %p4781_p0, %p4780_p1 }
 0x51c   : > { %p4778_p13 = pneg %p4777_p11 }
 0x51d   : > { %p4784_p10 = por %p4783_p6, %p4782_p5 }
 0x51f   : > { %p4785_p12 = pnand %p4784_p10, %p4778_p13 }
 0x521   : > { %4788 = shalt.err (!%p4785_p12)
}
 0x522   : > { %s4842_s20 = smov 256   ;;  %s4843_s22 = smov 16  }
 0x523   : > { %4530 = dma.vmem_to_hbm [thread:$0]  (%p7976_p9), %s7820_s13, 4096, %s7818_s23, %s7826_s28, %s4842_s20, %s4842_s20, %s4843_s22  }
 0x524 PF: > { %p4542_p2 = scmp.ge.s32.totalorder %s4827_s27, 2  ;;  %s4175_s29 = sand.u32 1, %s4815_s24  }
 0x525   : > { %p7977_p3 = scmp.ne.s32.totalorder %s7896_s12, 0  ;;  %s4176_s8 = scalar_lea.sflag [#allocation4], %s4175_s29 }
 0x527   : > { %p4537_p4 = pnand %p4542_p2, %p7977_p3 }
 0x529   : > { %4810 = dma.done.wait (!%p4537_p4), %s4176_s8, 4096  }
 0x52a   : > { %4812 = vsyncadd (!%p4537_p4), %s4176_s8, 4294963200  ;;  %p18_p7 = scmp.ge.s32.totalorder %s4909_s30, 4   ;;  %s7978_s24 = smov %s4819_s25 }
 0x52b   : > { %s7979_s25 = smov %s4823_s26  ;;  %s7980_s26 = smov %s4920_s10 }
 0x52c   : > { %s7981_s27 = smov %s4909_s30  ;;  %20 = sbr.rel (!%p18_p7) target bundleno = 4 (0x4), region = 88 }
 0x533   :  { %4181 = vsyncpa [#allocation3], 1 }
 0x534   :  { %4183 = vsyncpa [#allocation3 + $0x1], 1 }
 0x535   :  { %4184 = vsyncpa [#allocation4], 1 }
 0x536   :  { %4186 = vsyncpa [#allocation4 + $0x1], 1 }

</bundles_post_ra>
